<compile_context>
chip_gen: v5e
topology: v5e:2x2
jax: 0.10.0
libtpu: 0.0.40
codegen_flags: <defaults>
</compile_context>

<pallas_src>
import jax
import jax.numpy as jnp
from jax import lax
from jax.experimental import pallas as pl
from jax.experimental.pallas import tpu as pltpu

LEAKY_SLOPE = 0.1
BN_EPS = 1e-5
_PAD = 8    # aligned front-pad rows of the flat y1 buffer
_TAIL = 8   # aligned tail-pad rows


def _darknet_block_kernel(xm_ref, xt_ref, xb_ref,
                          w1_ref, s1_ref, b1_ref,
                          w2_ref, s2_ref, b2_ref,
                          o_ref, yext):
    """One (batch, row-strip) tile per grid step.

    xm_ref : (1, S, W, Cin)   main strip of x (Cin = 2*channels)
    xt_ref : (1, 1, W, Cin)   x row above the strip (clamped at the image top)
    xb_ref : (1, 1, W, Cin)   x row below the strip (clamped at the image bottom)
    w1_ref : (Cin, Cmid)      1x1 conv weights, bf16
    s1/b1  : (1, Cmid)        folded BN1 scale / bias, f32
    w2_ref : (9, Cmid, Cout)  3x3 conv taps (ky-major), bf16
    s2/b2  : (1, Cout)        folded BN2 scale / bias, f32
    o_ref  : (1, S, W, Cout)  Cout == Cin
    yext   : VMEM (_PAD + (S+2)*W + _TAIL, Cmid) bf16 flat y1 buffer
    """
    _, S, W, Cin = xm_ref.shape
    Cmid = w1_ref.shape[1]
    Cout = w2_ref.shape[2]
    P = S * W

    j = pl.program_id(1)
    last_j = pl.num_programs(1) - 1

    def conv1(x2d):
        # 1x1 conv (2C -> C) + folded BN + LeakyReLU(0.1); bf16 MXU, f32 math.
        y = jnp.dot(x2d.astype(jnp.bfloat16), w1_ref[...],
                    preferred_element_type=jnp.float32)
        y = y * s1_ref[...] + b1_ref[...]
        return jnp.maximum(y, LEAKY_SLOPE * y)

    # Zero the small alignment pads (only corner taps read them and those
    # positions are also column-masked; this is belt-and-braces). Both stores
    # are 8-row aligned.
    yext[pl.ds(0, _PAD), :] = jnp.zeros((_PAD, Cmid), jnp.bfloat16)
    yext[pl.ds(_PAD + (S + 2) * W, _TAIL), :] = jnp.zeros((_TAIL, Cmid),
                                                          jnp.bfloat16)

    # Halo y1 rows, recomputed from one extra x row per side; zeroed at the
    # image border (padding=1 of the 3x3 conv applies to y1, not x).
    y1_top = conv1(xt_ref[0, 0]) * (j > 0).astype(jnp.float32)
    y1_bot = conv1(xb_ref[0, 0]) * (j < last_j).astype(jnp.float32)

    # Main-strip y1.
    xm = xm_ref[0].reshape(P, Cin)       # cheap when W % 8 == 0
    y1 = conv1(xm)

    # Stage y1 once into the flat extended buffer:
    #   [ pad(8) | top halo row (W) | strip (S*W) | bottom halo row (W) | pad(8) ]
    # All stores are sublane-aligned when W % 8 == 0.
    yext[pl.ds(_PAD, W), :] = y1_top.astype(jnp.bfloat16)
    yext[pl.ds(_PAD + W, P), :] = y1.astype(jnp.bfloat16)
    yext[pl.ds(_PAD + W + P, W), :] = y1_bot.astype(jnp.bfloat16)

    # 3x3 conv (C -> 2C) as 9 accumulating matmuls over shifted flat views.
    # Output pixel p = r*W + c lives at flat row _PAD + W + p; tap (ky, kx)
    # reads flat row p + _PAD + ky*W + (kx - 1).  The horizontal wrap at row
    # edges is removed with a static column mask (VPU select).
    col = lax.broadcasted_iota(jnp.int32, (P, 1), 0) % W
    not_first_col = col != 0
    not_last_col = col != (W - 1)

    acc = jnp.zeros((P, Cout), jnp.float32)
    for ky in range(3):
        for kx in range(3):
            tap = yext[pl.ds(_PAD + ky * W + (kx - 1), P), :]
            if kx == 0:
                tap = jnp.where(not_first_col, tap, jnp.zeros_like(tap))
            elif kx == 2:
                tap = jnp.where(not_last_col, tap, jnp.zeros_like(tap))
            acc = acc + jnp.dot(tap, w2_ref[ky * 3 + kx],
                                preferred_element_type=jnp.float32)

    y2 = acc * s2_ref[...] + b2_ref[...]
    y2 = jnp.maximum(y2, LEAKY_SLOPE * y2)     # LeakyReLU(0.1)

    # Residual (Cin == Cout); re-read x from VMEM instead of keeping an f32
    # copy live across both convs.
    out = y2 + xm_ref[0].reshape(P, Cout).astype(jnp.float32)
    o_ref[...] = out.reshape(1, S, W, Cout).astype(o_ref.dtype)


def _vmem_limit_bytes():
    """Per-generation VMEM limit (leaves headroom for compiler scratch)."""
    cap = None
    try:
        cap = getattr(pltpu.get_tpu_info(), "vmem_capacity_bytes", None)
    except Exception:
        cap = None
    if not cap:
        cap = 64 * 1024 * 1024            # conservative (v7x per-core)
    return int(max(32 * 1024 * 1024, min(cap * 3 // 4, 112 * 1024 * 1024)))


def _pick_strip_rows(N, H, W, cin, cmid, cout, x_bytes, vmem_budget,
                     min_units=4):
    """Largest strip height S (S | H, and S % 8 == 0 or S == H) that fits the
    VMEM budget while leaving >= min_units grid steps for megacore/pipelining."""
    def fits(S):
        P = S * W
        io = 2 * (P * cin * x_bytes + P * cout * x_bytes
                  + 2 * W * cin * x_bytes)                      # dbl-buffered blocks
        wgt = 2 * 2 * (cin * cmid + 9 * cmid * cout) + 4 * 2 * (cmid + cout)
        scratch = (_PAD + (S + 2) * W + _TAIL) * cmid * 2
        live = 4 * P * (cin + 2 * cmid + 3 * cout)              # rough f32 temps
        return io + wgt + scratch + live <= vmem_budget

    cands = [s for s in range(H, 0, -1)
             if H % s == 0 and (s % 8 == 0 or s == H)]
    for s in cands:
        if fits(s) and N * (H // s) >= min_units:
            return s
    for s in cands:
        if fits(s):
            return s
    return cands[-1] if cands else H


def darknet_block_nhwc(x_nhwc, w1, s1, b1, w2, s2, b2):
    """x_nhwc: (N, H, W, 2C); returns same shape/dtype.  Pass bf16 activations
    to halve HBM traffic (matmul math is bf16 either way; BN / LeakyReLU /
    residual are computed in f32)."""
    N, H, W, Cin = x_nhwc.shape
    Cmid = w1.shape[1]
    Cout = w2.shape[3]
    assert Cout == Cin, "residual requires Cout == Cin (== 2*channels)"

    vmem_limit = _vmem_limit_bytes()
    S = _pick_strip_rows(N, H, W, Cin, Cmid, Cout,
                         jnp.dtype(x_nhwc.dtype).itemsize,
                         vmem_budget=vmem_limit * 3 // 4)

    # bf16 weights for the MXU; 3x3 kernel split into 9 (Cmid, Cout) taps.
    w1_bf = w1.astype(jnp.bfloat16)
    w2_bf = w2.reshape(9, Cmid, Cout).astype(jnp.bfloat16)

    yext_rows = _PAD + (S + 2) * W + _TAIL

    return pl.pallas_call(
        _darknet_block_kernel,
        out_shape=jax.ShapeDtypeStruct((N, H, W, Cout), x_nhwc.dtype),
        grid_spec=pltpu.PrefetchScalarGridSpec(
            num_scalar_prefetch=0,
            grid=(N, H // S),
            in_specs=[
                # main S-row strip
                pl.BlockSpec((1, S, W, Cin), lambda n, j: (n, j, 0, 0)),
                # 1-row halo above / below (clamped index; masked in-kernel)
                pl.BlockSpec((1, 1, W, Cin),
                             lambda n, j: (n, jnp.maximum(j * S - 1, 0), 0, 0)),
                pl.BlockSpec((1, 1, W, Cin),
                             lambda n, j: (n, jnp.minimum(j * S + S, H - 1), 0, 0)),
                # weights / folded BN: resident (constant index map)
                pl.BlockSpec((Cin, Cmid), lambda n, j: (0, 0)),
                pl.BlockSpec((1, Cmid), lambda n, j: (0, 0)),
                pl.BlockSpec((1, Cmid), lambda n, j: (0, 0)),
                pl.BlockSpec((9, Cmid, Cout), lambda n, j: (0, 0, 0)),
                pl.BlockSpec((1, Cout), lambda n, j: (0, 0)),
                pl.BlockSpec((1, Cout), lambda n, j: (0, 0)),
            ],
            out_specs=pl.BlockSpec((1, S, W, Cout), lambda n, j: (n, j, 0, 0)),
            scratch_shapes=[pltpu.VMEM((yext_rows, Cmid), jnp.bfloat16)],
        ),
        compiler_params=pltpu.CompilerParams(
            dimension_semantics=("parallel", "parallel"),
            vmem_limit_bytes=vmem_limit),
    )(x_nhwc, x_nhwc, x_nhwc, w1_bf, s1, b1, w2_bf, s2, b2)


def darknet_block(x_nchw, params):
    """NCHW wrapper matching the PyTorch module interface.
    NOTE: in a full NHWC network these two transposes should be hoisted to the
    network boundary (each is a full HBM read+write pass)."""
    x_nhwc = jnp.transpose(x_nchw, (0, 2, 3, 1))
    out_nhwc = darknet_block_nhwc(x_nhwc, *params)
    return jnp.transpose(out_nhwc, (0, 3, 1, 2))


def init_params(key, channels):
    """Deterministic synthetic parameters (conv weights + folded eval-mode BN)."""
    c2 = channels * 2
    ks = jax.random.split(key, 10)

    # conv1: 1x1, in=2C, out=C (stored as (Cin, Cout) for the matmul)
    w1 = 0.1 * jax.random.normal(ks[0], (c2, channels), jnp.float32)
    g1 = 1.0 + 0.1 * jax.random.normal(ks[1], (channels,), jnp.float32)
    beta1 = 0.1 * jax.random.normal(ks[2], (channels,), jnp.float32)
    mean1 = 0.1 * jax.random.normal(ks[3], (channels,), jnp.float32)
    var1 = jnp.abs(jax.random.normal(ks[4], (channels,), jnp.float32)) + 0.5

    # conv2: 3x3, in=C, out=2C (HWIO)
    w2 = 0.1 * jax.random.normal(ks[5], (3, 3, channels, c2), jnp.float32)
    g2 = 1.0 + 0.1 * jax.random.normal(ks[6], (c2,), jnp.float32)
    beta2 = 0.1 * jax.random.normal(ks[7], (c2,), jnp.float32)
    mean2 = 0.1 * jax.random.normal(ks[8], (c2,), jnp.float32)
    var2 = jnp.abs(jax.random.normal(ks[9], (c2,), jnp.float32)) + 0.5

    s1 = g1 / jnp.sqrt(var1 + BN_EPS)
    b1 = beta1 - mean1 * s1
    s2 = g2 / jnp.sqrt(var2 + BN_EPS)
    b2 = beta2 - mean2 * s2

    return (w1, s1.reshape(1, -1), b1.reshape(1, -1),
            w2, s2.reshape(1, -1), b2.reshape(1, -1))


def reference_nhwc(x_nhwc, w1, s1, b1, w2, s2, b2):
    """Pure-JAX f32 reference (matches the original PyTorch module)."""
    dn = ('NHWC', 'HWIO', 'NHWC')
    y = lax.conv_general_dilated(x_nhwc, w1.reshape(1, 1, *w1.shape),
                                 (1, 1), 'VALID', dimension_numbers=dn)
    y = y * s1 + b1
    y = jnp.where(y > 0, y, LEAKY_SLOPE * y)
    z = lax.conv_general_dilated(y, w2, (1, 1), 'SAME', dimension_numbers=dn)
    z = z * s2 + b2
    z = jnp.where(z > 0, z, LEAKY_SLOPE * z)
    return x_nhwc + z


if __name__ == "__main__":
    key = jax.random.PRNGKey(0)
    kx, kp = jax.random.split(key)

    channels = 4                      # block width -> input has 2*channels = 8 chans
    N, H, W = 2, 16, 16
    x_nchw = jax.random.normal(kx, (N, channels * 2, H, W), jnp.float32)
    params = init_params(kp, channels)

    # f32 I/O path (matches the PyTorch module dtype-for-dtype)
    out = darknet_block(x_nchw, params)
    out = jax.block_until_ready(out)

    x_nhwc = jnp.transpose(x_nchw, (0, 2, 3, 1))
    ref = jnp.transpose(reference_nhwc(x_nhwc, *params), (0, 3, 1, 2))
    assert out.shape == x_nchw.shape and out.dtype == x_nchw.dtype
    # tolerance loosened because the kernel uses bf16 matmul operands
    assert jnp.allclose(out, ref, atol=5e-2, rtol=5e-2), "mismatch vs f32 reference"

    # bf16 HBM-I/O path (halves activation traffic in a real network)
    out_bf = darknet_block_nhwc(x_nhwc.astype(jnp.bfloat16), *params)
    out_bf = jax.block_until_ready(out_bf)
    ref_bf = reference_nhwc(x_nhwc.astype(jnp.bfloat16).astype(jnp.float32), *params)
    assert out_bf.dtype == jnp.bfloat16
    assert jnp.allclose(out_bf.astype(jnp.float32), ref_bf, atol=1e-1, rtol=1e-1), \
        "mismatch vs reference (bf16 I/O path)"

    print("KERNEL_OK")
</pallas_src>

<mosaic_0001>
module attributes {stable_mosaic.version = 11 : i64} {
  func.func @_darknet_block_kernel(%arg0: i32, %arg1: i32, %arg2: memref<1x8x16x8xf32, #tpu.memory_space<vmem>>, %arg3: memref<1x1x16x8xf32, #tpu.memory_space<vmem>>, %arg4: memref<1x1x16x8xf32, #tpu.memory_space<vmem>>, %arg5: memref<8x4xbf16, #tpu.memory_space<vmem>>, %arg6: memref<1x4xf32, #tpu.memory_space<vmem>>, %arg7: memref<1x4xf32, #tpu.memory_space<vmem>>, %arg8: memref<9x4x8xbf16, #tpu.memory_space<vmem>>, %arg9: memref<1x8xf32, #tpu.memory_space<vmem>>, %arg10: memref<1x8xf32, #tpu.memory_space<vmem>>, %arg11: memref<1x8x16x8xf32, #tpu.memory_space<vmem>>, %arg12: memref<176x4xbf16, #tpu.memory_space<vmem>>) attributes {dimension_semantics = [#tpu.dimension_semantics<parallel>, #tpu.dimension_semantics<parallel>], iteration_bounds = array<i64: 2, 2>, scalar_prefetch = 0 : i64, scratch_operands = 1 : i64, tpu.core_type = #tpu.core_type<tc>, window_params = [{transform_indices = @transform_0, window_bounds = array<i64: 1, 8, 16, 8>}, {transform_indices = @transform_1, window_bounds = array<i64: 1, 1, 16, 8>}, {transform_indices = @transform_2, window_bounds = array<i64: 1, 1, 16, 8>}, {pipeline_mode = #tpu.pipeline_mode<synchronous>, transform_indices = @transform_3, window_bounds = array<i64: 8, 4>}, {pipeline_mode = #tpu.pipeline_mode<synchronous>, transform_indices = @transform_4, window_bounds = array<i64: 1, 4>}, {pipeline_mode = #tpu.pipeline_mode<synchronous>, transform_indices = @transform_5, window_bounds = array<i64: 1, 4>}, {pipeline_mode = #tpu.pipeline_mode<synchronous>, transform_indices = @transform_6, window_bounds = array<i64: 9, 4, 8>}, {pipeline_mode = #tpu.pipeline_mode<synchronous>, transform_indices = @transform_7, window_bounds = array<i64: 1, 8>}, {pipeline_mode = #tpu.pipeline_mode<synchronous>, transform_indices = @transform_8, window_bounds = array<i64: 1, 8>}, {transform_indices = @transform_9, window_bounds = array<i64: 1, 8, 16, 8>}]} {
    %cst = arith.constant 0.000000e+00 : bf16
    %0 = vector.broadcast %cst : bf16 to vector<8x4xbf16>
    %c0 = arith.constant 0 : index
    %c0_0 = arith.constant 0 : index
    %1 = vector.load %arg12[%c0, %c0_0] : memref<176x4xbf16, #tpu.memory_space<vmem>>, vector<8x4xbf16>
    tpu.vector_store %arg12[%c0, %c0_0], %0 {strides = array<i32>} : memref<176x4xbf16, #tpu.memory_space<vmem>>, vector<8x4xbf16>,
    %cst_1 = arith.constant 0.000000e+00 : bf16
    %2 = vector.broadcast %cst_1 : bf16 to vector<8x4xbf16>
    %c168 = arith.constant 168 : index
    %c0_2 = arith.constant 0 : index
    %3 = vector.load %arg12[%c168, %c0_2] : memref<176x4xbf16, #tpu.memory_space<vmem>>, vector<8x4xbf16>
    tpu.vector_store %arg12[%c168, %c0_2], %2 {strides = array<i32>} : memref<176x4xbf16, #tpu.memory_space<vmem>>, vector<8x4xbf16>,
    %c0_3 = arith.constant 0 : index
    %c0_4 = arith.constant 0 : index
    %c0_5 = arith.constant 0 : index
    %c0_6 = arith.constant 0 : index
    %4 = vector.load %arg3[%c0_3, %c0_4, %c0_5, %c0_6] : memref<1x1x16x8xf32, #tpu.memory_space<vmem>>, vector<1x1x16x8xf32>
    %5 = vector.shape_cast %4 : vector<1x1x16x8xf32> to vector<16x8xf32>
    %6 = arith.truncf %5 : vector<16x8xf32> to vector<16x8xbf16>
    %c0_7 = arith.constant 0 : index
    %c0_8 = arith.constant 0 : index
    %7 = vector.load %arg5[%c0_7, %c0_8] : memref<8x4xbf16, #tpu.memory_space<vmem>>, vector<8x4xbf16>
    %cst_9 = arith.constant dense<0.000000e+00> : vector<16x4xf32>
    %8 = tpu.matmul %6, %7, %cst_9 {dimension_numbers = #tpu.dot_dimension_numbers<[1], [0], [0], [1], [0, 0, 1, 1], [], []>} : vector<16x8xbf16>, vector<8x4xbf16>, vector<16x4xf32> -> vector<16x4xf32>
    %c0_10 = arith.constant 0 : index
    %c0_11 = arith.constant 0 : index
    %9 = vector.load %arg6[%c0_10, %c0_11] : memref<1x4xf32, #tpu.memory_space<vmem>>, vector<1x4xf32>
    %10 = vector.broadcast %9 : vector<1x4xf32> to vector<16x4xf32>
    %11 = arith.mulf %8, %10 : vector<16x4xf32>
    %c0_12 = arith.constant 0 : index
    %c0_13 = arith.constant 0 : index
    %12 = vector.load %arg7[%c0_12, %c0_13] : memref<1x4xf32, #tpu.memory_space<vmem>>, vector<1x4xf32>
    %13 = vector.broadcast %12 : vector<1x4xf32> to vector<16x4xf32>
    %14 = arith.addf %11, %13 : vector<16x4xf32>
    %cst_14 = arith.constant 1.000000e-01 : f32
    %15 = vector.broadcast %cst_14 : f32 to vector<16x4xf32>
    %16 = arith.mulf %15, %14 : vector<16x4xf32>
    %17 = arith.maximumf %14, %16 : vector<16x4xf32>
    %c0_i32 = arith.constant 0 : i32
    %18 = arith.cmpi sgt, %arg1, %c0_i32 : i32
    %19 = arith.extui %18 : i1 to i32
    %20 = arith.sitofp %19 : i32 to f32
    %21 = vector.broadcast %20 : f32 to vector<16x4xf32>
    %22 = arith.mulf %17, %21 : vector<16x4xf32>
    %c0_15 = arith.constant 0 : index
    %c0_16 = arith.constant 0 : index
    %c0_17 = arith.constant 0 : index
    %c0_18 = arith.constant 0 : index
    %23 = vector.load %arg4[%c0_15, %c0_16, %c0_17, %c0_18] : memref<1x1x16x8xf32, #tpu.memory_space<vmem>>, vector<1x1x16x8xf32>
    %24 = vector.shape_cast %23 : vector<1x1x16x8xf32> to vector<16x8xf32>
    %25 = arith.truncf %24 : vector<16x8xf32> to vector<16x8xbf16>
    %c0_19 = arith.constant 0 : index
    %c0_20 = arith.constant 0 : index
    %26 = vector.load %arg5[%c0_19, %c0_20] : memref<8x4xbf16, #tpu.memory_space<vmem>>, vector<8x4xbf16>
    %cst_21 = arith.constant dense<0.000000e+00> : vector<16x4xf32>
    %27 = tpu.matmul %25, %26, %cst_21 {dimension_numbers = #tpu.dot_dimension_numbers<[1], [0], [0], [1], [0, 0, 1, 1], [], []>} : vector<16x8xbf16>, vector<8x4xbf16>, vector<16x4xf32> -> vector<16x4xf32>
    %c0_22 = arith.constant 0 : index
    %c0_23 = arith.constant 0 : index
    %28 = vector.load %arg6[%c0_22, %c0_23] : memref<1x4xf32, #tpu.memory_space<vmem>>, vector<1x4xf32>
    %29 = vector.broadcast %28 : vector<1x4xf32> to vector<16x4xf32>
    %30 = arith.mulf %27, %29 : vector<16x4xf32>
    %c0_24 = arith.constant 0 : index
    %c0_25 = arith.constant 0 : index
    %31 = vector.load %arg7[%c0_24, %c0_25] : memref<1x4xf32, #tpu.memory_space<vmem>>, vector<1x4xf32>
    %32 = vector.broadcast %31 : vector<1x4xf32> to vector<16x4xf32>
    %33 = arith.addf %30, %32 : vector<16x4xf32>
    %cst_26 = arith.constant 1.000000e-01 : f32
    %34 = vector.broadcast %cst_26 : f32 to vector<16x4xf32>
    %35 = arith.mulf %34, %33 : vector<16x4xf32>
    %36 = arith.maximumf %33, %35 : vector<16x4xf32>
    %c1_i32 = arith.constant 1 : i32
    %37 = arith.cmpi slt, %arg1, %c1_i32 : i32
    %38 = arith.extui %37 : i1 to i32
    %39 = arith.sitofp %38 : i32 to f32
    %40 = vector.broadcast %39 : f32 to vector<16x4xf32>
    %41 = arith.mulf %36, %40 : vector<16x4xf32>
    %c0_27 = arith.constant 0 : index
    %c0_28 = arith.constant 0 : index
    %c0_29 = arith.constant 0 : index
    %c0_30 = arith.constant 0 : index
    %42 = vector.load %arg2[%c0_27, %c0_28, %c0_29, %c0_30] : memref<1x8x16x8xf32, #tpu.memory_space<vmem>>, vector<1x8x16x8xf32>
    %43 = vector.shape_cast %42 : vector<1x8x16x8xf32> to vector<8x16x8xf32>
    %44 = vector.shape_cast %43 : vector<8x16x8xf32> to vector<128x8xf32>
    %45 = arith.truncf %44 : vector<128x8xf32> to vector<128x8xbf16>
    %c0_31 = arith.constant 0 : index
    %c0_32 = arith.constant 0 : index
    %46 = vector.load %arg5[%c0_31, %c0_32] : memref<8x4xbf16, #tpu.memory_space<vmem>>, vector<8x4xbf16>
    %cst_33 = arith.constant dense<0.000000e+00> : vector<128x4xf32>
    %47 = tpu.matmul %45, %46, %cst_33 {dimension_numbers = #tpu.dot_dimension_numbers<[1], [0], [0], [1], [0, 0, 1, 1], [], []>} : vector<128x8xbf16>, vector<8x4xbf16>, vector<128x4xf32> -> vector<128x4xf32>
    %c0_34 = arith.constant 0 : index
    %c0_35 = arith.constant 0 : index
    %48 = vector.load %arg6[%c0_34, %c0_35] : memref<1x4xf32, #tpu.memory_space<vmem>>, vector<1x4xf32>
    %49 = vector.broadcast %48 : vector<1x4xf32> to vector<128x4xf32>
    %50 = arith.mulf %47, %49 : vector<128x4xf32>
    %c0_36 = arith.constant 0 : index
    %c0_37 = arith.constant 0 : index
    %51 = vector.load %arg7[%c0_36, %c0_37] : memref<1x4xf32, #tpu.memory_space<vmem>>, vector<1x4xf32>
    %52 = vector.broadcast %51 : vector<1x4xf32> to vector<128x4xf32>
    %53 = arith.addf %50, %52 : vector<128x4xf32>
    %cst_38 = arith.constant 1.000000e-01 : f32
    %54 = vector.broadcast %cst_38 : f32 to vector<128x4xf32>
    %55 = arith.mulf %54, %53 : vector<128x4xf32>
    %56 = arith.maximumf %53, %55 : vector<128x4xf32>
    %57 = arith.truncf %22 : vector<16x4xf32> to vector<16x4xbf16>
    %c8 = arith.constant 8 : index
    %c0_39 = arith.constant 0 : index
    %58 = vector.load %arg12[%c8, %c0_39] : memref<176x4xbf16, #tpu.memory_space<vmem>>, vector<16x4xbf16>
    tpu.vector_store %arg12[%c8, %c0_39], %57 {strides = array<i32>} : memref<176x4xbf16, #tpu.memory_space<vmem>>, vector<16x4xbf16>,
    %59 = arith.truncf %56 : vector<128x4xf32> to vector<128x4xbf16>
    %c24 = arith.constant 24 : index
    %c0_40 = arith.constant 0 : index
    %60 = vector.load %arg12[%c24, %c0_40] : memref<176x4xbf16, #tpu.memory_space<vmem>>, vector<128x4xbf16>
    tpu.vector_store %arg12[%c24, %c0_40], %59 {strides = array<i32>} : memref<176x4xbf16, #tpu.memory_space<vmem>>, vector<128x4xbf16>,
    %61 = arith.truncf %41 : vector<16x4xf32> to vector<16x4xbf16>
    %c152 = arith.constant 152 : index
    %c0_41 = arith.constant 0 : index
    %62 = vector.load %arg12[%c152, %c0_41] : memref<176x4xbf16, #tpu.memory_space<vmem>>, vector<16x4xbf16>
    tpu.vector_store %arg12[%c152, %c0_41], %61 {strides = array<i32>} : memref<176x4xbf16, #tpu.memory_space<vmem>>, vector<16x4xbf16>,
    %63 = tpu.iota {dimensions = array<i32: 0>} : vector<128x1xi32>
    %c16_i32 = arith.constant 16 : i32
    %c0_i32_42 = arith.constant 0 : i32
    %64 = arith.cmpi eq, %c16_i32, %c0_i32_42 : i32
    %c1_i32_43 = arith.constant 1 : i32
    %65 = arith.select %64, %c1_i32_43, %c16_i32 : i32
    %66 = vector.broadcast %65 : i32 to vector<128x1xi32>
    %67 = arith.remsi %63, %66 : vector<128x1xi32>
    %c0_i32_44 = arith.constant 0 : i32
    %68 = vector.broadcast %c0_i32_44 : i32 to vector<128x1xi32>
    %69 = arith.cmpi ne, %67, %68 : vector<128x1xi32>
    %c0_i32_45 = arith.constant 0 : i32
    %70 = vector.broadcast %c0_i32_45 : i32 to vector<128x1xi32>
    %71 = arith.cmpi slt, %67, %70 : vector<128x1xi32>
    %c0_i32_46 = arith.constant 0 : i32
    %72 = arith.cmpi slt, %65, %c0_i32_46 : i32
    %73 = vector.broadcast %72 : i1 to vector<128x1xi1>
    %74 = vector.broadcast %73 : vector<128x1xi1> to vector<128x1xi1>
    %75 = arith.xori %71, %74 : vector<128x1xi1>
    %76 = arith.andi %75, %69 : vector<128x1xi1>
    %77 = vector.broadcast %65 : i32 to vector<128x1xi32>
    %78 = arith.addi %67, %77 : vector<128x1xi32>
    %79 = arith.select %76, %78, %67 : vector<128x1xi1>, vector<128x1xi32>
    %c0_i32_47 = arith.constant 0 : i32
    %80 = vector.broadcast %c0_i32_47 : i32 to vector<128x1xi32>
    %81 = arith.cmpi ne, %79, %80 : vector<128x1xi32>
    %c15_i32 = arith.constant 15 : i32
    %82 = vector.broadcast %c15_i32 : i32 to vector<128x1xi32>
    %83 = arith.cmpi ne, %79, %82 : vector<128x1xi32>
    %cst_48 = arith.constant 0.000000e+00 : f32
    %84 = vector.broadcast %cst_48 : f32 to vector<128x8xf32>
    %c7 = arith.constant 7 : index
    %c0_49 = arith.constant 0 : index
    %85 = vector.load %arg12[%c7, %c0_49] : memref<176x4xbf16, #tpu.memory_space<vmem>>, vector<128x4xbf16>
    %cst_50 = arith.constant 0.000000e+00 : bf16
    %86 = vector.broadcast %cst_50 : bf16 to vector<128x4xbf16>
    %87 = vector.shape_cast %81 : vector<128x1xi1> to vector<128x1xi1>
    %88 = vector.broadcast %87 : vector<128x1xi1> to vector<128x4xi1>
    %89 = arith.select %88, %85, %86 : vector<128x4xi1>, vector<128x4xbf16>
    %c0_51 = arith.constant 0 : index
    %c0_52 = arith.constant 0 : index
    %c0_53 = arith.constant 0 : index
    %90 = vector.load %arg8[%c0_51, %c0_52, %c0_53] : memref<9x4x8xbf16, #tpu.memory_space<vmem>>, vector<1x4x8xbf16>
    %91 = vector.shape_cast %90 : vector<1x4x8xbf16> to vector<4x8xbf16>
    %cst_54 = arith.constant dense<0.000000e+00> : vector<128x8xf32>
    %92 = tpu.matmul %89, %91, %cst_54 {dimension_numbers = #tpu.dot_dimension_numbers<[1], [0], [0], [1], [0, 0, 1, 1], [], []>} : vector<128x4xbf16>, vector<4x8xbf16>, vector<128x8xf32> -> vector<128x8xf32>
    %93 = arith.addf %84, %92 : vector<128x8xf32>
    %c8_55 = arith.constant 8 : index
    %c0_56 = arith.constant 0 : index
    %94 = vector.load %arg12[%c8_55, %c0_56] : memref<176x4xbf16, #tpu.memory_space<vmem>>, vector<128x4xbf16>
    %c1 = arith.constant 1 : index
    %c0_57 = arith.constant 0 : index
    %c0_58 = arith.constant 0 : index
    %95 = vector.load %arg8[%c1, %c0_57, %c0_58] : memref<9x4x8xbf16, #tpu.memory_space<vmem>>, vector<1x4x8xbf16>
    %96 = vector.shape_cast %95 : vector<1x4x8xbf16> to vector<4x8xbf16>
    %cst_59 = arith.constant dense<0.000000e+00> : vector<128x8xf32>
    %97 = tpu.matmul %94, %96, %cst_59 {dimension_numbers = #tpu.dot_dimension_numbers<[1], [0], [0], [1], [0, 0, 1, 1], [], []>} : vector<128x4xbf16>, vector<4x8xbf16>, vector<128x8xf32> -> vector<128x8xf32>
    %98 = arith.addf %93, %97 : vector<128x8xf32>
    %c9 = arith.constant 9 : index
    %c0_60 = arith.constant 0 : index
    %99 = vector.load %arg12[%c9, %c0_60] : memref<176x4xbf16, #tpu.memory_space<vmem>>, vector<128x4xbf16>
    %cst_61 = arith.constant 0.000000e+00 : bf16
    %100 = vector.broadcast %cst_61 : bf16 to vector<128x4xbf16>
    %101 = vector.shape_cast %83 : vector<128x1xi1> to vector<128x1xi1>
    %102 = vector.broadcast %101 : vector<128x1xi1> to vector<128x4xi1>
    %103 = arith.select %102, %99, %100 : vector<128x4xi1>, vector<128x4xbf16>
    %c2 = arith.constant 2 : index
    %c0_62 = arith.constant 0 : index
    %c0_63 = arith.constant 0 : index
    %104 = vector.load %arg8[%c2, %c0_62, %c0_63] : memref<9x4x8xbf16, #tpu.memory_space<vmem>>, vector<1x4x8xbf16>
    %105 = vector.shape_cast %104 : vector<1x4x8xbf16> to vector<4x8xbf16>
    %cst_64 = arith.constant dense<0.000000e+00> : vector<128x8xf32>
    %106 = tpu.matmul %103, %105, %cst_64 {dimension_numbers = #tpu.dot_dimension_numbers<[1], [0], [0], [1], [0, 0, 1, 1], [], []>} : vector<128x4xbf16>, vector<4x8xbf16>, vector<128x8xf32> -> vector<128x8xf32>
    %107 = arith.addf %98, %106 : vector<128x8xf32>
    %c23 = arith.constant 23 : index
    %c0_65 = arith.constant 0 : index
    %108 = vector.load %arg12[%c23, %c0_65] : memref<176x4xbf16, #tpu.memory_space<vmem>>, vector<128x4xbf16>
    %cst_66 = arith.constant 0.000000e+00 : bf16
    %109 = vector.broadcast %cst_66 : bf16 to vector<128x4xbf16>
    %110 = vector.shape_cast %81 : vector<128x1xi1> to vector<128x1xi1>
    %111 = vector.broadcast %110 : vector<128x1xi1> to vector<128x4xi1>
    %112 = arith.select %111, %108, %109 : vector<128x4xi1>, vector<128x4xbf16>
    %c3 = arith.constant 3 : index
    %c0_67 = arith.constant 0 : index
    %c0_68 = arith.constant 0 : index
    %113 = vector.load %arg8[%c3, %c0_67, %c0_68] : memref<9x4x8xbf16, #tpu.memory_space<vmem>>, vector<1x4x8xbf16>
    %114 = vector.shape_cast %113 : vector<1x4x8xbf16> to vector<4x8xbf16>
    %cst_69 = arith.constant dense<0.000000e+00> : vector<128x8xf32>
    %115 = tpu.matmul %112, %114, %cst_69 {dimension_numbers = #tpu.dot_dimension_numbers<[1], [0], [0], [1], [0, 0, 1, 1], [], []>} : vector<128x4xbf16>, vector<4x8xbf16>, vector<128x8xf32> -> vector<128x8xf32>
    %116 = arith.addf %107, %115 : vector<128x8xf32>
    %c24_70 = arith.constant 24 : index
    %c0_71 = arith.constant 0 : index
    %117 = vector.load %arg12[%c24_70, %c0_71] : memref<176x4xbf16, #tpu.memory_space<vmem>>, vector<128x4xbf16>
    %c4 = arith.constant 4 : index
    %c0_72 = arith.constant 0 : index
    %c0_73 = arith.constant 0 : index
    %118 = vector.load %arg8[%c4, %c0_72, %c0_73] : memref<9x4x8xbf16, #tpu.memory_space<vmem>>, vector<1x4x8xbf16>
    %119 = vector.shape_cast %118 : vector<1x4x8xbf16> to vector<4x8xbf16>
    %cst_74 = arith.constant dense<0.000000e+00> : vector<128x8xf32>
    %120 = tpu.matmul %117, %119, %cst_74 {dimension_numbers = #tpu.dot_dimension_numbers<[1], [0], [0], [1], [0, 0, 1, 1], [], []>} : vector<128x4xbf16>, vector<4x8xbf16>, vector<128x8xf32> -> vector<128x8xf32>
    %121 = arith.addf %116, %120 : vector<128x8xf32>
    %c25 = arith.constant 25 : index
    %c0_75 = arith.constant 0 : index
    %122 = vector.load %arg12[%c25, %c0_75] : memref<176x4xbf16, #tpu.memory_space<vmem>>, vector<128x4xbf16>
    %cst_76 = arith.constant 0.000000e+00 : bf16
    %123 = vector.broadcast %cst_76 : bf16 to vector<128x4xbf16>
    %124 = vector.shape_cast %83 : vector<128x1xi1> to vector<128x1xi1>
    %125 = vector.broadcast %124 : vector<128x1xi1> to vector<128x4xi1>
    %126 = arith.select %125, %122, %123 : vector<128x4xi1>, vector<128x4xbf16>
    %c5 = arith.constant 5 : index
    %c0_77 = arith.constant 0 : index
    %c0_78 = arith.constant 0 : index
    %127 = vector.load %arg8[%c5, %c0_77, %c0_78] : memref<9x4x8xbf16, #tpu.memory_space<vmem>>, vector<1x4x8xbf16>
    %128 = vector.shape_cast %127 : vector<1x4x8xbf16> to vector<4x8xbf16>
    %cst_79 = arith.constant dense<0.000000e+00> : vector<128x8xf32>
    %129 = tpu.matmul %126, %128, %cst_79 {dimension_numbers = #tpu.dot_dimension_numbers<[1], [0], [0], [1], [0, 0, 1, 1], [], []>} : vector<128x4xbf16>, vector<4x8xbf16>, vector<128x8xf32> -> vector<128x8xf32>
    %130 = arith.addf %121, %129 : vector<128x8xf32>
    %c39 = arith.constant 39 : index
    %c0_80 = arith.constant 0 : index
    %131 = vector.load %arg12[%c39, %c0_80] : memref<176x4xbf16, #tpu.memory_space<vmem>>, vector<128x4xbf16>
    %cst_81 = arith.constant 0.000000e+00 : bf16
    %132 = vector.broadcast %cst_81 : bf16 to vector<128x4xbf16>
    %133 = vector.shape_cast %81 : vector<128x1xi1> to vector<128x1xi1>
    %134 = vector.broadcast %133 : vector<128x1xi1> to vector<128x4xi1>
    %135 = arith.select %134, %131, %132 : vector<128x4xi1>, vector<128x4xbf16>
    %c6 = arith.constant 6 : index
    %c0_82 = arith.constant 0 : index
    %c0_83 = arith.constant 0 : index
    %136 = vector.load %arg8[%c6, %c0_82, %c0_83] : memref<9x4x8xbf16, #tpu.memory_space<vmem>>, vector<1x4x8xbf16>
    %137 = vector.shape_cast %136 : vector<1x4x8xbf16> to vector<4x8xbf16>
    %cst_84 = arith.constant dense<0.000000e+00> : vector<128x8xf32>
    %138 = tpu.matmul %135, %137, %cst_84 {dimension_numbers = #tpu.dot_dimension_numbers<[1], [0], [0], [1], [0, 0, 1, 1], [], []>} : vector<128x4xbf16>, vector<4x8xbf16>, vector<128x8xf32> -> vector<128x8xf32>
    %139 = arith.addf %130, %138 : vector<128x8xf32>
    %c40 = arith.constant 40 : index
    %c0_85 = arith.constant 0 : index
    %140 = vector.load %arg12[%c40, %c0_85] : memref<176x4xbf16, #tpu.memory_space<vmem>>, vector<128x4xbf16>
    %c7_86 = arith.constant 7 : index
    %c0_87 = arith.constant 0 : index
    %c0_88 = arith.constant 0 : index
    %141 = vector.load %arg8[%c7_86, %c0_87, %c0_88] : memref<9x4x8xbf16, #tpu.memory_space<vmem>>, vector<1x4x8xbf16>
    %142 = vector.shape_cast %141 : vector<1x4x8xbf16> to vector<4x8xbf16>
    %cst_89 = arith.constant dense<0.000000e+00> : vector<128x8xf32>
    %143 = tpu.matmul %140, %142, %cst_89 {dimension_numbers = #tpu.dot_dimension_numbers<[1], [0], [0], [1], [0, 0, 1, 1], [], []>} : vector<128x4xbf16>, vector<4x8xbf16>, vector<128x8xf32> -> vector<128x8xf32>
    %144 = arith.addf %139, %143 : vector<128x8xf32>
    %c41 = arith.constant 41 : index
    %c0_90 = arith.constant 0 : index
    %145 = vector.load %arg12[%c41, %c0_90] : memref<176x4xbf16, #tpu.memory_space<vmem>>, vector<128x4xbf16>
    %cst_91 = arith.constant 0.000000e+00 : bf16
    %146 = vector.broadcast %cst_91 : bf16 to vector<128x4xbf16>
    %147 = vector.shape_cast %83 : vector<128x1xi1> to vector<128x1xi1>
    %148 = vector.broadcast %147 : vector<128x1xi1> to vector<128x4xi1>
    %149 = arith.select %148, %145, %146 : vector<128x4xi1>, vector<128x4xbf16>
    %c8_92 = arith.constant 8 : index
    %c0_93 = arith.constant 0 : index
    %c0_94 = arith.constant 0 : index
    %150 = vector.load %arg8[%c8_92, %c0_93, %c0_94] : memref<9x4x8xbf16, #tpu.memory_space<vmem>>, vector<1x4x8xbf16>
    %151 = vector.shape_cast %150 : vector<1x4x8xbf16> to vector<4x8xbf16>
    %cst_95 = arith.constant dense<0.000000e+00> : vector<128x8xf32>
    %152 = tpu.matmul %149, %151, %cst_95 {dimension_numbers = #tpu.dot_dimension_numbers<[1], [0], [0], [1], [0, 0, 1, 1], [], []>} : vector<128x4xbf16>, vector<4x8xbf16>, vector<128x8xf32> -> vector<128x8xf32>
    %153 = arith.addf %144, %152 : vector<128x8xf32>
    %c0_96 = arith.constant 0 : index
    %c0_97 = arith.constant 0 : index
    %154 = vector.load %arg9[%c0_96, %c0_97] : memref<1x8xf32, #tpu.memory_space<vmem>>, vector<1x8xf32>
    %155 = vector.broadcast %154 : vector<1x8xf32> to vector<128x8xf32>
    %156 = arith.mulf %153, %155 : vector<128x8xf32>
    %c0_98 = arith.constant 0 : index
    %c0_99 = arith.constant 0 : index
    %157 = vector.load %arg10[%c0_98, %c0_99] : memref<1x8xf32, #tpu.memory_space<vmem>>, vector<1x8xf32>
    %158 = vector.broadcast %157 : vector<1x8xf32> to vector<128x8xf32>
    %159 = arith.addf %156, %158 : vector<128x8xf32>
    %cst_100 = arith.constant 1.000000e-01 : f32
    %160 = vector.broadcast %cst_100 : f32 to vector<128x8xf32>
    %161 = arith.mulf %160, %159 : vector<128x8xf32>
    %162 = arith.maximumf %159, %161 : vector<128x8xf32>
    %c0_101 = arith.constant 0 : index
    %c0_102 = arith.constant 0 : index
    %c0_103 = arith.constant 0 : index
    %c0_104 = arith.constant 0 : index
    %163 = vector.load %arg2[%c0_101, %c0_102, %c0_103, %c0_104] : memref<1x8x16x8xf32, #tpu.memory_space<vmem>>, vector<1x8x16x8xf32>
    %164 = vector.shape_cast %163 : vector<1x8x16x8xf32> to vector<8x16x8xf32>
    %165 = vector.shape_cast %164 : vector<8x16x8xf32> to vector<128x8xf32>
    %166 = arith.addf %162, %165 : vector<128x8xf32>
    %167 = vector.shape_cast %166 : vector<128x8xf32> to vector<1x8x16x8xf32>
    %c0_105 = arith.constant 0 : index
    %c0_106 = arith.constant 0 : index
    %c0_107 = arith.constant 0 : index
    %c0_108 = arith.constant 0 : index
    %168 = vector.load %arg11[%c0_105, %c0_106, %c0_107, %c0_108] : memref<1x8x16x8xf32, #tpu.memory_space<vmem>>, vector<1x8x16x8xf32>
    tpu.vector_store %arg11[%c0_105, %c0_106, %c0_107, %c0_108], %167 {strides = array<i32>} : memref<1x8x16x8xf32, #tpu.memory_space<vmem>>, vector<1x8x16x8xf32>,
    return
  }
  func.func @transform_0(%arg0: i32, %arg1: i32) -> (i32, i32, i32, i32) {
    %c0_i32 = arith.constant 0 : i32
    %c0_i32_0 = arith.constant 0 : i32
    %c0_i32_1 = arith.constant 0 : i32
    return %arg0, %arg1, %c0_i32, %c0_i32_0 : i32, i32, i32, i32
  }
  func.func @transform_1(%arg0: i32, %arg1: i32) -> (i32, i32, i32, i32) {
    %c8_i32 = arith.constant 8 : i32
    %0 = arith.muli %arg1, %c8_i32 : i32
    %c1_i32 = arith.constant 1 : i32
    %1 = arith.subi %0, %c1_i32 : i32
    %c0_i32 = arith.constant 0 : i32
    %2 = arith.maxsi %1, %c0_i32 : i32
    %c0_i32_0 = arith.constant 0 : i32
    %c0_i32_1 = arith.constant 0 : i32
    %c0_i32_2 = arith.constant 0 : i32
    return %arg0, %2, %c0_i32_0, %c0_i32_1 : i32, i32, i32, i32
  }
  func.func @transform_2(%arg0: i32, %arg1: i32) -> (i32, i32, i32, i32) {
    %c8_i32 = arith.constant 8 : i32
    %0 = arith.muli %arg1, %c8_i32 : i32
    %c8_i32_0 = arith.constant 8 : i32
    %1 = arith.addi %0, %c8_i32_0 : i32
    %c15_i32 = arith.constant 15 : i32
    %2 = arith.minsi %1, %c15_i32 : i32
    %c0_i32 = arith.constant 0 : i32
    %c0_i32_1 = arith.constant 0 : i32
    %c0_i32_2 = arith.constant 0 : i32
    return %arg0, %2, %c0_i32, %c0_i32_1 : i32, i32, i32, i32
  }
  func.func @transform_3(%arg0: i32, %arg1: i32) -> (i32, i32) {
    %c0_i32 = arith.constant 0 : i32
    %c0_i32_0 = arith.constant 0 : i32
    %c0_i32_1 = arith.constant 0 : i32
    return %c0_i32, %c0_i32_0 : i32, i32
  }
  func.func @transform_4(%arg0: i32, %arg1: i32) -> (i32, i32) {
    %c0_i32 = arith.constant 0 : i32
    %c0_i32_0 = arith.constant 0 : i32
    %c0_i32_1 = arith.constant 0 : i32
    return %c0_i32, %c0_i32_0 : i32, i32
  }
  func.func @transform_5(%arg0: i32, %arg1: i32) -> (i32, i32) {
    %c0_i32 = arith.constant 0 : i32
    %c0_i32_0 = arith.constant 0 : i32
    %c0_i32_1 = arith.constant 0 : i32
    return %c0_i32, %c0_i32_0 : i32, i32
  }
  func.func @transform_6(%arg0: i32, %arg1: i32) -> (i32, i32, i32) {
    %c0_i32 = arith.constant 0 : i32
    %c0_i32_0 = arith.constant 0 : i32
    %c0_i32_1 = arith.constant 0 : i32
    %c0_i32_2 = arith.constant 0 : i32
    return %c0_i32, %c0_i32_0, %c0_i32_1 : i32, i32, i32
  }
  func.func @transform_7(%arg0: i32, %arg1: i32) -> (i32, i32) {
    %c0_i32 = arith.constant 0 : i32
    %c0_i32_0 = arith.constant 0 : i32
    %c0_i32_1 = arith.constant 0 : i32
    return %c0_i32, %c0_i32_0 : i32, i32
  }
  func.func @transform_8(%arg0: i32, %arg1: i32) -> (i32, i32) {
    %c0_i32 = arith.constant 0 : i32
    %c0_i32_0 = arith.constant 0 : i32
    %c0_i32_1 = arith.constant 0 : i32
    return %c0_i32, %c0_i32_0 : i32, i32
  }
  func.func @transform_9(%arg0: i32, %arg1: i32) -> (i32, i32, i32, i32) {
    %c0_i32 = arith.constant 0 : i32
    %c0_i32_0 = arith.constant 0 : i32
    %c0_i32_1 = arith.constant 0 : i32
    return %arg0, %arg1, %c0_i32, %c0_i32_0 : i32, i32, i32, i32
  }
}

</mosaic_0001>

<bundles_post_ra>
// kernel: tpu_custom_call.1
= control target key start
LH: loop header
LB: loop body
LE: loop exit
PB: predicated region body
PF: predicated region fallthrough
CT: control target
= control target key end

     0   :  { %s4201_s30 = smov 0   ;;  %s4203_s10 = smov 0   ;;  %s5848_s0 = inlined_call_operand.vmem [shape: f32[2,16,16,8], index: 0, kind: input, shape index: {}]   ;;  %s5849_s1 = inlined_call_operand.vmem [shape: f32[2,16,16,8], index: 1, kind: input, shape index: {}]   ;;  %s5850_s2 = inlined_call_operand.vmem [shape: f32[2,16,16,8], index: 2, kind: input, shape index: {}]   ;;  %s5851_s3 = inlined_call_operand.vmem [shape: bf16[8,4], index: 3, kind: input, shape index: {}]   ;;  %s5852_s4 = inlined_call_operand.vmem [shape: f32[1,4], index: 4, kind: input, shape index: {}]   ;;  %s5853_s5 = inlined_call_operand.vmem [shape: f32[1,4], index: 5, kind: input, shape index: {}]   ;;  %s5854_s6 = inlined_call_operand.vmem [shape: bf16[9,4,8], index: 6, kind: input, shape index: {}]   ;;  %s5855_s7 = inlined_call_operand.vmem [shape: f32[1,8], index: 7, kind: input, shape index: {}]   ;;  %s5856_s8 = inlined_call_operand.vmem [shape: f32[1,8], index: 8, kind: input, shape index: {}]   ;;  %s5857_s9 = inlined_call_operand.vmem [shape: f32[2,16,16,8], index: 9, kind: output, shape index: {}]  }
   0x1   :  { %s4205_s11 = smov 0   ;;  %s4207_s12 = smov 0  }
   0x2   :  { %s4209_s13 = smov 0  }
   0x3 LB: > { %s28_s14 = sadd.s32 1, %s4139_s11  ;;  %s31_s15 = sadd.s32 1, %s4143_s12  ;;  %s4147_s13 = sphi %s4209_s13, %s19_s13   ;;  %s4143_s12 = sphi %s4207_s12, %s6206_s12   ;;  %s4139_s11 = sphi %s4205_s11, %s6205_s11   ;;  %s4135_s10 = sphi %s4203_s10, %s6204_s10   ;;  %s4131_s30 = sphi %s4201_s30, %s6203_s30  }
   0x4   : > { %p29_p0 = scmp.ge.s32.totalorder %s28_s14, 2  ;;  %p3819_p1 = scmp.ge.s32.totalorder %s4147_s13, 1 }
   0x5   : > { %p373_p2 = scmp.lt.s32.totalorder %s4147_s13, 5 }
   0x6   : > { %s6208_s14 = smov (%p29_p0, %s28_s14), 0  ;;  %s6210_s15 = smov (!%p29_p0, %s31_s15), %s4143_s12 }
   0x7   : > { %p374_p3 = pnand %p3819_p1, %p373_p2  ;;  %p33_p4 = scmp.ge.s32.totalorder %s6210_s15, 2 }
   0x8   : > { %s4237_s18 = sshll.u32 (!%p374_p3), %s4131_s30, 3  ;;  %p446_p5 = scmp.lt.s32.totalorder (!%p374_p3), %s4135_s10, 1 }
   0x9   : > { %s6212_s15 = smov (%p33_p4, %s6210_s15), 0  ;;  %377 = sbr.rel (%p374_p3) target bundleno = 716 (0x2cc), region = 56 }
   0xa   : > { %p448_p6 = scmp.lt.s32.totalorder (!%p374_p3), %s4237_s18, 15  ;;  %s3825_s19 = sadd.s32 (!%p374_p3), 4294967295, %s4237_s18 }
   0xb   : > { %p458_p7 = scmp.gt.s32.totalorder (!%p374_p3), %s3825_s19, 0  ;;  %p3826_p8 = scmp.lt.s32.totalorder (!%p374_p3), %s3825_s19, 15 }
   0xc   : > { %p549_p10 = scmp.gt.s32.totalorder (!%p374_p3), %s4131_s30, 0  ;;  %p583_p11 = scmp.lt.s32.totalorder (!%p374_p3), %s4131_s30, 1 }
   0xe   : > { %v510_v0 = vld [vmem:[%s5851_s3] sm:$0xf]  ;;  %vm515_vm0 = vcmask 1043456   ;;  %s6214_s10 = smov (!%p446_p5, %s4135_s10), 1  ;;  %s6216_s19 = smov (!%p458_p7, %s3825_s19), 0  ;;  %vm5858_vm1 = vcmask 64512   ;;  %v790_v32 = vlaneseq }
   0xf   : > { %v517_v1 = vsel %vm515_vm0, %v510_v0, 0  ;;  %s449_s20 = scalar_select %p448_p6, %s4237_s18, 15  ;;  %vm5860_vm2 = vcmask 27648   ;;  %v5864_v35 = vmov 0   ;;  %vm4150_vm5 = vmmov 1  }
  0x10   : > { %526 = vmatpush.bf16.msra.mxu0 %v517_v1  ;;  %4059 = vmatpush.bf16.msra.mxu2 %v517_v1  ;;  %s4242_s21 = sshll.u32 %s6214_s10, 5  ;;  %s6218_s19 = smov (!%p3826_p8, %s6216_s19), 15  ;;  %v4290_v33 = vshrl.u32 %v790_v32, 7  ;;  %505 = vst.msk [vmem:[#allocation2] sm:$0xf] %vm5860_vm2, %v5864_v35  ;;  %vm1081_vm6 = vmpackc.low %vm4150_vm5, %vm4150_vm5  ;;  %vm5859_vm11 = vcmask 1041408  }
  0x11   : > { %568 = vmatpush.bf16.msra.mxu1 %v517_v1  ;;  %s3821_s22 = sshll.u32 %s449_s20, 1  ;;  %s3831_s28 = sshll.u32 %s6218_s19, 1  ;;  %506 = vst.msk [vmem:[#allocation2 + $0x54] sm:$0xf] %vm5860_vm2, %v5864_v35  ;;  %v1097_v43 = vsel %vm1081_vm6, 65537, %v5864_v35 }
  0x12   : > { %s4245_s23 = sadd.s32 %s4242_s21, %s3821_s22  ;;  %s466_s29 = sadd.s32 %s3831_s28, %s4242_s21  ;;  %v811_v34 = vand.u32 15, %v4290_v33  ;;  %v793_v36 = vadd.s32 16, %v4290_v33  ;;  %v792_v38 = vadd.s32 8, %v4290_v33  ;;  %v1125_v47 = vshll.u32 %v1097_v43, 16  ;;  %v3855_v51 = vld [vmem:[%s5854_s6 + $0x2] sm:$0x3] }
  0x13   : > { %s3823_s24 = sshll.u32 %s4245_s23, 3  ;;  %s3833_s10 = sshll.u32 %s466_s29, 3  ;;  %v1129_v48 = vshrl.u32 %v1097_v43, 16  ;;  %vm1112_vm12 = vsmask.f32 3328  ;;  %v1480_v53 = vsel %vm5859_vm11, %v3855_v51, 0 }
  0x14   : > { %644 = vmatpush.bf16.msrb.mxu0 %v517_v1  ;;  %s4253_s27 = scalar_lea.vmem %s5848_s0, %s3823_s24  ;;  %s468_s20 = scalar_lea.vmem %s5849_s1, %s3833_s10  ;;  %vm999_vm3 = vcmp.ne.s32.totalorder %v811_v34, 0  ;;  %v825_v39 = vand.u32 15, %v793_v36  ;;  %v818_v42 = vand.u32 15, %v792_v38  ;;  %vm1113_vm13 = vsmask.f32 7440  ;;  %4060 = vmatpush.bf16.msra.mxu3 %v1480_v53 }
  0x15   : > { %v595_v2 = vld [vmem:[%s4253_s27 + $0x30] sm:$0xff]  ;;  %v596_v3 = vld [vmem:[%s4253_s27 + $0x38] sm:$0xff]  ;;  %v507_v5 = vld [vmem:[%s468_s20] sm:$0xff]  ;;  %s474_s22 = sadd.s32 8, %s4237_s18  ;;  %v1131_v50 = vrot.slane %v1129_v48, 4  ;;  %v4314_v54 = vrot.slane %v1125_v47, 5  ;;  %1489 = vmatpush.bf16.msrb.mxu1 %v1480_v53  ;;  %s5741_s28 = scalar_lea.vmem %s5857_s9, %s3823_s24 }
  0x16   : > { %v608_v4 = vpack.c.bf16 %v596_v3, %v595_v2  ;;  %v508_v6 = vld [vmem:[%s468_s20 + $0x8] sm:$0xff]  ;;  %p475_p9 = scmp.lt.s32.totalorder %s474_s22, 15  ;;  %v597_v8 = vld [vmem:[%s4253_s27 + $0x40] sm:$0xff]  ;;  %v599_v14 = vld [vmem:[%s4253_s27 + $0x50] sm:$0xff]  ;;  %vm1001_vm7 = vcmp.ne.s32.totalorder %v825_v39, 0  ;;  %vm4301_vm8 = vcmp.ne.s32.totalorder %v818_v42, 15  ;;  %v4333_v2 = vunpack.c.l.b16 %v5864_v35 }
  0x17   : > { %v509_v7 = vpack.c.bf16 %v508_v6, %v507_v5  ;;  %v598_v9 = vld [vmem:[%s4253_s27 + $0x48] sm:$0xff]  ;;  %v589_v11 = vld [vmem:[%s4253_s27] sm:$0xff]  ;;  %v600_v15 = vld [vmem:[%s4253_s27 + $0x58] sm:$0xff]  ;;  %s4316_s16 = scalar_select %p549_p10, 1, 0  ;;  %v795_v56 = vadd.s32 32, %v4290_v33  ;;  %v1132_v60 = vor.u32 %v1131_v50, %v4314_v54 }
  0x18   : > { %3850 = vmatmul.msk.bf16.vlgmr.msra.gmra.mxu2 %vm5858_vm1, %v608_v4  ;;  %v609_v10 = vpack.c.bf16 %v598_v9, %v597_v8  ;;  %s6220_s22 = smov (!%p475_p9, %s474_s22), 15  ;;  %v590_v12 = vld [vmem:[%s4253_s27 + $0x8] sm:$0xff]  ;;  %v610_v16 = vpack.c.bf16 %v600_v15, %v599_v14  ;;  %v591_v17 = vld [vmem:[%s4253_s27 + $0x10] sm:$0xff]  ;;  %v592_v18 = vld [vmem:[%s4253_s27 + $0x18] sm:$0xff]  ;;  %v794_v57 = vadd.s32 24, %v4290_v33  ;;  %v1818_v62 = vrot.slane %v1129_v48, 7 }
  0x19   : > { %3845 = vmatmul.msk.bf16.vlgmr.msra.gmra.mxu0 %vm5858_vm1, %v509_v7  ;;  %s6222_s22 = smov (!%p475_p9, %s6220_s22), 15  ;;  %v605_v13 = vpack.c.bf16 %v590_v12, %v589_v11  ;;  %v606_v22 = vpack.c.bf16 %v592_v18, %v591_v17  ;;  %v601_v23 = vld [vmem:[%s4253_s27 + $0x60] sm:$0xff]  ;;  %v602_v24 = vld [vmem:[%s4253_s27 + $0x68] sm:$0xff]  ;;  %v603_v29 = vld [vmem:[%s4253_s27 + $0x70] sm:$0xff]  ;;  %v839_v3 = vand.u32 15, %v795_v56  ;;  %v4336_v7 = vunpack.c.h.b16 %v5864_v35 }
  0x1a   : > { %s3838_s19 = sshll.u32 %s6222_s22, 1  ;;  %v611_v25 = vpack.c.bf16 %v602_v24, %v601_v23  ;;  %v593_v26 = vld [vmem:[%s4253_s27 + $0x20] sm:$0xff]  ;;  %v594_v27 = vld [vmem:[%s4253_s27 + $0x28] sm:$0xff]  ;;  %v604_v30 = vld [vmem:[%s4253_s27 + $0x78] sm:$0xff]  ;;  %v832_v4 = vand.u32 15, %v794_v57  ;;  %v4353_v14 = vrot.slane %v1132_v60, 4 }
  0x1b   : > { %s483_s18 = sadd.s32 %s3838_s19, %s4242_s21  ;;  %v607_v28 = vpack.c.bf16 %v594_v27, %v593_v26  ;;  %v612_v31 = vpack.c.bf16 %v604_v30, %v603_v29  ;;  %vm1080_vm4 = vmpackc.low %vm999_vm3, %vm999_vm3  ;;  %v4325_v63 = vld [vmem:[%s5852_s4] ss:$0 sm:$0xff]  ;;  %vm4344_vm15 = vcmp.ne.s32.totalorder %v839_v3, 0  ;;  %v1031_v32 = vld [vmem:[#allocation2] sm:$0x8]  ;;  %v5903_v34 = vmov 0 }
  0x1c   : > { %s3840_s25 = sshll.u32 %s483_s18, 3  ;;  %v1096_v37 = vsel %vm1080_vm4, 65537, %v5864_v35  ;;  %vm1082_vm9 = vmpackc.low %vm1001_vm7, %vm1001_vm7  ;;  %v4341_v9 = vld [vmem:[%s5853_s5] ss:$0 sm:$0xff]  ;;  %s551_s18 = scvt.s32.f32 %s4316_s16  ;;  %vm4355_vm0 = vcmp.ne.s32.totalorder %v832_v4, 15  ;;  %v4405_v39 = vrot.slane %v1818_v62, 4 }
  0x1d   : > { %s485_s29 = scalar_lea.vmem %s5850_s2, %s3840_s25  ;;  %v1116_v40 = vshll.u32 %v1096_v37, 16  ;;  %v1119_v41 = vshrl.u32 %v1096_v37, 16  ;;  %vm1781_vm10 = vmpackc.low %vm4301_vm8, %vm4301_vm8  ;;  %v1098_v52 = vsel %vm1082_vm9, 65537, %v5864_v35  ;;  %vm1812_vm7 = vsmask.f32 256 }
  0x1e   : > { %v555_v19 = vld [vmem:[%s485_s29] sm:$0xff]  ;;  %v556_v20 = vld [vmem:[%s485_s29 + $0x8] sm:$0xff]  ;;  %v1139_v55 = vshrl.u32 %v1098_v52, 16  ;;  %v1797_v58 = vsel %vm1781_vm10, 65537, %v5864_v35  ;;  %v1135_v61 = vshll.u32 %v1098_v52, 16  ;;  %vm4328_vm14 = vmor %vm1112_vm12, %vm1113_vm13 }
  0x1f   : > { %v557_v21 = vpack.c.bf16 %v556_v20, %v555_v19  ;;  %v1118_v44 = vrot.slane %v1116_v40, 5  ;;  %v1121_v45 = vrot.slane %v1119_v41, 4  ;;  %v1824_v8 = vshrl.u32 %v1797_v58, 16  ;;  %vm1084_vm5 = vmpackc.low %vm4344_vm15, %vm4344_vm15  ;;  %s4860_s20 = scalar_select %p583_p11, 1, 0 }
  0x20   : > { %v1141_v5 = vrot.slane %v1139_v55, 4  ;;  %v1137_v15 = vrot.slane %v1135_v61, 5  ;;  %v4365_v19 = vor.u32 %v1818_v62, %v1125_v47  ;;  %v1827_v23 = vshll.u32 %v1797_v58, 16  ;;  %vm1783_vm6 = vmpackc.low %vm4355_vm0, %vm4355_vm0  ;;  %v4022_v0 = vld [vmem:[%s5854_s6 + $0x10] sm:$0x3] }
  0x21   : > { %3846 = vmatmul.msk.bf16.vlgmr.msra.gmra.mxu1 %vm5858_vm1, %v557_v21  ;;  %v1122_v49 = vor.u32 %v1121_v45, %v1118_v44  ;;  %v1274_v1 = vunpack.c.l.b16 %v1118_v44  ;;  %v1275_v6 = vunpack.c.h.b16 %v1118_v44  ;;  %vm1813_vm8 = vsmask.f32 4368  ;;  %s585_s30 = scvt.s32.f32 %s4860_s20 }
  0x22   : > { %v1142_v20 = vor.u32 %v1141_v5, %v1137_v15  ;;  %v1100_v36 = vsel %vm1084_vm5, 65537, %v5864_v35  ;;  %v1799_v37 = vsel %vm1783_vm6, 65537, %v5864_v35  ;;  %v1958_v41 = vunpack.c.l.b16 %v4365_v19  ;;  %vm4416_vm12 = vmor %vm1812_vm7, %vm1813_vm8 }
  0x23   : > { %v1123_v59 = vrot.slane %v1122_v49, 4  ;;  %vm4361_vm3 = vcmp.ne.s32.totalorder %v1274_v1, %v4333_v2  ;;  %vm4368_vm4 = vcmp.ne.s32.totalorder %v1275_v6, %v4336_v7  ;;  %v1159_v46 = vshrl.u32 %v1100_v36, 16 }
  0x24   : > { %vm4394_vm9 = vmpackc.low %vm4368_vm4, %vm4361_vm3  ;;  %v1143_v38 = vrot.slane %v1142_v20, 4  ;;  %v1959_v48 = vunpack.c.h.b16 %v4365_v19  ;;  %v1155_v52 = vshll.u32 %v1100_v36, 16  ;;  %v1842_v53 = vshrl.u32 %v1799_v37, 16 }
  0x25   : > { %v5904_v34 = vsel %vm4394_vm9, 4294967295, %v5903_v34  ;;  %v1393_v51 = vsel %vm4394_vm9, %v1031_v32, 0  ;;  %v1161_v61 = vrot.slane %v1159_v46, 4  ;;  %v797_v20 = vadd.s32 48, %v4290_v33 }
  0x26   : > { %v1148_v60 = vsel %vm4328_vm14, %v1143_v38, %v4314_v54  ;;  %v4440_v11 = vrot.slane %v1842_v53, 7  ;;  %vm4452_vm15 = vcmp.ne.s32.totalorder %v1958_v41, %v4333_v2  ;;  %vm4458_vm0 = vcmp.ne.s32.totalorder %v1959_v48, %v4336_v7 }
  0x27   : > { %v1296_v32 = vunpack.c.h.b16 %v1148_v60  ;;  %v853_v36 = vand.u32 15, %v797_v20 }
  0x28   : > { %3851 = vmatmul.msk.bf16.gmra.mxu2 %vm5858_vm1, %v609_v10 }
  0x29   : > { %3847 = vmatmul.msk.bf16.vlgmr.msrb.gmra.mxu0 %vm5858_vm1, %v605_v13  ;;  %v4351_v13 = vsel %vm4328_vm14, %v1123_v59, %v4314_v54  ;;  %v1410_v59 = vld [vmem:[%s5854_s6] sm:$0x3]  ;;  %vm1005_vm6 = vcmp.ne.s32.totalorder %v853_v36, 0  ;;  %v3913_v36 = vld [vmem:[%s5854_s6 + $0x6] sm:$0x3] }
  0x2a   : > { %v1281_v27 = vunpack.c.l.b16 %v4351_v13  ;;  %v1282_v29 = vunpack.c.h.b16 %v4351_v13 }
  0x2c   : > { %vm4410_vm10 = vcmp.ne.s32.totalorder %v1281_v27, %v4333_v2  ;;  %vm4445_vm13 = vcmp.ne.s32.totalorder %v1282_v29, %v4336_v7  ;;  %v1295_v27 = vunpack.c.l.b16 %v1148_v60 }
  0x2d   : > { %vm4483_vm5 = vmpackc.low %vm4445_vm13, %vm4410_vm10 }
  0x2e   : > { %vm1086_vm10 = vmpackc.low %vm1005_vm6, %vm1005_vm6  ;;  %vm4508_vm13 = vcmp.ne.s32.totalorder %v1295_v27, %v4333_v2  ;;  %vm4513_vm6 = vcmp.ne.s32.totalorder %v1296_v32, %v4336_v7 }
  0x2f   : > { %v1102_v53 = vsel %vm1086_vm10, 65537, %v5864_v35 }
  0x38   : > { %3852 = vmatmul.msk.bf16.gmra.mxu2 %vm5858_vm1, %v610_v16 }
  0x39   : > { %3848 = vmatmul.msk.bf16.gmra.mxu0 %vm5858_vm1, %v606_v22  ;;  %v4375_v22 = vrot.slane %v1824_v8, 7  ;;  %v1680_v8 = vsel %vm5859_vm11, %v1410_v59, 0 }
  0x3a   : > { %1689 = vmatpush.bf16.msra.mxu0 %v1680_v8 }
  0x3b   : > { %v1829_v40 = vor.u32 %v1827_v23, %v4375_v22  ;;  %v1831_v1 = vrot.slane %v4375_v22, 4 }
  0x3d   : > { %v4434_v62 = vsel %vm4416_vm12, %v4405_v39, %v1829_v40 }
  0x3e   : > { %v1965_v22 = vunpack.c.l.b16 %v4434_v62 }
  0x40   : > { %vm4493_vm7 = vcmp.ne.s32.totalorder %v1965_v22, %v4333_v2 }
  0x48   : > { %3853 = vmatmul.msk.bf16.gmra.mxu2 %vm5858_vm1, %v611_v25  ;;  %v4378_v25 = vstv %s551_s18 }
  0x49   : > { %3849 = vmatmul.msk.bf16.gmra.mxu0 %vm5858_vm1, %v607_v28  ;;  %v1138_v28 = vsel %vm4328_vm14, %v4353_v14, %v1137_v15 }
  0x4a   : > { %v1288_v50 = vunpack.c.l.b16 %v1138_v28  ;;  %v1289_v58 = vunpack.c.h.b16 %v1138_v28 }
  0x4c   : > { %vm4463_vm3 = vcmp.ne.s32.totalorder %v1288_v50, %v4333_v2  ;;  %vm4468_vm4 = vcmp.ne.s32.totalorder %v1289_v58, %v4336_v7 }
  0x58   : > { %3854 = vmatmul.msk.bf16.gmra.mxu2 %vm5858_vm1, %v612_v31  ;;  %vm4536_vm1 = vmpackc.low %vm4458_vm0, %vm4452_vm15 }
  0x59   : > { %vm4573_vm0 = vmpackc.low %vm4468_vm4, %vm4463_vm3  ;;  %vm5939_vm4 = vcmask 31744  }
  0x96   : > { %v528_v12 = vpop.f32.mrf.mxu0 }
  0x97   : > { %v537_v17 = vmul.f32 %v4325_v63, %v528_v12  ;;  %v1845_v12 = vshll.u32 %v1799_v37, 16  ;;  %v1839_v37 = vsel %vm4416_vm12, %v1831_v1, %v4365_v19  ;;  %v1175_v1 = vshll.u32 %v1102_v53, 16 }
  0x99   : > { %v543_v24 = vadd.f32 %v4341_v9, %v537_v17  ;;  %v1548_v17 = vunpack.c.l.b16 %v1393_v51  ;;  %v1847_v38 = vor.u32 %v1845_v12, %v4440_v11 }
  0x9b   : > { %v661_v10 = vpop.f32.mrf.mxu2  ;;  %v545_v30 = vmul.f32 0.1, %v543_v24 }
  0x9c   : > { %v692_v26 = vmul.f32 %v4325_v63, %v661_v10  ;;  %v1157_v10 = vrot.slane %v1155_v52, 5 }
  0x9d   : > { %v547_v42 = vmax.f32 %v543_v24, %v545_v30 }
  0x9e   : > { %v708_v31 = vadd.f32 %v4341_v9, %v692_v26  ;;  %v530_v49 = vpop.f32.mrf.mxu0  ;;  %v1162_v18 = vor.u32 %v1161_v61, %v1157_v10  ;;  %v4490_v46 = vsel %vm4328_vm14, %v4353_v14, %v1157_v10 }
  0x9f   : > { %v553_v55 = vmul.f32 %v4378_v25, %v547_v42  ;;  %v538_v56 = vmul.f32 %v4325_v63, %v530_v49 }
  0xa0   : > { %v724_v43 = vmul.f32 0.1, %v708_v31  ;;  %v1163_v48 = vrot.slane %v1162_v18, 4 }
  0xa1   : > { %v750_v3 = vpack.c.bf16 %v553_v55, %v553_v55  ;;  %v544_v4 = vadd.f32 %v4341_v9, %v538_v56  ;;  %v4503_v55 = vsel %vm4416_vm12, %v4405_v39, %v1847_v38  ;;  %v1972_v56 = vunpack.c.l.b16 %v1839_v37 }
  0xa2   : > { %v740_v57 = vmax.f32 %v708_v31, %v724_v43  ;;  %v1966_v43 = vunpack.c.h.b16 %v4434_v62 }
  0xa3   : > { %v663_v44 = vpop.f32.mrf.mxu2  ;;  %752 = vst.msk [vmem:[#allocation2 + $0x4] sm:$0xf] %vm5860_vm2, %v750_v3  ;;  %v546_v13 = vmul.f32 0.1, %v544_v4  ;;  %vm4544_vm8 = vcmp.ne.s32.totalorder %v1972_v56, %v4333_v2 }
  0xa4   : > { %v760_v5 = vpack.c.bf16 %v740_v57, %v740_v57  ;;  %v693_v6 = vmul.f32 %v4325_v63, %v663_v44  ;;  %v5919_v44 = vmov 0  ;;  %v1973_v57 = vunpack.c.h.b16 %v1839_v37 }
  0xa5   : > { %v548_v23 = vmax.f32 %v544_v4, %v546_v13  ;;  %v5920_v44 = vsel %vm4483_vm5, 4294967295, %v5919_v44  ;;  %v1302_v4 = vunpack.c.l.b16 %v4490_v46  ;;  %vm4523_vm10 = vcmp.ne.s32.totalorder %v1966_v43, %v4336_v7 }
  0xa6   : > { %v709_v15 = vadd.f32 %v4341_v9, %v693_v6  ;;  %776 = vst.msk [vmem:[#allocation2 + $0x24] sm:$0xf] %vm5860_vm2, %v760_v5  ;;  %v646_v29 = vpop.f32.mrf.mxu0  ;;  %v1303_v5 = vunpack.c.h.b16 %v4490_v46  ;;  %v4530_v13 = vsel %vm4328_vm14, %v1163_v48, %v4314_v54  ;;  %vm4549_vm15 = vcmp.ne.s32.totalorder %v1973_v57, %v4336_v7  ;;  %vm4584_vm3 = vmpackc.low %vm4523_vm10, %vm4493_vm7 }
  0xa7   : > { %v554_v40 = vmul.f32 %v4378_v25, %v548_v23  ;;  %v686_v41 = vmul.f32 %v4325_v63, %v646_v29  ;;  %v1179_v23 = vshrl.u32 %v1102_v53, 16  ;;  %v1309_v37 = vunpack.c.l.b16 %v4530_v13  ;;  %vm4614_vm10 = vmpackc.low %vm4513_vm6, %vm4508_vm13 }
  0xa8   : > { %v725_v24 = vmul.f32 0.1, %v709_v15  ;;  %v5935_v46 = vmov 0  ;;  %v1310_v53 = vunpack.c.h.b16 %v4530_v13  ;;  %vm4601_vm7 = vcmp.ne.s32.totalorder %v1303_v5, %v4336_v7 }
  0xa9   : > { %v751_v49 = vpack.c.bf16 %v554_v40, %v554_v40  ;;  %v702_v45 = vadd.f32 %v4341_v9, %v686_v41  ;;  %v1181_v40 = vrot.slane %v1179_v23, 4  ;;  %v5936_v46 = vsel %vm4573_vm0, 4294967295, %v5935_v46 }
  0xaa   : > { %v741_v42 = vmax.f32 %v709_v15, %v725_v24  ;;  %v1032_v52 = vld [vmem:[#allocation2 + $0x4] sm:$0xf]  ;;  %v1177_v15 = vrot.slane %v1175_v1, 5  ;;  %v1979_v24 = vunpack.c.l.b16 %v4503_v55  ;;  %v5944_v5 = vmov 0 }
  0xab   : > { %v666_v26 = vpop.f32.mrf.mxu2  ;;  %753 = vst.msk [vmem:[#allocation2 + $0x8] sm:$0xf] %vm5860_vm2, %v751_v49  ;;  %v718_v58 = vmul.f32 0.1, %v702_v45  ;;  %v1394_v62 = vsel %vm4483_vm5, %v1032_v52, 0  ;;  %v2484_v49 = vsel %vm5859_vm11, %v3913_v36, 0  ;;  %vm4596_vm11 = vcmp.ne.s32.totalorder %v1302_v4, %v4333_v2 }
  0xac   : > { %v761_v50 = vpack.c.bf16 %v741_v42, %v741_v42  ;;  %v694_v51 = vmul.f32 %v4325_v63, %v666_v26  ;;  %v1549_v3 = vunpack.c.l.b16 %v1394_v62  ;;  %v1731_v16 = vld [vmem:[#allocation2 + $0x4] sm:$0xf]  ;;  %v1980_v26 = vunpack.c.h.b16 %v4503_v55  ;;  %2493 = vmatpush.bf16.msrb.mxu2 %v2484_v49 }
  0xad   : > { %v734_v8 = vmax.f32 %v702_v45, %v718_v58  ;;  %v4563_v38 = vsel %vm4328_vm14, %v4353_v14, %v1177_v15  ;;  %v2077_v41 = vsel %vm4536_vm1, %v1731_v16, 0  ;;  %v1182_v55 = vor.u32 %v1181_v40, %v1177_v15 }
  0xae   : > { %v710_v59 = vadd.f32 %v4341_v9, %v694_v51  ;;  %777 = vst.msk [vmem:[#allocation2 + $0x28] sm:$0xf] %vm5860_vm2, %v761_v50  ;;  %v648_v20 = vpop.f32.mrf.mxu0  ;;  %v1565_v22 = vpack.c.b16 %v1549_v3, %v1548_v17  ;;  %v4554_v17 = vadd.s32 40, %v4290_v33  ;;  %v1849_v58 = vrot.slane %v4440_v11, 4 }
  0xaf   : > { %v754_v27 = vpack.c.bf16 %v734_v8, %v734_v8  ;;  %v687_v29 = vmul.f32 %v4325_v63, %v648_v20  ;;  %v1183_v3 = vrot.slane %v1182_v55, 4  ;;  %v1316_v6 = vunpack.c.l.b16 %v4563_v38  ;;  %v3904_v55 = vld [vmem:[%s5854_s6 + $0x4] sm:$0x3] }
  0xb0   : > { %v726_v10 = vmul.f32 0.1, %v710_v59  ;;  %v1576_v51 = vshrl.u32 %v1565_v22, 16  ;;  %v1579_v52 = vshll.u32 %v1565_v22, 16  ;;  %v846_v57 = vand.u32 15, %v4554_v17 }
  0xb1   : > { %770 = vst.msk [vmem:[#allocation2 + $0xc] sm:$0xf] %vm5860_vm2, %v754_v27  ;;  %v703_v42 = vadd.f32 %v4341_v9, %v687_v29  ;;  %v2113_v8 = vunpack.c.l.b16 %v2077_v41  ;;  %v5945_v5 = vsel %vm4614_vm10, 4294967295, %v5944_v5  ;;  %vm5950_vm13 = vcmask 27648   ;;  %v3922_v29 = vld [vmem:[%s5854_s6 + $0x8] sm:$0x3] }
  0xb2   : > { %v742_v32 = vmax.f32 %v710_v59, %v726_v10  ;;  %v4035_v45 = vld [vmem:[#allocation2 + $0x4] sm:$0xff]  ;;  %v4618_v22 = vrot.slane %v1576_v51, 3  ;;  %v4620_v23 = vrot.slane %v1579_v52, 4  ;;  %vm5954_vm6 = vcmask 27648  }
  0xb3   : > { %v668_v12 = vpop.f32.mrf.mxu2  ;;  %v1033_v50 = vld [vmem:[#allocation2 + $0x8] sm:$0xf]  ;;  %v719_v31 = vmul.f32 0.1, %v703_v42  ;;  %3888 = vmatmul.msk.bf16.vlgmr.msrb.gmra.mxu1 %vm5939_vm4, %v4035_v45  ;;  %vm4624_vm4 = vcmp.ne.s32.totalorder %v1979_v24, %v4333_v2  ;;  %v4638_v24 = vsel %vm4328_vm14, %v1183_v3, %v4314_v54  ;;  %v1317_v28 = vunpack.c.h.b16 %v4563_v38 }
  0xb4   : > { %v762_v43 = vpack.c.bf16 %v742_v32, %v742_v32  ;;  %v695_v48 = vmul.f32 %v4325_v63, %v668_v12  ;;  %v1395_v25 = vsel %vm4573_vm0, %v1033_v50, 0  ;;  %v2300_v1 = vld [vmem:[#allocation2 + $0x8] sm:$0x8]  ;;  %v4680_v13 = vsel %vm4416_vm12, %v1849_v58, %v4365_v19 }
  0xb5   : > { %v1732_v11 = vld [vmem:[#allocation2 + $0x8] sm:$0xf]  ;;  %v735_v10 = vmax.f32 %v703_v42, %v719_v31  ;;  %v2317_v4 = vsel %vm4394_vm9, %v2300_v1, 0  ;;  %v1550_v40 = vunpack.c.l.b16 %v1395_v25  ;;  %vm5951_vm9 = vcmask 1041408  }
  0xb6   : > { %778 = vst.msk [vmem:[#allocation2 + $0x2c] sm:$0xf] %vm5860_vm2, %v762_v43  ;;  %v711_v56 = vadd.f32 %v4341_v9, %v695_v48  ;;  %v2078_v16 = vsel %vm4584_vm3, %v1732_v11, 0  ;;  %v651_v20 = vpop.f32.mrf.mxu0  ;;  %vm4629_vm2 = vcmp.ne.s32.totalorder %v1980_v26, %v4336_v7  ;;  %v2353_v49 = vunpack.c.l.b16 %v2317_v4 }
  0xb7   : > { %v2114_v61 = vunpack.c.l.b16 %v2078_v16  ;;  %v755_v32 = vpack.c.bf16 %v735_v10, %v735_v10  ;;  %v688_v36 = vmul.f32 %v4325_v63, %v651_v20  ;;  %v2233_v1 = vsel %vm5951_vm9, %v3904_v55, 0 }
  0xb8   : > { %v727_v12 = vmul.f32 0.1, %v711_v56  ;;  %v1034_v42 = vld [vmem:[#allocation2 + $0xc] sm:$0xf]  ;;  %v5952_v11 = vmov 0  ;;  %v1582_v10 = vor.u32 %v4620_v23, %v4618_v22  ;;  %vm4671_vm9 = vcmp.ne.s32.totalorder %v1310_v53, %v4336_v7  ;;  %2242 = vmatpush.bf16.msra.mxu1 %v2233_v1 }
  0xb9   : > { %v2301_v48 = vld [vmem:[#allocation2 + $0xc] sm:$0xf]  ;;  %v4640_v26 = vpack.c.b16 %v2114_v61, %v2113_v8  ;;  %771 = vst.msk [vmem:[#allocation2 + $0x10] sm:$0xf] %vm5950_vm13, %v755_v32  ;;  %v704_v45 = vadd.f32 %v4341_v9, %v688_v36  ;;  %v1396_v50 = vsel %vm4614_vm10, %v1034_v42, 0  ;;  %vm4656_vm13 = vmpackc.low %vm4549_vm15, %vm4544_vm8  ;;  %v5959_v58 = vmov 0 }
  0xba   : > { %v743_v41 = vmax.f32 %v711_v56, %v727_v12  ;;  %v2318_v52 = vsel %vm4483_vm5, %v2301_v48, 0  ;;  %v1551_v31 = vunpack.c.l.b16 %v1396_v50  ;;  %v1733_v3 = vld [vmem:[#allocation2 + $0xc] sm:$0xf]  ;;  %v5953_v11 = vsel %vm4656_vm13, 4294967295, %v5952_v11  ;;  %vm4691_vm8 = vmpackc.low %vm4601_vm7, %vm4596_vm11 }
  0xbb   : > { %v671_v15 = vpop.f32.mrf.mxu2  ;;  %v2354_v25 = vunpack.c.l.b16 %v2318_v52  ;;  %v720_v8 = vmul.f32 0.1, %v704_v45  ;;  %vm4666_vm5 = vcmp.ne.s32.totalorder %v1309_v37, %v4333_v2  ;;  %v2079_v53 = vsel %vm4656_vm13, %v1733_v3, 0  ;;  %vm5961_vm15 = vmmov %vm5954_vm6 }
  0xbc   : > { %v696_v27 = vmul.f32 %v4325_v63, %v671_v15  ;;  %v763_v51 = vpack.c.bf16 %v743_v41, %v743_v41  ;;  %v1323_v15 = vunpack.c.l.b16 %v4638_v24  ;;  %v1566_v4 = vpack.c.b16 %v1551_v31, %v1550_v40  ;;  %vm4708_vm11 = vmpackc.low %vm4629_vm2, %vm4624_vm4 }
  0xbd   : > { %v2370_v20 = vpack.c.b16 %v2354_v25, %v2353_v49  ;;  %v736_v37 = vmax.f32 %v704_v45, %v720_v8  ;;  %v2141_v23 = vshrl.u32 %v4640_v26, 16  ;;  %v5960_v58 = vsel %vm4691_vm8, 4294967295, %v5959_v58 }
  0xbe   : > { %v712_v43 = vadd.f32 %v4341_v9, %v696_v27  ;;  %779 = vst.msk [vmem:[#allocation2 + $0x30] sm:$0xf] %vm5954_vm6, %v763_v51  ;;  %v2143_v27 = vshll.u32 %v4640_v26, 16  ;;  %v653_v61 = vpop.f32.mrf.mxu0  ;;  %v1584_v32 = vshrl.u32 %v1566_v4, 16  ;;  %v1587_v36 = vshll.u32 %v1566_v4, 16 }
  0xbf   : > { %v2380_v41 = vshrl.u32 %v2370_v20, 16  ;;  %v756_v42 = vpack.c.bf16 %v736_v37, %v736_v37  ;;  %v2383_v48 = vshll.u32 %v2370_v20, 16  ;;  %v799_v52 = vadd.s32 64, %v4290_v33 }
  0xc0   : > { %v728_v56 = vmul.f32 0.1, %v712_v43  ;;  %v1586_v45 = vrot.slane %v1584_v32, 3  ;;  %v1589_v50 = vrot.slane %v1587_v36, 4  ;;  %v1035_v62 = vld [vmem:[#allocation2 + $0x10] sm:$0xf]  ;;  %v2115_v1 = vunpack.c.l.b16 %v2079_v53 }
  0xc1   : > { %v4697_v51 = vrot.slane %v2380_v41, 3  ;;  %772 = vst.msk [vmem:[#allocation2 + $0x14] sm:$0xf] %vm5954_vm6, %v756_v42  ;;  %v2302_v55 = vld [vmem:[#allocation2 + $0x10] sm:$0xf]  ;;  %v5962_v25 = vmov 0  ;;  %v1986_v53 = vunpack.c.l.b16 %v4680_v13  ;;  %vm4737_vm6 = vcmp.ne.s32.totalorder %v1317_v28, %v4336_v7 }
  0xc2   : > { %v744_v16 = vmax.f32 %v712_v43, %v728_v56  ;;  %v689_v43 = vmul.f32 %v4325_v63, %v653_v61  ;;  %v1324_v56 = vunpack.c.h.b16 %v4638_v24  ;;  %v5963_v25 = vsel %vm4708_vm11, 4294967295, %v5962_v25  ;;  %v4036_v3 = vld [vmem:[#allocation2 + $0xc] sm:$0xff] }
  0xc3   : > { %v673_v22 = vpop.f32.mrf.mxu2  ;;  %v4712_v8 = vor.u32 %v1589_v50, %v1586_v45  ;;  %v1397_v4 = vsel %vm4691_vm8, %v1035_v62, 0  ;;  %v4718_v20 = vrot.slane %v2383_v48, 4  ;;  %v1987_v61 = vunpack.c.h.b16 %v4680_v13 }
  0xc4   : > { %v764_v40 = vpack.c.bf16 %v744_v16, %v744_v16  ;;  %v697_v49 = vmul.f32 %v4325_v63, %v673_v22  ;;  %v705_v59 = vadd.f32 %v4341_v9, %v689_v43  ;;  %v2319_v16 = vsel %vm4573_vm0, %v2302_v55, 0  ;;  %v1734_v22 = vld [vmem:[#allocation2 + $0x10] sm:$0xf] }
  0xc5   : > { %vm5964_vm2 = vcmask 31744   ;;  %vm5965_vm7 = vsmask.f32 4352  ;;  %v1552_v36 = vunpack.c.l.b16 %v1397_v4  ;;  %vm5966_vm4 = vcmask 1041408  }
  0xc6   : > { %780 = vst.msk [vmem:[#allocation2 + $0x34] sm:$0xf] %vm5961_vm15, %v764_v40  ;;  %v713_v31 = vadd.f32 %v4341_v9, %v697_v49  ;;  %v721_v60 = vmul.f32 0.1, %v705_v59  ;;  %3889 = vmatmul.msk.bf16.gmra.mxu1 %vm5964_vm2, %v4036_v3  ;;  %v1591_v32 = vsel %vm5965_vm7, %v1582_v10, %v4712_v8  ;;  %v2618_v40 = vsel %vm5966_vm4, %v3922_v29, 0  ;;  %vm4748_vm7 = vmpackc.low %vm4671_vm9, %vm4666_vm5 }
  0xc7   : > { %vm4732_vm15 = vcmp.ne.s32.totalorder %v1316_v6, %v4333_v2  ;;  %v2080_v43 = vsel %vm4708_vm11, %v1734_v22, 0  ;;  %3896 = vmatmul.msk.bf16.vlgmr.msra.gmra.mxu0 %vm5964_vm2, %v1591_v32  ;;  %v2355_v10 = vunpack.c.l.b16 %v2319_v16  ;;  %2627 = vmatpush.bf16.msrb.mxu3 %v2618_v40  ;;  %v656_v6 = vpop.f32.mrf.mxu0  ;;  %v5971_v28 = vmov 0 }
  0xc8   : > { %v729_v37 = vmul.f32 0.1, %v713_v31  ;;  %v737_v48 = vmax.f32 %v705_v59, %v721_v60  ;;  %v2116_v38 = vunpack.c.l.b16 %v2080_v43  ;;  %v5972_v28 = vsel %vm4748_vm7, 4294967295, %v5971_v28  ;;  %v1036_v12 = vld [vmem:[#allocation2 + $0x14] sm:$0xf] }
  0xc9   : > { %v2145_v62 = vrot.slane %v2143_v27, 1  ;;  %v867_v59 = vand.u32 15, %v799_v52  ;;  %vm1020_vm4 = vcmp.ne.s32.totalorder %v846_v57, 15  ;;  %v2303_v21 = vld [vmem:[#allocation2 + $0x14] sm:$0xf]  ;;  %v2386_v16 = vor.u32 %v4718_v20, %v4697_v51 }
  0xca   : > { %v745_v49 = vmax.f32 %v713_v31, %v729_v37  ;;  %v757_v55 = vpack.c.bf16 %v737_v48, %v737_v48  ;;  %v690_v31 = vmul.f32 %v4325_v63, %v656_v6  ;;  %v4756_v4 = vpack.c.b16 %v2116_v38, %v2115_v1  ;;  %vm1785_vm0 = vmpackc.low %vm1020_vm4, %vm1020_vm4 }
  0xcb   : > { %v676_v45 = vpop.f32.mrf.mxu2  ;;  %vm1007_vm5 = vcmp.ne.s32.totalorder %v867_v59, 0  ;;  %v4762_v27 = vsel %vm1785_vm0, 65537, %v5864_v35  ;;  %vm5973_vm9 = vcmask 27648   ;;  %v1398_v57 = vsel %vm4748_vm7, %v1036_v12, 0 }
  0xcc   : > { %v698_v50 = vmul.f32 %v4325_v63, %v676_v45  ;;  %v765_v3 = vpack.c.bf16 %v745_v49, %v745_v49  ;;  %773 = vst.msk [vmem:[#allocation2 + $0x18] sm:$0xf] %vm5973_vm9, %v757_v55  ;;  %v706_v17 = vadd.f32 %v4341_v9, %v690_v31  ;;  %v2320_v52 = vsel %vm4614_vm10, %v2303_v21, 0  ;;  %vm1088_vm4 = vmpackc.low %vm1007_vm5, %vm1007_vm5 }
  0xcd   : > { %v2148_v1 = vshll.u32 %v4756_v4, 16  ;;  %v1553_v60 = vunpack.c.l.b16 %v1398_v57  ;;  %v2356_v37 = vunpack.c.l.b16 %v2320_v52  ;;  %vm5974_vm2 = vmmov %vm5973_vm9  ;;  %v1104_v32 = vsel %vm1088_vm4, 65537, %v5864_v35 }
  0xce   : > { %v714_v29 = vadd.f32 %v4341_v9, %v698_v50  ;;  %781 = vst.msk [vmem:[#allocation2 + $0x38] sm:$0xf] %vm5974_vm2, %v765_v3  ;;  %v722_v40 = vmul.f32 0.1, %v706_v17  ;;  %vm4776_vm0 = vcmp.ne.s32.totalorder %v1323_v15, %v4333_v2  ;;  %vm4781_vm9 = vcmp.ne.s32.totalorder %v1324_v56, %v4336_v7  ;;  %vm4802_vm5 = vmpackc.low %vm4737_vm6, %vm4732_vm15 }
  0xcf   : > { %v2146_v49 = vor.u32 %v2145_v62, %v2141_v23  ;;  %v1195_v45 = vshll.u32 %v1104_v32, 16  ;;  %v1199_v38 = vshrl.u32 %v1104_v32, 16  ;;  %v1567_v6 = vpack.c.b16 %v1553_v60, %v1552_v36  ;;  %v658_v56 = vpop.f32.mrf.mxu0 }
  0xd0   : > { %v730_v22 = vmul.f32 0.1, %v714_v29  ;;  %v2371_v50 = vpack.c.b16 %v2356_v37, %v2355_v10  ;;  %v4787_v55 = vrot.slane %v2148_v1, 1  ;;  %v738_v24 = vmax.f32 %v706_v17, %v722_v40 }
  0xd1   : > { %v1197_v31 = vrot.slane %v1195_v45, 5  ;;  %v1201_v3 = vrot.slane %v1199_v38, 4  ;;  %v1860_v12 = vshrl.u32 %v4762_v27, 16  ;;  %v1593_v21 = vshrl.u32 %v1567_v6, 16 }
  0xd2   : > { %v746_v59 = vmax.f32 %v714_v29, %v730_v22  ;;  %v1596_v57 = vshll.u32 %v1567_v6, 16  ;;  %v2388_v52 = vshrl.u32 %v2371_v50, 16  ;;  %v2391_v35 = vshll.u32 %v2371_v50, 16 }
  0xd3   : > { %v678_v15 = vpop.f32.mrf.mxu2  ;;  %vm4793_vm2 = vcmp.ne.s32.totalorder %v1986_v53, %v4333_v2  ;;  %v758_v23 = vpack.c.bf16 %v738_v24, %v738_v24  ;;  %v691_v36 = vmul.f32 %v4325_v63, %v658_v56  ;;  %v5981_v62 = vmov 0  ;;  %v1037_v22 = vld [vmem:[#allocation2 + $0x18] sm:$0xf] }
  0xd4   : > { %v766_v10 = vpack.c.bf16 %v746_v59, %v746_v59  ;;  %v5982_v62 = vsel %vm4802_vm5, 4294967295, %v5981_v62  ;;  %v699_v29 = vmul.f32 %v4325_v63, %v678_v15  ;;  %v1595_v17 = vrot.slane %v1593_v21, 3  ;;  %v2304_v32 = vld [vmem:[#allocation2 + $0x18] sm:$0xf] }
  0xd5   : > { %v1598_v1 = vrot.slane %v1596_v57, 4  ;;  %v2390_v53 = vrot.slane %v2388_v52, 3  ;;  %v2393_v60 = vrot.slane %v2391_v35, 4  ;;  %vm5983_vm4 = vcmask 27648   ;;  %v4037_v45 = vld [vmem:[#allocation2 + $0x14] sm:$0xff] }
  0xd6   : > { %774 = vst.msk [vmem:[#allocation2 + $0x1c] sm:$0xf] %vm5983_vm4, %v758_v23  ;;  %v707_v37 = vadd.f32 %v4341_v9, %v691_v36  ;;  %v715_v41 = vadd.f32 %v4341_v9, %v699_v29  ;;  %v1198_v42 = vsel %vm4328_vm14, %v4353_v14, %v1197_v31  ;;  %v1202_v40 = vor.u32 %v1201_v3, %v1197_v31  ;;  %vm5984_vm15 = vmmov %vm5983_vm4 }
  0xd7   : > { %v4813_v38 = vor.u32 %v1598_v1, %v1595_v17  ;;  %v4815_v6 = vor.u32 %v2393_v60, %v2390_v53  ;;  %782 = vst.msk [vmem:[#allocation2 + $0x3c] sm:$0xf] %vm5984_vm15, %v766_v10  ;;  %v1399_v35 = vsel %vm4802_vm5, %v1037_v22, 0  ;;  %vm5985_vm6 = vsmask.f32 7424 }
  0xd8   : > { %v4822_v50 = vsel %vm5985_vm6, %v2146_v49, %v4787_v55  ;;  %v723_v59 = vmul.f32 0.1, %v707_v37  ;;  %v1554_v24 = vunpack.c.l.b16 %v1399_v35  ;;  %v2321_v15 = vsel %vm4691_vm8, %v2304_v32, 0  ;;  %v1735_v1 = vld [vmem:[#allocation2 + $0x14] sm:$0xf] }
  0xd9   : > { %v731_v31 = vmul.f32 0.1, %v715_v41  ;;  %vm5986_vm4 = vcmask 31744   ;;  %vm5987_vm10 = vsmask.f32 4352  ;;  %v1203_v56 = vrot.slane %v1202_v40, 4 }
  0xda   : > { %3890 = vmatmul.msk.bf16.gmra.mxu1 %vm5986_vm4, %v4037_v45  ;;  %v1600_v3 = vsel %vm5987_vm10, %v4712_v8, %v4813_v38  ;;  %vm5988_vm15 = vmmov %vm5987_vm10  ;;  %v1330_v21 = vunpack.c.l.b16 %v1198_v42  ;;  %v739_v57 = vmax.f32 %v707_v37, %v723_v59  ;;  %v1331_v36 = vunpack.c.h.b16 %v1198_v42  ;;  %v1040_v40 = vld [vmem:[#allocation2 + $0x24] sm:$0xf] }
  0xdb   : > { %v2395_v49 = vsel %vm5988_vm15, %v2386_v16, %v4815_v6  ;;  %vm5989_vm6 = vmmov %vm5986_vm4  ;;  %v747_v52 = vmax.f32 %v715_v41, %v731_v31  ;;  %v681_v23 = vpop.f32.mrf.mxu2  ;;  %v4838_v10 = vrot.slane %v1860_v12, 7  ;;  %v5991_v51 = vmov 0 }
  0xdc   : > { %3897 = vmatmul.msk.bf16.gmra.mxu0 %vm5989_vm6, %v1600_v3  ;;  %vm5990_vm8 = vmmov %vm5986_vm4  ;;  %v2357_v8 = vunpack.c.l.b16 %v2321_v15  ;;  %v700_v20 = vmul.f32 %v4325_v63, %v681_v23  ;;  %v1208_v16 = vsel %vm4328_vm14, %v1203_v56, %v4314_v54  ;;  %v1863_v29 = vshll.u32 %v4762_v27, 16  ;;  %v2307_v27 = vld [vmem:[#allocation2 + $0x24] sm:$0xf] }
  0xdd   : > { %3914 = vmatmul.msk.bf16.vlgmr.msrb.gmra.mxu2 %vm5990_vm8, %v2395_v49  ;;  %vm4844_vm10 = vmpackc.low %vm4781_vm9, %vm4776_vm0  ;;  %v759_v17 = vpack.c.bf16 %v739_v57, %v739_v57  ;;  %v767_v12 = vpack.c.bf16 %v747_v52, %v747_v52  ;;  %vm4854_vm8 = vcmp.ne.s32.totalorder %v1330_v21, %v4333_v2  ;;  %v1337_v48 = vunpack.c.l.b16 %v1208_v16  ;;  %v1038_v53 = vld [vmem:[#allocation2 + $0x1c] sm:$0xf] }
  0xde   : > { %v5992_v51 = vsel %vm4844_vm10, 4294967295, %v5991_v51  ;;  %v2305_v60 = vld [vmem:[#allocation2 + $0x1c] sm:$0xf]  ;;  %v716_v37 = vadd.f32 %v4341_v9, %v700_v20  ;;  %v1338_v22 = vunpack.c.h.b16 %v1208_v16  ;;  %v1865_v32 = vor.u32 %v1863_v29, %v4838_v10 }
  0xdf   : > { %vm1991_vm0 = vcmp.ne.s32.totalorder %v1987_v61, %v4336_v7  ;;  %vm5995_vm9 = vcmask 27648   ;;  %v1400_v41 = vsel %vm4844_vm10, %v1038_v53, 0  ;;  %v2322_v42 = vsel %vm4748_vm7, %v2305_v60, 0  ;;  %v570_v53 = vpop.f32.mrf.mxu1 }
  0xe0   : > { %775 = vst.msk [vmem:[#allocation2 + $0x20] sm:$0xf] %vm5995_vm9, %v759_v17  ;;  %vm4873_vm4 = vcmp.ne.s32.totalorder %v1331_v36, %v4336_v7  ;;  %vm1341_vm15 = vcmp.ne.s32.totalorder %v1337_v48, %v4333_v2  ;;  %vm4880_vm6 = vmpackc.low %vm1991_vm0, %vm4793_vm2  ;;  %v1555_v61 = vunpack.c.l.b16 %v1400_v41  ;;  %v2358_v35 = vunpack.c.l.b16 %v2322_v42 }
  0xe1   : > { %783 = vst.msk [vmem:[#allocation2 + $0x40] sm:$0xf] %vm5995_vm9, %v767_v12  ;;  %v732_v59 = vmul.f32 0.1, %v716_v37  ;;  %vm1342_vm7 = vcmp.ne.s32.totalorder %v1338_v22, %v4336_v7  ;;  %v6000_v15 = vmov 0  ;;  %v1866_v26 = vsel %vm4416_vm12, %v4405_v39, %v1865_v32 }
  0xe2   : > { %vm4886_vm13 = vmpackc.low %vm1342_vm7, %vm1341_vm15  ;;  %v2081_v31 = vsel %vm4880_vm6, %v1735_v1, 0  ;;  %v2152_v3 = vshrl.u32 %v4756_v4, 16  ;;  %v2324_v49 = vsel %vm4844_vm10, %v2307_v27, 0  ;;  %v1568_v56 = vpack.c.b16 %v1555_v61, %v1554_v24  ;;  %v1736_v1 = vld [vmem:[#allocation2 + $0x18] sm:$0xf] }
  0xe3   : > { %v6001_v15 = vsel %vm4886_vm13, 4294967295, %v6000_v15  ;;  %v2372_v21 = vpack.c.b16 %v2358_v35, %v2357_v8  ;;  %v748_v57 = vmax.f32 %v716_v37, %v732_v59  ;;  %v1402_v52 = vsel %vm4886_vm13, %v1040_v40, 0  ;;  %vm4905_vm7 = vmpackc.low %vm4873_vm4, %vm4854_vm8 }
  0xe4   : > { %v1557_v23 = vunpack.c.l.b16 %v1402_v52  ;;  %v1993_v36 = vunpack.c.l.b16 %v1866_v26  ;;  %v1994_v20 = vunpack.c.h.b16 %v1866_v26  ;;  %v2117_v16 = vunpack.c.l.b16 %v2081_v31 }
  0xe5   : > { %v1602_v29 = vshrl.u32 %v1568_v56, 16  ;;  %v1605_v17 = vshll.u32 %v1568_v56, 16  ;;  %v2397_v12 = vshrl.u32 %v2372_v21, 16  ;;  %v2400_v48 = vshll.u32 %v2372_v21, 16  ;;  %v683_v21 = vpop.f32.mrf.mxu2 }
  0xe6   : > { %v768_v60 = vpack.c.bf16 %v748_v57, %v748_v57  ;;  %v6002_v24 = vmov 0  ;;  %vm1997_vm2 = vcmp.ne.s32.totalorder %v1993_v36, %v4333_v2  ;;  %vm1998_vm0 = vcmp.ne.s32.totalorder %v1994_v20, %v4336_v7 }
  0xe7   : > { %v6003_v24 = vsel %vm4905_vm7, 4294967295, %v6002_v24  ;;  %v2360_v8 = vunpack.c.l.b16 %v2324_v49  ;;  %v4038_v37 = vld [vmem:[#allocation2 + $0x1c] sm:$0xff]  ;;  %v1604_v22 = vrot.slane %v1602_v29, 3  ;;  %v1607_v32 = vrot.slane %v1605_v17, 4  ;;  %vm4911_vm15 = vmpackc.low %vm1998_vm0, %vm1997_vm2 }
  0xe8   : > { %v2399_v27 = vrot.slane %v2397_v12, 3  ;;  %v2402_v41 = vrot.slane %v2400_v48, 4  ;;  %784 = vst.msk [vmem:[#allocation2 + $0x44] sm:$0xf] %vm5995_vm9, %v768_v60  ;;  %v1039_v43 = vld [vmem:[#allocation2 + $0x20] sm:$0xf]  ;;  %v575_v45 = vmul.f32 %v4325_v63, %v570_v53  ;;  %v4919_v61 = vstv %s585_s30 }
  0xe9   : > { %v2082_v40 = vsel %vm4911_vm15, %v1736_v1, 0  ;;  %v801_v35 = vadd.s32 80, %v4290_v33  ;;  %vm6006_vm8 = vcmask 31744   ;;  %v1608_v59 = vor.u32 %v1607_v32, %v1604_v22  ;;  %v2306_v56 = vld [vmem:[#allocation2 + $0x20] sm:$0xf] }
  0xea   : > { %3891 = vmatmul.msk.bf16.vlgmr.msra.gmra.mxu3 %vm6006_vm8, %v4038_v37  ;;  %v4923_v26 = vor.u32 %v2402_v41, %v2399_v27  ;;  %v1401_v31 = vsel %vm4905_vm7, %v1039_v43, 0  ;;  %v2118_v49 = vunpack.c.l.b16 %v2082_v40  ;;  %v2323_v52 = vsel %vm4802_vm5, %v2306_v56, 0  ;;  %vm6008_vm2 = vmmov %vm6006_vm8 }
  0xeb   : > { %v1556_v57 = vunpack.c.l.b16 %v1401_v31  ;;  %v577_v36 = vadd.f32 %v4341_v9, %v575_v45  ;;  %v701_v20 = vmul.f32 %v4325_v63, %v683_v21  ;;  %vm6007_vm4 = vsmask.f32 4352  ;;  %3905 = vmatmul.msk.bf16.vlgmr.msra.gmra.mxu1 %vm6008_vm2, %v4822_v50  ;;  %vm6010_vm9 = vmmov %vm6008_vm2 }
  0xec   : > { %v1609_v29 = vsel %vm6007_vm4, %v4813_v38, %v1608_v59  ;;  %vm6009_vm0 = vmmov %vm6007_vm4  ;;  %v4938_v12 = vpack.c.b16 %v2118_v49, %v2117_v16  ;;  %v2359_v48 = vunpack.c.l.b16 %v2323_v52  ;;  %v881_v60 = vand.u32 15, %v801_v35 }
  0xed   : > { %v2404_v17 = vsel %vm6009_vm0, %v4815_v6, %v4923_v26  ;;  %3898 = vmatmul.msk.bf16.gmra.mxu0 %vm6010_vm9, %v1609_v29  ;;  %vm6011_vm8 = vmmov %vm6008_vm2  ;;  %v1569_v1 = vpack.c.b16 %v1557_v23, %v1556_v57  ;;  %v579_v53 = vmul.f32 0.1, %v577_v36  ;;  %v717_v63 = vadd.f32 %v4341_v9, %v701_v20 }
  0xee   : > { %3915 = vmatmul.msk.bf16.gmra.mxu2 %vm6011_vm8, %v2404_v17  ;;  %v2156_v38 = vshll.u32 %v4938_v12, 16  ;;  %v2373_v37 = vpack.c.b16 %v2360_v8, %v2359_v48  ;;  %v798_v50 = vadd.s32 56, %v4290_v33  ;;  %v1867_v22 = vrot.slane %v4838_v10, 4 }
  0xef   : > { %v1611_v6 = vshrl.u32 %v1569_v1, 16  ;;  %v1614_v16 = vshll.u32 %v1569_v1, 16  ;;  %v581_v32 = vmax.f32 %v577_v36, %v579_v53  ;;  %v733_v27 = vmul.f32 0.1, %v717_v63  ;;  %v2308_v1 = vld [vmem:[#allocation2 + $0x28] sm:$0xf] }
  0xf0   : > { %v2158_v41 = vrot.slane %v2156_v38, 1  ;;  %v2406_v43 = vshrl.u32 %v2373_v37, 16  ;;  %v2409_v40 = vshll.u32 %v2373_v37, 16  ;;  %vm1009_vm4 = vcmp.ne.s32.totalorder %v881_v60, 0 }
  0xf1   : > { %v1613_v23 = vrot.slane %v1611_v6, 3  ;;  %v1616_v45 = vrot.slane %v1614_v16, 4  ;;  %v587_v9 = vmul.f32 %v4919_v61, %v581_v32  ;;  %v749_v35 = vmax.f32 %v717_v63, %v733_v27  ;;  %vm1090_vm2 = vmpackc.low %vm1009_vm4, %vm1009_vm4  ;;  %v4039_v6 = vld [vmem:[#allocation2 + $0x24] sm:$0xff] }
  0xf2   : > { %v2154_v8 = vor.u32 %v2152_v3, %v4787_v55  ;;  %v2408_v31 = vrot.slane %v2406_v43, 3  ;;  %v2411_v10 = vrot.slane %v2409_v40, 4  ;;  %v6012_v49 = vmov 0   ;;  %v1737_v3 = vld [vmem:[#allocation2 + $0x1c] sm:$0xf] }
  0xf3   : > { %v1106_v56 = vsel %vm1090_vm2, 65537, %v6012_v49  ;;  %v4951_v21 = vor.u32 %v1616_v45, %v1613_v23  ;;  %v786_v57 = vpack.c.bf16 %v587_v9, %v587_v9  ;;  %v769_v52 = vpack.c.bf16 %v749_v35, %v749_v35  ;;  %v2309_v43 = vld [vmem:[#allocation2 + $0x2c] sm:$0xf]  ;;  %v1041_v23 = vld [vmem:[#allocation2 + $0x28] sm:$0xf] }
  0xf4   : > { %v1215_v36 = vshll.u32 %v1106_v56, 16  ;;  %vm6013_vm0 = vsmask.f32 7424  ;;  %v1219_v29 = vshrl.u32 %v1106_v56, 16  ;;  %v860_v17 = vand.u32 15, %v798_v50 }
  0xf5   : > { %v2159_v20 = vsel %vm6013_vm0, %v2154_v8, %v2158_v41  ;;  %v1875_v48 = vsel %vm4416_vm12, %v1867_v22, %v4365_v19  ;;  %v4957_v4 = vor.u32 %v2411_v10, %v2408_v31  ;;  %vm6014_vm9 = vcmask 27648  }
  0xf6   : > { %788 = vst.msk [vmem:[#allocation2 + $0x4c] sm:$0xf] %vm6014_vm9, %v786_v57  ;;  %v1217_v55 = vrot.slane %v1215_v36, 5  ;;  %v2000_v53 = vunpack.c.l.b16 %v1875_v48  ;;  %v2001_v63 = vunpack.c.h.b16 %v1875_v48  ;;  %vm6015_vm8 = vsmask.f32 4352  ;;  %vm6016_vm4 = vmmov %vm6014_vm9 }
  0xf7   : > { %v1618_v60 = vsel %vm6015_vm8, %v1608_v59, %v4951_v21  ;;  %785 = vst.msk [vmem:[#allocation2 + $0x48] sm:$0xf] %vm6016_vm4, %v769_v52  ;;  %v1221_v38 = vrot.slane %v1219_v29, 4  ;;  %vm1022_vm2 = vcmp.ne.s32.totalorder %v860_v17, 15  ;;  %v2160_v37 = vshrl.u32 %v4938_v12, 16 }
  0xf8   : > { %v1218_v50 = vsel %vm4328_vm14, %v4353_v14, %v1217_v55  ;;  %vm1787_vm0 = vmpackc.low %vm1022_vm2, %vm1022_vm2  ;;  %vm2004_vm9 = vcmp.ne.s32.totalorder %v2000_v53, %v4333_v2  ;;  %vm2005_vm10 = vcmp.ne.s32.totalorder %v2001_v63, %v4336_v7  ;;  %v2325_v22 = vsel %vm4905_vm7, %v2308_v1, 0  ;;  %v1042_v53 = vld [vmem:[#allocation2 + $0x2c] sm:$0xf] }
  0xf9   : > { %v1222_v59 = vor.u32 %v1221_v38, %v1217_v55  ;;  %v1344_v16 = vunpack.c.l.b16 %v1218_v50  ;;  %v1345_v32 = vunpack.c.h.b16 %v1218_v50  ;;  %v1803_v27 = vsel %vm1787_vm0, 65537, %v6012_v49  ;;  %vm4972_vm8 = vmpackc.low %vm2005_vm10, %vm2004_vm9 }
  0xfa   : > { %vm6019_vm4 = vsmask.f32 4352  ;;  %v1878_v45 = vshrl.u32 %v1803_v27, 16  ;;  %v1881_v9 = vshll.u32 %v1803_v27, 16  ;;  %v2083_v35 = vsel %vm4972_vm8, %v1737_v3, 0 }
  0xfb   : > { %v2413_v40 = vsel %vm6019_vm4, %v4923_v26, %v4957_v4  ;;  %vm6020_vm2 = vcmask 31744   ;;  %v1223_v8 = vrot.slane %v1222_v59, 4  ;;  %vm1348_vm0 = vcmp.ne.s32.totalorder %v1344_v16, %v4333_v2  ;;  %v5011_v27 = vld [vmem:[#allocation2 + $0x30] sm:$0xf] }
  0xfc   : > { %3892 = vmatmul.msk.bf16.gmra.mxu3 %vm6020_vm2, %v4039_v6  ;;  %vm1349_vm10 = vcmp.ne.s32.totalorder %v1345_v32, %v4336_v7  ;;  %v4984_v31 = vor.u32 %v2160_v37, %v2158_v41  ;;  %v6021_v10 = vmov 0  ;;  %v1880_v26 = vrot.slane %v1878_v45, 7  ;;  %vm6023_vm4 = vmmov %vm6020_vm2 }
  0xfd   : > { %vm4986_vm9 = vmpackc.low %vm1349_vm10, %vm1348_vm0  ;;  %v2326_v56 = vsel %vm4886_vm13, %v2309_v43, 0  ;;  %v2361_v57 = vunpack.c.l.b16 %v2325_v22  ;;  %v803_v52 = vadd.s32 96, %v4290_v33  ;;  %3906 = vmatmul.msk.bf16.gmra.mxu1 %vm6023_vm4, %v2159_v20  ;;  %v1228_v36 = vsel %vm4328_vm14, %v1223_v8, %v4314_v54  ;;  %3899 = vmatmul.msk.bf16.gmra.mxu0 %vm6020_vm2, %v1618_v60 }
  0xfe   : > { %v6022_v10 = vsel %vm4986_vm9, 4294967295, %v6021_v10  ;;  %v1403_v41 = vsel %vm4986_vm9, %v1041_v23, 0  ;;  %v2362_v29 = vunpack.c.l.b16 %v2326_v56  ;;  %v800_v17 = vadd.s32 72, %v4290_v33  ;;  %vm6024_vm0 = vmmov %vm6020_vm2  ;;  %v2938_v42 = vld [vmem:[#allocation2 + $0x48] sm:$0xf] }
  0xff   : > { %3916 = vmatmul.msk.bf16.gmra.mxu2 %vm6024_vm0, %v2413_v40  ;;  %v1351_v48 = vunpack.c.l.b16 %v1228_v36  ;;  %v1352_v1 = vunpack.c.h.b16 %v1228_v36  ;;  %v1883_v55 = vor.u32 %v1881_v9, %v1880_v26  ;;  %v2119_v3 = vunpack.c.l.b16 %v2083_v35  ;;  %v1738_v40 = vld [vmem:[#allocation2 + $0x20] sm:$0xf] }
 0x100   : > { %v2374_v20 = vpack.c.b16 %v2362_v29, %v2361_v57  ;;  %v895_v63 = vand.u32 15, %v803_v52  ;;  %v874_v38 = vand.u32 15, %v800_v17  ;;  %v1885_v37 = vrot.slane %v1880_v26, 4 }
 0x101   : > { %vm1355_vm10 = vcmp.ne.s32.totalorder %v1351_v48, %v4333_v2  ;;  %vm1356_vm4 = vcmp.ne.s32.totalorder %v1352_v1, %v4336_v7  ;;  %v1558_v50 = vunpack.c.l.b16 %v1403_v41  ;;  %v1884_v60 = vsel %vm4416_vm12, %v4405_v39, %v1883_v55 }
 0x102   : > { %vm5007_vm2 = vmpackc.low %vm1356_vm4, %vm1355_vm10  ;;  %v6025_v22 = vmov 0  ;;  %v2007_v6 = vunpack.c.l.b16 %v1884_v60  ;;  %v2008_v59 = vunpack.c.h.b16 %v1884_v60  ;;  %v2415_v16 = vshrl.u32 %v2374_v20, 16 }
 0x103   : > { %v6026_v22 = vsel %vm5007_vm2, 4294967295, %v6025_v22  ;;  %v2418_v32 = vshll.u32 %v2374_v20, 16  ;;  %v1404_v43 = vsel %vm5007_vm2, %v1042_v53, 0  ;;  %vm1011_vm0 = vcmp.ne.s32.totalorder %v895_v63, 0 }
 0x104   : > { %vm5015_vm13 = vcmp.ne.s32.totalorder %v874_v38, 15  ;;  %v1893_v45 = vsel %vm4416_vm12, %v1885_v37, %v4365_v19  ;;  %v1559_v9 = vunpack.c.l.b16 %v1404_v43  ;;  %vm2011_vm10 = vcmp.ne.s32.totalorder %v2007_v6, %v4333_v2  ;;  %vm1092_vm7 = vmpackc.low %vm1011_vm0, %vm1011_vm0 }
 0x105   : > { %vm2012_vm4 = vcmp.ne.s32.totalorder %v2008_v59, %v4336_v7  ;;  %v2417_v35 = vrot.slane %v2415_v16, 3  ;;  %v6029_v8 = vmov 0  ;;  %v2420_v26 = vrot.slane %v2418_v32, 4  ;;  %vm1789_vm0 = vmpackc.low %vm5015_vm13, %vm5015_vm13  ;;  %v4040_v16 = vld [vmem:[#allocation2 + $0x2c] sm:$0xff] }
 0x106   : > { %vm5024_vm5 = vmpackc.low %vm2012_vm4, %vm2011_vm10  ;;  %v1108_v56 = vsel %vm1092_vm7, 65537, %v6012_v49  ;;  %v2014_v57 = vunpack.c.l.b16 %v1893_v45  ;;  %v2327_v52 = vsel %vm4986_vm9, %v5011_v27, 0  ;;  %v1570_v36 = vpack.c.b16 %v1559_v9, %v1558_v50  ;;  %v1739_v9 = vld [vmem:[#allocation2 + $0x24] sm:$0xf] }
 0x107   : > { %v6030_v8 = vsel %vm5024_vm5, 4294967295, %v6029_v8  ;;  %v2084_v41 = vsel %vm5024_vm5, %v1738_v40, 0  ;;  %v1235_v29 = vshll.u32 %v1108_v56, 16  ;;  %v1239_v17 = vshrl.u32 %v1108_v56, 16 }
 0x108   : > { %v2120_v48 = vunpack.c.l.b16 %v2084_v41  ;;  %v5037_v1 = vor.u32 %v2420_v26, %v2417_v35  ;;  %v1805_v55 = vsel %vm1789_vm0, 65537, %v6012_v49  ;;  %v2015_v53 = vunpack.c.h.b16 %v1893_v45  ;;  %v2311_v26 = vld [vmem:[#allocation2 + $0x34] sm:$0xf] }
 0x109   : > { %v1620_v20 = vshrl.u32 %v1570_v36, 16  ;;  %v1623_v63 = vshll.u32 %v1570_v36, 16  ;;  %v1237_v38 = vrot.slane %v1235_v29, 5  ;;  %v1241_v37 = vrot.slane %v1239_v17, 4  ;;  %v1043_v36 = vld [vmem:[#allocation2 + $0x30] sm:$0xf] }
 0x10a   : > { %v5040_v50 = vpack.c.b16 %v2120_v48, %v2119_v3  ;;  %v1896_v60 = vshrl.u32 %v1805_v55, 16  ;;  %v1899_v6 = vshll.u32 %v1805_v55, 16  ;;  %vm5043_vm7 = vcmp.ne.s32.totalorder %v2014_v57, %v4333_v2 }
 0x10b   : > { %v1622_v32 = vrot.slane %v1620_v20, 3  ;;  %v1625_v27 = vrot.slane %v1623_v63, 4  ;;  %v1238_v43 = vsel %vm4328_vm14, %v4353_v14, %v1237_v38  ;;  %v1242_v40 = vor.u32 %v1241_v37, %v1237_v38 }
 0x10c   : > { %v2164_v23 = vshll.u32 %v5040_v50, 16  ;;  %v1358_v45 = vunpack.c.l.b16 %v1238_v43  ;;  %v1359_v3 = vunpack.c.h.b16 %v1238_v43  ;;  %v1898_v35 = vrot.slane %v1896_v60, 7 }
 0x10d   : > { %vm6033_vm13 = vcmask 31744   ;;  %v5052_v56 = vor.u32 %v1625_v27, %v1622_v32  ;;  %vm6034_vm10 = vsmask.f32 4352  ;;  %v1243_v41 = vrot.slane %v1242_v40, 4 }
 0x10e   : > { %3893 = vmatmul.msk.bf16.gmra.mxu3 %vm6033_vm13, %v4040_v16  ;;  %v2422_v57 = vsel %vm6034_vm10, %v4957_v4, %v5037_v1  ;;  %vm2019_vm4 = vcmp.ne.s32.totalorder %v2015_v53, %v4336_v7  ;;  %v2166_v29 = vrot.slane %v2164_v23, 1  ;;  %vm1362_vm0 = vcmp.ne.s32.totalorder %v1358_v45, %v4333_v2  ;;  %vm6037_vm13 = vmmov %vm6034_vm10  ;;  %v1740_v23 = vld [vmem:[#allocation2 + $0x28] sm:$0xf] }
 0x10f   : > { %vm1363_vm9 = vcmp.ne.s32.totalorder %v1359_v3, %v4336_v7  ;;  %v1901_v17 = vor.u32 %v1899_v6, %v1898_v35  ;;  %vm5062_vm5 = vmpackc.low %vm2019_vm4, %vm5043_vm7  ;;  %v6035_v48 = vmov 0  ;;  %v1627_v4 = vsel %vm6037_vm13, %v4951_v21, %v5052_v56  ;;  %v1044_v6 = vld [vmem:[#allocation2 + $0x34] sm:$0xf] }
 0x110   : > { %v6036_v48 = vsel %vm5062_vm5, 4294967295, %v6035_v48  ;;  %v1248_v55 = vsel %vm4328_vm14, %v1243_v41, %v4314_v54  ;;  %vm5072_vm10 = vmpackc.low %vm1363_vm9, %vm1362_vm0  ;;  %v6038_v53 = vmov 0  ;;  %v2085_v20 = vsel %vm5062_vm5, %v1739_v9, 0 }
 0x111   : > { %v6039_v53 = vsel %vm5072_vm10, 4294967295, %v6038_v53  ;;  %v2328_v63 = vsel %vm5007_vm2, %v2311_v26, 0  ;;  %vm6040_vm7 = vcmask 31744   ;;  %vm6041_vm4 = vsmask.f32 7424 }
 0x112   : > { %3900 = vmatmul.msk.bf16.gmra.mxu0 %vm6040_vm7, %v1627_v4  ;;  %v2167_v38 = vsel %vm6041_vm4, %v4984_v31, %v2166_v29  ;;  %vm6042_vm13 = vmmov %vm6040_vm7  ;;  %v1365_v21 = vunpack.c.l.b16 %v1248_v55  ;;  %v1366_v37 = vunpack.c.h.b16 %v1248_v55  ;;  %v1405_v60 = vsel %vm5072_vm10, %v1043_v36, 0  ;;  %v2312_v55 = vld [vmem:[#allocation2 + $0x38] sm:$0xf] }
 0x113   : > { %3917 = vmatmul.msk.bf16.gmra.mxu2 %vm6042_vm13, %v2422_v57  ;;  %vm6043_vm9 = vmmov %vm6040_vm7  ;;  %v1560_v59 = vunpack.c.l.b16 %v1405_v60  ;;  %v1902_v16 = vsel %vm4416_vm12, %v4405_v39, %v1901_v17  ;;  %v2121_v32 = vunpack.c.l.b16 %v2085_v20  ;;  %v2168_v27 = vshrl.u32 %v5040_v50, 16 }
 0x114   : > { %3907 = vmatmul.msk.bf16.gmra.mxu1 %vm6043_vm9, %v2167_v38  ;;  %vm1369_vm0 = vcmp.ne.s32.totalorder %v1365_v21, %v4333_v2  ;;  %vm1370_vm7 = vcmp.ne.s32.totalorder %v1366_v37, %v4336_v7  ;;  %v2021_v31 = vunpack.c.l.b16 %v1902_v16  ;;  %v2022_v43 = vunpack.c.h.b16 %v1902_v16 }
 0x115   : > { %vm5093_vm4 = vmpackc.low %vm1370_vm7, %vm1369_vm0  ;;  %v6044_v40 = vmov 0  ;;  %v2363_v45 = vunpack.c.l.b16 %v2327_v52  ;;  %v2364_v3 = vunpack.c.l.b16 %v2328_v63  ;;  %v805_v9 = vadd.s32 112, %v4290_v33 }
 0x116   : > { %v6045_v40 = vsel %vm5093_vm4, 4294967295, %v6044_v40  ;;  %v802_v26 = vadd.s32 88, %v4290_v33  ;;  %v1406_v50 = vsel %vm5093_vm4, %v1044_v6, 0  ;;  %vm2025_vm13 = vcmp.ne.s32.totalorder %v2021_v31, %v4333_v2 }
 0x117   : > { %vm2026_vm9 = vcmp.ne.s32.totalorder %v2022_v43, %v4336_v7  ;;  %v1903_v57 = vrot.slane %v1898_v35, 4  ;;  %v1561_v36 = vunpack.c.l.b16 %v1406_v50  ;;  %v6046_v41 = vmov 0 }
 0x118   : > { %vm5103_vm0 = vmpackc.low %vm2026_vm9, %vm2025_vm13  ;;  %v2375_v17 = vpack.c.b16 %v2364_v3, %v2363_v45  ;;  %v909_v52 = vand.u32 15, %v805_v9  ;;  %v888_v4 = vand.u32 15, %v802_v26  ;;  %v2170_v63 = vor.u32 %v2168_v27, %v2166_v29  ;;  %v1741_v3 = vld [vmem:[#allocation2 + $0x2c] sm:$0xf]  ;;  %v4041_v9 = vld [vmem:[#allocation2 + $0x34] sm:$0xff] }
 0x119   : > { %v6047_v41 = vsel %vm5103_vm0, 4294967295, %v6046_v41  ;;  %v2086_v20 = vsel %vm5103_vm0, %v1740_v23, 0  ;;  %v1911_v38 = vsel %vm4416_vm12, %v1903_v57, %v4365_v19  ;;  %v2329_v35 = vsel %vm5072_vm10, %v2312_v55, 0 }
 0x11a   : > { %v1571_v21 = vpack.c.b16 %v1561_v36, %v1560_v59  ;;  %v2122_v37 = vunpack.c.l.b16 %v2086_v20  ;;  %v2424_v60 = vshrl.u32 %v2375_v17, 16  ;;  %v2427_v6 = vshll.u32 %v2375_v17, 16 }
 0x11b   : > { %vm1013_vm7 = vcmp.ne.s32.totalorder %v909_v52, 0  ;;  %vm5114_vm13 = vcmp.ne.s32.totalorder %v888_v4, 15  ;;  %v2028_v31 = vunpack.c.l.b16 %v1911_v38  ;;  %v2029_v43 = vunpack.c.h.b16 %v1911_v38  ;;  %v2313_v52 = vld [vmem:[#allocation2 + $0x3c] sm:$0xf] }
 0x11c   : > { %v1629_v23 = vshrl.u32 %v1571_v21, 16  ;;  %v1632_v29 = vshll.u32 %v1571_v21, 16  ;;  %v5118_v27 = vpack.c.b16 %v2122_v37, %v2121_v32  ;;  %v2426_v45 = vrot.slane %v2424_v60, 3  ;;  %vm1094_vm9 = vmpackc.low %vm1013_vm7, %vm1013_vm7 }
 0x11d   : > { %v2429_v26 = vrot.slane %v2427_v6, 4  ;;  %v1110_v59 = vsel %vm1094_vm9, 65537, %v6012_v49  ;;  %vm1791_vm10 = vmpackc.low %vm5114_vm13, %vm5114_vm13  ;;  %vm2032_vm2 = vcmp.ne.s32.totalorder %v2028_v31, %v4333_v2  ;;  %vm2033_vm0 = vcmp.ne.s32.totalorder %v2029_v43, %v4336_v7 }
 0x11e   : > { %v1631_v50 = vrot.slane %v1629_v23, 3  ;;  %v1634_v57 = vrot.slane %v1632_v29, 4  ;;  %v2172_v32 = vshll.u32 %v5118_v27, 16  ;;  %v1255_v36 = vshll.u32 %v1110_v59, 16  ;;  %vm5127_vm5 = vmpackc.low %vm2033_vm0, %vm2032_vm2 }
 0x11f   : > { %v6050_v17 = vmov 0  ;;  %v5131_v4 = vor.u32 %v2429_v26, %v2426_v45  ;;  %v1259_v55 = vshrl.u32 %v1110_v59, 16  ;;  %v1807_v20 = vsel %vm1791_vm10, 65537, %v6012_v49 }
 0x120   : > { %v6051_v17 = vsel %vm5127_vm5, 4294967295, %v6050_v17  ;;  %v2087_v38 = vsel %vm5127_vm5, %v1741_v3, 0  ;;  %vm6052_vm7 = vcmask 31744   ;;  %v5137_v21 = vor.u32 %v1634_v57, %v1631_v50  ;;  %v572_v57 = vpop.f32.mrf.mxu1 }
 0x121   : > { %3894 = vmatmul.msk.bf16.gmra.mxu3 %vm6052_vm7, %v4041_v9  ;;  %v5139_v37 = vrot.slane %v2172_v32, 1  ;;  %v1257_v60 = vrot.slane %v1255_v36, 5  ;;  %v1914_v6 = vshrl.u32 %v1807_v20, 16  ;;  %vm6053_vm2 = vsmask.f32 4352  ;;  %vm6055_vm0 = vmmov %vm6052_vm7 }
 0x122   : > { %v2431_v16 = vsel %vm6053_vm2, %v5037_v1, %v5131_v4  ;;  %v1261_v31 = vrot.slane %v1259_v55, 4  ;;  %v1917_v43 = vshll.u32 %v1807_v20, 16  ;;  %v2330_v23 = vsel %vm5093_vm4, %v2313_v52, 0  ;;  %vm6054_vm10 = vmmov %vm6053_vm2  ;;  %v1045_v32 = vld [vmem:[#allocation2 + $0x38] sm:$0xf] }
 0x123   : > { %v1636_v29 = vsel %vm6054_vm10, %v5052_v56, %v5137_v21  ;;  %v1258_v45 = vsel %vm4328_vm14, %v4353_v14, %v1257_v60  ;;  %v5152_v3 = vrot.slane %v1914_v6, 7  ;;  %v5154_v9 = vunpack.c.l.b16 %v2087_v38  ;;  %vm6057_vm9 = vmmov %vm6055_vm0  ;;  %v3981_v56 = vld [vmem:[%s5854_s6 + $0xe] sm:$0x3] }
 0x124   : > { %3901 = vmatmul.msk.bf16.gmra.mxu0 %vm6055_vm0, %v1636_v29  ;;  %vm6056_vm13 = vsmask.f32 7424  ;;  %3918 = vmatmul.msk.bf16.gmra.mxu2 %vm6057_vm9, %v2431_v16  ;;  %v1262_v26 = vor.u32 %v1261_v31, %v1257_v60  ;;  %v1372_v59 = vunpack.c.l.b16 %v1258_v45  ;;  %v1373_v50 = vunpack.c.h.b16 %v1258_v45  ;;  %vm6058_vm7 = vmmov %vm6055_vm0  ;;  %v4108_v31 = vld [vmem:[%s5853_s5] ss:$0 sm:$0xff] }
 0x125   : > { %v2175_v1 = vsel %vm6056_vm13, %v2170_v63, %v5139_v37  ;;  %v1919_v36 = vor.u32 %v1917_v43, %v5152_v3  ;;  %v2365_v52 = vunpack.c.l.b16 %v2329_v35  ;;  %v2366_v55 = vunpack.c.l.b16 %v2330_v23  ;;  %v4107_v63 = vld [vmem:[%s5852_s4] ss:$0 sm:$0xff] }
 0x126   : > { %3908 = vmatmul.msk.bf16.gmra.mxu1 %vm6058_vm7, %v2175_v1  ;;  %v576_v20 = vmul.f32 %v4107_v63, %v572_v57  ;;  %v1263_v38 = vrot.slane %v1262_v26, 4  ;;  %vm1376_vm2 = vcmp.ne.s32.totalorder %v1372_v59, %v4333_v2  ;;  %vm1377_vm10 = vcmp.ne.s32.totalorder %v1373_v50, %v4336_v7  ;;  %v3963_v26 = vld [vmem:[%s5854_s6 + $0xa] sm:$0x3] }
 0x127   : > { %v2176_v60 = vshrl.u32 %v5118_v27, 16  ;;  %vm5171_vm0 = vmpackc.low %vm1377_vm10, %vm1376_vm2  ;;  %v6059_v6 = vmov 0  ;;  %v1920_v35 = vsel %vm4416_vm12, %v4405_v39, %v1919_v36  ;;  %v2376_v16 = vpack.c.b16 %v2366_v55, %v2365_v52  ;;  %v1742_v36 = vld [vmem:[#allocation2 + $0x30] sm:$0xf] }
 0x128   : > { %v6060_v6 = vsel %vm5171_vm0, 4294967295, %v6059_v6  ;;  %v578_v43 = vadd.f32 %v4108_v31, %v576_v20  ;;  %vm6061_vm13 = vcmask 1041408   ;;  %v1268_v27 = vsel %vm4328_vm14, %v1263_v38, %v4314_v54  ;;  %v1046_v54 = vld [vmem:[#allocation2 + $0x3c] sm:$0xf] }
 0x129   : > { %v3242_v23 = vsel %vm6061_vm13, %v3981_v56, 0  ;;  %v1407_v29 = vsel %vm5171_vm0, %v1045_v32, 0  ;;  %v2035_v45 = vunpack.c.l.b16 %v1920_v35  ;;  %v2036_v1 = vunpack.c.h.b16 %v1920_v35  ;;  %vm6066_vm5 = vmmov %vm6061_vm13 }
 0x12a   : > { %3251 = vmatpush.bf16.msra.mxu2 %v3242_v23  ;;  %v1379_v59 = vunpack.c.l.b16 %v1268_v27  ;;  %v1380_v50 = vunpack.c.h.b16 %v1268_v27  ;;  %v1562_v57 = vunpack.c.l.b16 %v1407_v29  ;;  %v2433_v52 = vshrl.u32 %v2376_v16, 16 }
 0x12b   : > { %vm2039_vm14 = vcmp.ne.s32.totalorder %v2035_v45, %v4333_v2  ;;  %vm2040_vm9 = vcmp.ne.s32.totalorder %v2036_v1, %v4336_v7  ;;  %v2436_v56 = vshll.u32 %v2376_v16, 16  ;;  %v580_v32 = vmul.f32 0.1, %v578_v43 }
 0x12c   : > { %vm1383_vm7 = vcmp.ne.s32.totalorder %v1379_v59, %v4333_v2  ;;  %vm1384_vm2 = vcmp.ne.s32.totalorder %v1380_v50, %v4336_v7  ;;  %vm5197_vm10 = vmpackc.low %vm2040_vm9, %vm2039_vm14  ;;  %v2435_v63 = vrot.slane %v2433_v52, 3  ;;  %v2857_v20 = vsel %vm6061_vm13, %v3963_v26, 0  ;;  %v4042_v52 = vld [vmem:[#allocation2 + $0x3c] sm:$0xff] }
 0x12d   : > { %vm5202_vm4 = vmpackc.low %vm1384_vm2, %vm1383_vm7  ;;  %v6064_v38 = vmov 0  ;;  %v2088_v35 = vsel %vm5197_vm10, %v1742_v36, 0  ;;  %v2438_v16 = vrot.slane %v2436_v56, 4  ;;  %v582_v31 = vmax.f32 %v578_v43, %v580_v32  ;;  %2866 = vmatpush.bf16.msrb.mxu0 %v2857_v20  ;;  %v1047_v36 = vld [vmem:[#allocation2 + $0x40] sm:$0xf] }
 0x12e   : > { %v6065_v38 = vsel %vm5202_vm4, 4294967295, %v6064_v38  ;;  %v3481_v23 = vsel %vm6066_vm5, %v4022_v0, 0  ;;  %v1408_v27 = vsel %vm5202_vm4, %v1046_v54, 0  ;;  %v2124_v29 = vunpack.c.l.b16 %v2088_v35  ;;  %v2314_v20 = vld [vmem:[#allocation2 + $0x40] sm:$0xf] }
 0x12f   : > { %3490 = vmatpush.bf16.msra.mxu3 %v3481_v23  ;;  %v1386_v45 = vunpack.c.l.b16 %v4353_v14  ;;  %v1387_v1 = vunpack.c.h.b16 %v4353_v14  ;;  %v1563_v26 = vunpack.c.l.b16 %v1408_v27  ;;  %v5213_v59 = vor.u32 %v2438_v16, %v2435_v63 }
 0x130   : > { %v588_v50 = vmul.f32 %v4919_v61, %v582_v31  ;;  %v804_v43 = vadd.s32 104, %v4290_v33  ;;  %v5218_v0 = vpack.c.b16 %v2124_v29, %v5154_v9  ;;  %v1921_v54 = vrot.slane %v5152_v3, 4 }
 0x131   : > { %vm1390_vm5 = vcmp.ne.s32.totalorder %v1386_v45, %v4333_v2  ;;  %vm1391_vm14 = vcmp.ne.s32.totalorder %v1387_v1, %v4336_v7  ;;  %v1572_v56 = vpack.c.b16 %v1563_v26, %v1562_v57  ;;  %v2178_v14 = vor.u32 %v2176_v60, %v5139_v37 }
 0x132   : > { %v787_v32 = vpack.c.bf16 %v588_v50, %v588_v50  ;;  %vm5224_vm9 = vmpackc.low %vm1391_vm14, %vm1390_vm5  ;;  %v6067_v63 = vmov 0  ;;  %v902_v61 = vand.u32 15, %v804_v43  ;;  %vm6069_vm7 = vcmask 31744   ;;  %v2315_v50 = vld [vmem:[#allocation2 + $0x44] sm:$0xf] }
 0x133   : > { %v6068_v63 = vsel %vm5224_vm9, 4294967295, %v6067_v63  ;;  %3895 = vmatmul.msk.bf16.gmra.mxu3 %vm6069_vm7, %v4042_v52  ;;  %v2180_v9 = vshll.u32 %v5218_v0, 16  ;;  %vm6070_vm2 = vsmask.f32 4352  ;;  %v1409_v3 = vsel %vm5224_vm9, %v1047_v36, 0 }
 0x134   : > { %v2440_v35 = vsel %vm6070_vm2, %v5131_v4, %v5213_v59  ;;  %v1929_v37 = vsel %vm4416_vm12, %v1921_v54, %v4365_v19  ;;  %v1638_v60 = vshrl.u32 %v1572_v56, 16  ;;  %v1641_v57 = vshll.u32 %v1572_v56, 16  ;;  %v3972_v56 = vld [vmem:[%s5854_s6 + $0xc] sm:$0x3] }
 0x135   : > { %vm6071_vm13 = vcmask 27648   ;;  %v1564_v16 = vunpack.c.l.b16 %v1409_v3  ;;  %vm1028_vm5 = vcmp.ne.s32.totalorder %v902_v61, 15  ;;  %v5239_v31 = vrot.slane %v2180_v9, 1  ;;  %3919 = vmatmul.msk.bf16.gmra.mxu2 %vm6069_vm7, %v2440_v35  ;;  %v1743_v61 = vld [vmem:[#allocation2 + $0x34] sm:$0xf] }
 0x136   : > { %789 = vst.msk [vmem:[#allocation2 + $0x50] sm:$0xf] %vm6071_vm13, %v787_v32  ;;  %vm1793_vm14 = vmpackc.low %vm1028_vm5, %vm1028_vm5  ;;  %v2042_v23 = vunpack.c.l.b16 %v1929_v37  ;;  %v2043_v27 = vunpack.c.h.b16 %v1929_v37  ;;  %v2331_v4 = vsel %vm5171_vm0, %v2314_v20, 0  ;;  %v1640_v29 = vrot.slane %v1638_v60, 3 }
 0x137   : > { %v1643_v45 = vrot.slane %v1641_v57, 4  ;;  %v1573_v1 = vpack.c.b16 %v1564_v16, %v1564_v16  ;;  %v1809_v26 = vsel %vm1793_vm14, 65537, %v6012_v49  ;;  %vm6072_vm2 = vsmask.f32 7424  ;;  %vm6073_vm5 = vmmov %vm6069_vm7 }
 0x138   : > { %v2183_v36 = vsel %vm6072_vm2, %v2178_v14, %v5239_v31  ;;  %v1932_v43 = vshrl.u32 %v1809_v26, 16  ;;  %v1935_v52 = vshll.u32 %v1809_v26, 16  ;;  %vm2046_vm13 = vcmp.ne.s32.totalorder %v2042_v23, %v4333_v2  ;;  %vm6077_vm2 = vmmov %vm6073_vm5 }
 0x139   : > { %v5248_v54 = vor.u32 %v1643_v45, %v1640_v29  ;;  %3909 = vmatmul.msk.bf16.gmra.mxu1 %vm6073_vm5, %v2183_v36  ;;  %vm2047_vm0 = vcmp.ne.s32.totalorder %v2043_v27, %v4336_v7  ;;  %v1647_v32 = vshrl.u32 %v1573_v1, 16  ;;  %v2332_v14 = vsel %vm5202_vm4, %v2315_v50, 0  ;;  %v2316_v45 = vld [vmem:[#allocation2 + $0x48] sm:$0xf] }
 0x13a   : > { %v1934_v20 = vrot.slane %v1932_v43, 7  ;;  %vm5255_vm14 = vmpackc.low %vm2047_vm0, %vm2046_vm13  ;;  %v2367_v35 = vunpack.c.l.b16 %v2331_v4  ;;  %vm6076_vm7 = vsmask.f32 4352  ;;  %v1650_v37 = vshll.u32 %v1573_v1, 16 }
 0x13b   : > { %v1645_v3 = vsel %vm6076_vm7, %v5137_v21, %v5248_v54  ;;  %v2368_v57 = vunpack.c.l.b16 %v2332_v14  ;;  %vm6078_vm5 = vcmask 1041408   ;;  %v2089_v23 = vsel %vm5255_vm14, %v1743_v61, 0 }
 0x13c   : > { %3902 = vmatmul.msk.bf16.gmra.mxu0 %vm6077_vm2, %v1645_v3  ;;  %v1937_v60 = vor.u32 %v1935_v52, %v1934_v20  ;;  %v3108_v16 = vsel %vm6078_vm5, %v3972_v56, 0  ;;  %v806_v27 = vadd.s32 120, %v4290_v33  ;;  %v1939_v29 = vrot.slane %v1934_v20, 4  ;;  %v1744_v56 = vld [vmem:[#allocation2 + $0x38] sm:$0xf] }
 0x13d   : > { %3117 = vmatpush.bf16.msrb.mxu1 %v3108_v16  ;;  %v1649_v4 = vrot.slane %v1647_v32, 3  ;;  %v2377_v1 = vpack.c.b16 %v2368_v57, %v2367_v35  ;;  %v2333_v26 = vsel %vm5224_vm9, %v2316_v45, 0  ;;  %v1652_v50 = vrot.slane %v1650_v37, 4  ;;  %v4043_v35 = vld [vmem:[#allocation2 + $0xc] sm:$0xff] }
 0x13e   : > { %v1938_v21 = vsel %vm4416_vm12, %v4405_v39, %v1937_v60  ;;  %v916_v52 = vand.u32 15, %v806_v27  ;;  %v2125_v61 = vunpack.c.l.b16 %v2089_v23  ;;  %v1947_v33 = vsel %vm4416_vm12, %v1939_v29, %v4365_v19  ;;  %v2686_v27 = vld [vmem:[#allocation2 + $0x10] sm:$0xf]  ;;  %v5287_v19 = vpop.f32.mrf.mxu1 }
 0x13f   : > { %v2049_v36 = vunpack.c.l.b16 %v1938_v21  ;;  %v2050_v43 = vunpack.c.h.b16 %v1938_v21  ;;  %v2442_v14 = vshrl.u32 %v2377_v1, 16  ;;  %v2445_v3 = vshll.u32 %v2377_v1, 16  ;;  %v3324_v37 = vld [vmem:[#allocation2 + $0x50] sm:$0xf] }
 0x140   : > { %vm5279_vm7 = vcmp.ne.s32.totalorder %v916_v52, 15  ;;  %v2369_v20 = vunpack.c.l.b16 %v2333_v26  ;;  %v2056_v16 = vunpack.c.l.b16 %v1947_v33  ;;  %v2057_v23 = vunpack.c.h.b16 %v1947_v33  ;;  %v2688_v33 = vld [vmem:[#allocation2 + $0x18] sm:$0xf] }
 0x141   : > { %vm2053_vm0 = vcmp.ne.s32.totalorder %v2049_v36, %v4333_v2  ;;  %vm2054_vm13 = vcmp.ne.s32.totalorder %v2050_v43, %v4336_v7  ;;  %v2444_v60 = vrot.slane %v2442_v14, 3  ;;  %v2447_v57 = vrot.slane %v2445_v3, 4  ;;  %vm1795_vm5 = vmpackc.low %vm5279_vm7, %vm5279_vm7  ;;  %v2685_v43 = vld [vmem:[#allocation2 + $0xc] sm:$0xf] }
 0x142   : > { %vm5283_vm2 = vmpackc.low %vm2054_vm13, %vm2053_vm0  ;;  %v2184_v45 = vshrl.u32 %v5218_v0, 16  ;;  %vm6083_vm0 = vcmask 31744   ;;  %v1653_v21 = vor.u32 %v1652_v50, %v1649_v4  ;;  %v1811_v36 = vsel %vm1795_vm5, 65537, %v6012_v49  ;;  %v2687_v4 = vld [vmem:[#allocation2 + $0x14] sm:$0xf] }
 0x143   : > { %v2090_v29 = vsel %vm5283_vm2, %v1744_v56, 0  ;;  %3955 = vmatmul.msk.bf16.vlgmr.msrb.gmra.mxu3 %vm6083_vm0, %v4043_v35  ;;  %v5296_v26 = vor.u32 %v2447_v57, %v2444_v60  ;;  %v1950_v52 = vshrl.u32 %v1811_v36, 16  ;;  %v1953_v14 = vshll.u32 %v1811_v36, 16  ;;  %v1745_v60 = vld [vmem:[#allocation2 + $0x3c] sm:$0xf] }
 0x144   : > { %v2126_v1 = vunpack.c.l.b16 %v2090_v29  ;;  %v2378_v3 = vpack.c.b16 %v2369_v20, %v2369_v20  ;;  %v2703_v0 = vsel %vm4584_vm3, %v2686_v27, 0  ;;  %vm6084_vm13 = vsmask.f32 4352 }
 0x145   : > { %v2449_v32 = vsel %vm6084_vm13, %v5213_v59, %v5296_v26  ;;  %vm2060_vm7 = vcmp.ne.s32.totalorder %v2056_v16, %v4333_v2  ;;  %vm2061_vm0 = vcmp.ne.s32.totalorder %v2057_v23, %v4336_v7  ;;  %vm6085_vm9 = vcmask 31744   ;;  %vm6086_vm5 = vmmov %vm6084_vm13 }
 0x146   : > { %v5301_v56 = vpack.c.b16 %v2126_v1, %v2125_v61  ;;  %3920 = vmatmul.msk.bf16.gmra.mxu2 %vm6085_vm9, %v2449_v32  ;;  %v1952_v49 = vrot.slane %v1950_v52, 7  ;;  %v2186_v50 = vor.u32 %v2184_v45, %v5239_v31  ;;  %v2702_v61 = vsel %vm4536_vm1, %v2685_v43, 0  ;;  %vm5317_vm13 = vmpackc.low %vm2061_vm0, %vm2060_vm7  ;;  %v1493_v1 = vpop.f32.mrf.mxu1 }
 0x147   : > { %v2705_v35 = vsel %vm4708_vm11, %v2688_v33, 0  ;;  %v1654_v59 = vsel %vm6086_vm5, %v5248_v54, %v1653_v21  ;;  %v2739_v23 = vunpack.c.l.b16 %v2703_v0  ;;  %v2451_v31 = vshrl.u32 %v2378_v3, 16  ;;  %v1746_v0 = vld [vmem:[#allocation2 + $0x40] sm:$0xf] }
 0x148   : > { %v2188_v20 = vshll.u32 %v5301_v56, 16  ;;  %v1955_v57 = vor.u32 %v1953_v14, %v1952_v49  ;;  %v2454_v29 = vshll.u32 %v2378_v3, 16  ;;  %vm6089_vm9 = vnez %v5953_v11 }
 0x149   : > { %v2704_v45 = vsel %vm6089_vm9, %v2687_v4, 0  ;;  %v2738_v43 = vunpack.c.l.b16 %v2702_v61  ;;  %v2741_v54 = vunpack.c.l.b16 %v2705_v35  ;;  %v1957_v21 = vrot.slane %v1952_v49, 4  ;;  %v3325_v49 = vld [vmem:[#allocation2 + $0x54] sm:$0x1] }
 0x14a   : > { %v2190_v27 = vrot.slane %v2188_v20, 1  ;;  %v1956_v36 = vsel %vm4416_vm12, %v4405_v39, %v1955_v57  ;;  %vm6090_vm5 = vcmask 31744   ;;  %vm6091_vm7 = vsmask.f32 7424 }
 0x14b   : > { %v2063_v14 = vunpack.c.l.b16 %v1956_v36  ;;  %v2064_v33 = vunpack.c.h.b16 %v1956_v36  ;;  %v2091_v3 = vsel %vm5317_vm13, %v1745_v60, 0  ;;  %vm6092_vm0 = vmmov %vm6090_vm5  ;;  %v2740_v32 = vunpack.c.l.b16 %v2704_v45 }
 0x14c   : > { %3903 = vmatmul.msk.bf16.gmra.mxu0 %vm6090_vm5, %v1654_v59  ;;  %v2191_v52 = vsel %vm6091_vm7, %v2186_v50, %v2190_v27  ;;  %v2755_v4 = vpack.c.b16 %v2739_v23, %v2738_v43  ;;  %v2453_v39 = vrot.slane %v2451_v31, 3  ;;  %v2456_v47 = vrot.slane %v2454_v29, 4  ;;  %v4044_v23 = vld [vmem:[#allocation2 + $0x14] sm:$0xff]  ;;  %v1691_v29 = vpop.f32.mrf.mxu0  ;;  %vm6095_vm7 = vmmov %vm6092_vm0 }
 0x14d   : > { %3910 = vmatmul.msk.bf16.gmra.mxu1 %vm6092_vm0, %v2191_v52  ;;  %vm2067_vm4 = vcmp.ne.s32.totalorder %v2063_v14, %v4333_v2  ;;  %vm2068_vm12 = vcmp.ne.s32.totalorder %v2064_v33, %v4336_v7  ;;  %v2127_v50 = vunpack.c.l.b16 %v2091_v3  ;;  %v5337_v20 = vpack.c.b16 %v2741_v54, %v2740_v32  ;;  %v2690_v33 = vld [vmem:[#allocation2 + $0x20] sm:$0xf]  ;;  %vm6099_vm11 = vmmov %vm6095_vm7 }
 0x14e   : > { %vm5333_vm9 = vmpackc.low %vm2068_vm12, %vm2067_vm4  ;;  %v2070_v61 = vunpack.c.l.b16 %v1957_v21  ;;  %v2071_v35 = vunpack.c.h.b16 %v1957_v21  ;;  %v2767_v57 = vshll.u32 %v2755_v4, 16  ;;  %v2457_v45 = vor.u32 %v2456_v47, %v2453_v39  ;;  %v1496_v36 = vpop.f32.mrf.mxu1  ;;  %v2689_v39 = vld [vmem:[#allocation2 + $0x1c] sm:$0xf] }
 0x14f   : > { %v2092_v59 = vsel %vm5333_vm9, %v1746_v0, 0  ;;  %v2772_v31 = vshll.u32 %v5337_v20, 16  ;;  %v2192_v54 = vshrl.u32 %v5301_v56, 16  ;;  %v5347_v21 = vadd.f32 %v1691_v29, %v5287_v19  ;;  %v1747_v0 = vld [vmem:[#allocation2 + $0x44] sm:$0x1] }
 0x150   : > { %v2128_v60 = vunpack.c.l.b16 %v2092_v59  ;;  %vm2074_vm4 = vcmp.ne.s32.totalorder %v2070_v61, %v4333_v2  ;;  %vm2075_vm5 = vcmp.ne.s32.totalorder %v2071_v35, %v4336_v7  ;;  %v2769_v14 = vrot.slane %v2767_v57, 1 }
 0x151   : > { %vm6096_vm0 = vsmask.f32 4352  ;;  %vm5351_vm12 = vmpackc.low %vm2075_vm5, %vm2074_vm4  ;;  %v2765_v2 = vshrl.u32 %v2755_v4, 16  ;;  %v2774_v7 = vrot.slane %v2772_v31, 1  ;;  %v2194_v56 = vor.u32 %v2192_v54, %v2190_v27  ;;  %v4045_v54 = vld [vmem:[#allocation2 + $0x1c] sm:$0xff] }
 0x152   : > { %v2137_v43 = vpack.c.b16 %v2128_v60, %v2127_v50  ;;  %v2458_v3 = vsel %vm6096_vm0, %v5296_v26, %v2457_v45  ;;  %v2707_v19 = vsel %vm4911_vm15, %v2690_v33, 0  ;;  %v2093_v61 = vsel %vm5351_vm12, %v1747_v0, 0  ;;  %vm6102_vm5 = vmmov %vm6095_vm7 }
 0x153   : > { %3956 = vmatmul.msk.bf16.gmra.mxu3 %vm6095_vm7, %v4044_v23  ;;  %v2770_v50 = vor.u32 %v2769_v14, %v2765_v2  ;;  %v2706_v26 = vsel %vm4880_vm6, %v2689_v39, 0  ;;  %vm6100_vm4 = vsmask.f32 7424  ;;  %v2743_v60 = vunpack.c.l.b16 %v2707_v19  ;;  %vm6103_vm7 = vmmov %vm6102_vm5  ;;  %v2926_v19 = vld [vmem:[#allocation2 + $0x18] sm:$0xf] }
 0x154   : > { %v2196_v52 = vshll.u32 %v2137_v43, 16  ;;  %v1693_v27 = vpop.f32.mrf.mxu0  ;;  %v2129_v57 = vunpack.c.l.b16 %v2093_v61  ;;  %v2742_v45 = vunpack.c.l.b16 %v2706_v26  ;;  %vm6104_vm0 = vmmov %vm6102_vm5  ;;  %v2200_v2 = vshrl.u32 %v2137_v43, 16  ;;  %v2692_v61 = vld [vmem:[#allocation2 + $0x28] sm:$0xf] }
 0x155   : > { %v2775_v35 = vsel %vm6100_vm4, %v2770_v50, %v2774_v7  ;;  %v5366_v23 = vadd.f32 %v1693_v27, %v1493_v1  ;;  %v4051_v1 = vld [vmem:[#allocation2 + $0x14] sm:$0xff] }
 0x156   : > { %3921 = vmatmul.msk.bf16.gmra.mxu2 %vm6099_vm11, %v2458_v3  ;;  %v2198_v47 = vrot.slane %v2196_v52, 1  ;;  %v1498_v59 = vpop.f32.mrf.mxu1  ;;  %vm6101_vm11 = vmmov %vm6100_vm4  ;;  %v5368_v31 = vpack.c.b16 %v2743_v60, %v2742_v45  ;;  %v2138_v29 = vpack.c.b16 %v2129_v57, %v2129_v57  ;;  %v2927_v52 = vld [vmem:[#allocation2 + $0x1c] sm:$0xf]  ;;  %v2925_v3 = vld [vmem:[#allocation2 + $0x14] sm:$0xf]  ;;  %vm6105_vm4 = vnez %v5945_v5 }
 0x157   : > { %v2944_v26 = vsel %vm6105_vm4, %v2927_v52, 0  ;;  %v2924_v60 = vld [vmem:[#allocation2 + $0x10] sm:$0x8]  ;;  %vm6110_vm4 = vnez %v5904_v34 }
 0x158   : > { %v2199_v4 = vsel %vm6101_vm11, %v2194_v56, %v2198_v47  ;;  %v2780_v33 = vshll.u32 %v5368_v31, 16  ;;  %v2204_v39 = vshll.u32 %v2138_v29, 16  ;;  %v2691_v56 = vld [vmem:[#allocation2 + $0x24] sm:$0xf]  ;;  %vm6106_vm11 = vmmov %vm6104_vm0  ;;  %v2202_v57 = vor.u32 %v2200_v2, %v2198_v47 }
 0x159   : > { %v2708_v27 = vsel %vm4972_vm8, %v2691_v56, 0  ;;  %v2980_v29 = vunpack.c.l.b16 %v2944_v26  ;;  %v4046_v26 = vld [vmem:[#allocation2 + $0x24] sm:$0xff] }
 0x15a   : > { %v2206_v45 = vrot.slane %v2204_v39, 1 }
 0x15c   : > { %3964 = vmatmul.msk.bf16.vlgmr.msrb.gmra.mxu0 %vm6102_vm5, %v2775_v35  ;;  %v1696_v0 = vpop.f32.mrf.mxu0  ;;  %v2776_v35 = vshrl.u32 %v5337_v20, 16  ;;  %vm6107_vm5 = vnez %v5920_v44  ;;  %v2744_v44 = vunpack.c.l.b16 %v2708_v27  ;;  %v2928_v27 = vld [vmem:[#allocation2 + $0x20] sm:$0xf] }
 0x15d   : > { %3911 = vmatmul.msk.bf16.gmra.mxu1 %vm6103_vm7, %v2199_v4  ;;  %v5372_v50 = vadd.f32 %v1696_v0, %v1496_v36  ;;  %v2782_v4 = vrot.slane %v2780_v33, 1  ;;  %v2942_v43 = vsel %vm6107_vm5, %v2925_v3, 0  ;;  %vm6108_vm7 = vnez %v5936_v46 }
 0x15e   : > { %v1501_v14 = vpop.f32.mrf.mxu1  ;;  %v2943_v36 = vsel %vm6108_vm7, %v2926_v19, 0  ;;  %v2778_v20 = vor.u32 %v2776_v35, %v2774_v7  ;;  %v2978_v52 = vunpack.c.l.b16 %v2942_v43  ;;  %vm6113_vm7 = vcmask 31744   ;;  %v2929_v43 = vld [vmem:[#allocation2 + $0x24] sm:$0xf] }
 0x15f   : > { %v2979_v33 = vunpack.c.l.b16 %v2943_v36 }
 0x161   : > { %v2995_v39 = vpack.c.b16 %v2980_v29, %v2979_v33  ;;  %v4052_v33 = vld [vmem:[#allocation2 + $0x1c] sm:$0xff] }
 0x163   : > { %3957 = vmatmul.msk.bf16.gmra.mxu3 %vm6104_vm0, %v4045_v54  ;;  %vm6109_vm0 = vnez %v6030_v8  ;;  %v2941_v54 = vsel %vm6110_vm4, %v2924_v60, 0  ;;  %vm6115_vm4 = vnez %v5960_v58 }
 0x164   : > { %v2709_v5 = vsel %vm6109_vm0, %v2692_v61, 0  ;;  %v1698_v47 = vpop.f32.mrf.mxu0  ;;  %v2977_v2 = vunpack.c.l.b16 %v2941_v54  ;;  %vm6114_vm0 = vmmov %vm6113_vm7  ;;  %v3015_v61 = vshll.u32 %v2995_v39, 16 }
 0x165   : > { %v2745_v3 = vunpack.c.l.b16 %v2709_v5  ;;  %v5392_v7 = vadd.f32 %v1698_v47, %v1498_v59 }
 0x166   : > { %4014 = vmatmul.msk.bf16.vlgmr.msra.gmra.mxu2 %vm6106_vm11, %v4051_v1  ;;  %vm6111_vm11 = vsmask.f32 7424  ;;  %v1503_v56 = vpop.f32.mrf.mxu1  ;;  %v2994_v34 = vpack.c.b16 %v2978_v52, %v2977_v2  ;;  %v3012_v1 = vshrl.u32 %v2995_v39, 16  ;;  %v3017_v29 = vrot.slane %v3015_v61, 4 }
 0x167   : > { %v2783_v0 = vsel %vm6111_vm11, %v2778_v20, %v2782_v4  ;;  %vm6112_vm5 = vmmov %vm6111_vm11  ;;  %v5394_v19 = vpack.c.b16 %v2745_v3, %v2744_v44  ;;  %v2693_v20 = vld [vmem:[#allocation2 + $0x2c] sm:$0xf]  ;;  %v2784_v52 = vshrl.u32 %v5368_v31, 16  ;;  %v2945_v44 = vsel %vm6115_vm4, %v2928_v27, 0 }
 0x168   : > { %v2207_v46 = vsel %vm6112_vm5, %v2202_v57, %v2206_v45  ;;  %v3004_v35 = vshrl.u32 %v2994_v34, 16  ;;  %v3007_v60 = vshll.u32 %v2994_v34, 16  ;;  %v3014_v59 = vrot.slane %v3012_v1, 3  ;;  %vm6117_vm5 = vmmov %vm6114_vm0 }
 0x169   : > { %v2788_v57 = vshll.u32 %v5394_v19, 16  ;;  %vm6116_vm11 = vnez %v5972_v28  ;;  %v2786_v47 = vor.u32 %v2784_v52, %v2782_v4  ;;  %v2981_v1 = vunpack.c.l.b16 %v2945_v44  ;;  %v4047_v52 = vld [vmem:[#allocation2 + $0x2c] sm:$0xff] }
 0x16a   : > { %v2946_v3 = vsel %vm6116_vm11, %v2929_v43, 0  ;;  %v3018_v34 = vor.u32 %v3017_v29, %v3014_v59  ;;  %vm6120_vm4 = vsmask.f32 7424  ;;  %vm6121_vm11 = vmmov %vm6117_vm5  ;;  %v2792_v44 = vshrl.u32 %v5394_v19, 16 }
 0x16b   : > { %v2790_v2 = vrot.slane %v2788_v57, 1  ;;  %v2982_v58 = vunpack.c.l.b16 %v2946_v3 }
 0x16c   : > { %3965 = vmatmul.msk.bf16.gmra.mxu0 %vm6113_vm7, %v2783_v0  ;;  %v1701_v45 = vpop.f32.mrf.mxu0  ;;  %v2694_v0 = vld [vmem:[#allocation2 + $0x30] sm:$0xf]  ;;  %vm6118_vm7 = vnez %v6036_v48 }
 0x16d   : > { %3912 = vmatmul.msk.bf16.gmra.mxu1 %vm6114_vm0, %v2207_v46  ;;  %v5401_v54 = vadd.f32 %v1701_v45, %v1501_v14  ;;  %v3006_v46 = vrot.slane %v3004_v35, 3  ;;  %v1506_v39 = vpop.f32.mrf.mxu3  ;;  %v2710_v14 = vsel %vm6118_vm7, %v2693_v20, 0  ;;  %v2791_v28 = vsel %vm6120_vm4, %v2786_v47, %v2790_v2  ;;  %vm6123_vm7 = vmmov %vm6121_vm11  ;;  %v2930_v20 = vld [vmem:[#allocation2 + $0x28] sm:$0xf] }
 0x16e   : > { %v2244_v36 = vpop.f32.mrf.mxu1  ;;  %v2746_v35 = vunpack.c.l.b16 %v2710_v14  ;;  %v2996_v43 = vpack.c.b16 %v2982_v58, %v2981_v1  ;;  %vm6124_vm4 = vnez %v5982_v62  ;;  %v4053_v1 = vld [vmem:[#allocation2 + $0x24] sm:$0xff]  ;;  %v2695_v58 = vld [vmem:[#allocation2 + $0x34] sm:$0xf] }
 0x16f   : > { %v5398_v5 = vadd.f32 %v2244_v36, %v5347_v21  ;;  %v3009_v21 = vrot.slane %v3007_v60, 4  ;;  %v2947_v14 = vsel %vm6124_vm4, %v2930_v20, 0  ;;  %vm6128_vm4 = vsmask.f32 7424 }
 0x170   : > { %v3021_v59 = vshrl.u32 %v2996_v43, 16  ;;  %v3024_v29 = vshll.u32 %v2996_v43, 16 }
 0x171   : > { %v3010_v61 = vor.u32 %v3009_v21, %v3006_v46 }
 0x172   : > { %v3026_v47 = vrot.slane %v3024_v29, 4 }
 0x173   : > { %3958 = vmatmul.msk.bf16.gmra.mxu3 %vm6114_vm0, %v4046_v26  ;;  %vm6119_vm0 = vnez %v6047_v41 }
 0x174   : > { %v2711_v31 = vsel %vm6119_vm0, %v2694_v0, 0  ;;  %v1703_v27 = vpop.f32.mrf.mxu0  ;;  %vm6130_vm0 = vsmask.f32 4352 }
 0x175   : > { %v2747_v4 = vunpack.c.l.b16 %v2711_v31  ;;  %v5419_v36 = vadd.f32 %v1703_v27, %v1503_v56  ;;  %v1508_v57 = vpop.f32.mrf.mxu3  ;;  %v3023_v56 = vrot.slane %v3021_v59, 3 }
 0x176   : > { %4015 = vmatmul.msk.bf16.gmra.mxu2 %vm6117_vm5, %v4052_v33  ;;  %v5414_v26 = vpop.f32.mrf.mxu1  ;;  %vm6122_vm5 = vsmask.f32 4352  ;;  %v2931_v33 = vld [vmem:[#allocation2 + $0x2c] sm:$0xf] }
 0x177   : > { %v3019_v60 = vsel %vm6122_vm5, %v3010_v61, %v3018_v34  ;;  %v5421_v45 = vpack.c.b16 %v2747_v4, %v2746_v35  ;;  %v2696_v61 = vld [vmem:[#allocation2 + $0x38] sm:$0xf]  ;;  %v2794_v35 = vor.u32 %v2792_v44, %v2790_v2  ;;  %vm6126_vm5 = vmmov %vm6123_vm7  ;;  %v3027_v27 = vor.u32 %v3026_v47, %v3023_v56 }
 0x179   : > { %v2796_v3 = vshll.u32 %v5421_v45, 16  ;;  %v3028_v2 = vsel %vm6130_vm0, %v3018_v34, %v3027_v27  ;;  %vm6131_vm0 = vmmov %vm6126_vm5 }
 0x17c   : > { %3966 = vmatmul.msk.bf16.gmra.mxu0 %vm6121_vm11, %v2791_v28  ;;  %v1706_v46 = vpop.f32.mrf.mxu0  ;;  %vm6125_vm11 = vnez %v5992_v51  ;;  %v5435_v28 = vpop.f32.mrf.mxu2 }
 0x17d   : > { %3973 = vmatmul.msk.bf16.vlgmr.msrb.gmra.mxu1 %vm6123_vm7, %v3019_v60  ;;  %v5431_v31 = vadd.f32 %v1706_v46, %v1506_v39  ;;  %v2948_v19 = vsel %vm6125_vm11, %v2931_v33, 0  ;;  %v2983_v60 = vunpack.c.l.b16 %v2947_v14  ;;  %v2713_v39 = vsel %vm5197_vm10, %v2696_v61, 0  ;;  %vm6129_vm11 = vmmov %vm6126_vm5  ;;  %v2932_v14 = vld [vmem:[#allocation2 + $0x30] sm:$0xf] }
 0x17e   : > { %v2249_v0 = vpop.f32.mrf.mxu1  ;;  %v2984_v43 = vunpack.c.l.b16 %v2948_v19  ;;  %v2749_v20 = vunpack.c.l.b16 %v2713_v39  ;;  %v2800_v61 = vshrl.u32 %v5421_v45, 16 }
 0x17f   : > { %v5426_v21 = vadd.f32 %v2249_v0, %v5372_v50  ;;  %v2798_v50 = vrot.slane %v2796_v3, 1  ;;  %v1511_v4 = vpop.f32.mrf.mxu3 }
 0x180   : > { %v2997_v33 = vpack.c.b16 %v2984_v43, %v2983_v60 }
 0x181   : > { %v2799_v59 = vsel %vm6128_vm4, %v2794_v35, %v2798_v50  ;;  %vm6132_vm4 = vnez %v6003_v24 }
 0x182   : > { %v3030_v46 = vshrl.u32 %v2997_v33, 16  ;;  %v3033_v56 = vshll.u32 %v2997_v33, 16  ;;  %v2949_v60 = vsel %vm6132_vm4, %v2932_v14, 0 }
 0x183   : > { %3959 = vmatmul.msk.bf16.gmra.mxu3 %vm6123_vm7, %v4047_v52  ;;  %vm6127_vm7 = vnez %v6051_v17 }
 0x184   : > { %v2712_v62 = vsel %vm6127_vm7, %v2695_v58, 0  ;;  %v1708_v52 = vpop.f32.mrf.mxu0  ;;  %v5452_v47 = vpop.f32.mrf.mxu2  ;;  %v4048_v58 = vld [vmem:[#allocation2 + $0x34] sm:$0xff]  ;;  %v3032_v35 = vrot.slane %v3030_v46, 3  ;;  %v2985_v46 = vunpack.c.l.b16 %v2949_v60 }
 0x185   : > { %v2748_v29 = vunpack.c.l.b16 %v2712_v62  ;;  %v5448_v0 = vadd.f32 %v1708_v52, %v1508_v57  ;;  %v3035_v57 = vrot.slane %v3033_v56, 4 }
 0x186   : > { %4016 = vmatmul.msk.bf16.gmra.mxu2 %vm6126_vm5, %v4053_v1  ;;  %v5443_v51 = vpop.f32.mrf.mxu1  ;;  %v2933_v1 = vld [vmem:[#allocation2 + $0x34] sm:$0xf] }
 0x187   : > { %v1513_v44 = vpop.f32.mrf.mxu3  ;;  %v5450_v3 = vpack.c.b16 %v2749_v20, %v2748_v29  ;;  %v2697_v29 = vld [vmem:[#allocation2 + $0x3c] sm:$0xf]  ;;  %v2698_v20 = vld [vmem:[#allocation2 + $0x40] sm:$0xf]  ;;  %v3036_v56 = vor.u32 %v3035_v57, %v3032_v35 }
 0x189   : > { %v2804_v34 = vshll.u32 %v5450_v3, 16 }
 0x18b   : > { %v2806_v52 = vrot.slane %v2804_v34, 1 }
 0x18c   : > { %3967 = vmatmul.msk.bf16.gmra.mxu0 %vm6129_vm11, %v2799_v59  ;;  %vm6133_vm11 = vnez %v6001_v15  ;;  %v4054_v59 = vld [vmem:[#allocation2 + $0x2c] sm:$0xff]  ;;  %v2714_v15 = vsel %vm5255_vm14, %v2697_v29, 0  ;;  %v5471_v14 = vpop.f32.mrf.mxu2  ;;  %v2934_v29 = vld [vmem:[#allocation2 + $0x38] sm:$0xf] }
 0x18d   : > { %3974 = vmatmul.msk.bf16.gmra.mxu1 %vm6126_vm5, %v3028_v2  ;;  %v2950_v62 = vsel %vm6133_vm11, %v2933_v1, 0  ;;  %v2802_v2 = vor.u32 %v2800_v61, %v2798_v50  ;;  %vm6134_vm5 = vmmov %vm6131_vm0  ;;  %vm6137_vm11 = vsmask.f32 4352 }
 0x18e   : > { %v2986_v24 = vunpack.c.l.b16 %v2950_v62  ;;  %vm6136_vm4 = vmmov %vm6134_vm5  ;;  %v3037_v61 = vsel %vm6137_vm11, %v3027_v27, %v3036_v56  ;;  %vm6141_vm11 = vnez %v6026_v22 }
 0x18f   : > { %v1711_v19 = vpop.f32.mrf.mxu0 }
 0x190   : > { %v5461_v39 = vadd.f32 %v1711_v19, %v1511_v4  ;;  %v2715_v4 = vsel %vm5283_vm2, %v2698_v20, 0  ;;  %v2998_v50 = vpack.c.b16 %v2986_v24, %v2985_v46  ;;  %v4049_v20 = vld [vmem:[#allocation2 + $0x3c] sm:$0xff]  ;;  %v2808_v46 = vshrl.u32 %v5450_v3, 16 }
 0x191   : > { %v2254_v43 = vpop.f32.mrf.mxu1  ;;  %v1516_v33 = vpop.f32.mrf.mxu3 }
 0x192   : > { %v5464_v45 = vadd.f32 %v2254_v43, %v5401_v54  ;;  %v2750_v54 = vunpack.c.l.b16 %v2714_v15  ;;  %v3039_v43 = vshrl.u32 %v2998_v50, 16 }
 0x193   : > { %3960 = vmatmul.msk.bf16.gmra.mxu3 %vm6131_vm0, %v4048_v58  ;;  %vm6135_vm0 = vsmask.f32 7424  ;;  %v2751_v58 = vunpack.c.l.b16 %v2715_v4 }
 0x194   : > { %v2807_v1 = vsel %vm6135_vm0, %v2802_v2, %v2806_v52  ;;  %v2935_v2 = vld [vmem:[#allocation2 + $0x3c] sm:$0xf]  ;;  %v3041_v24 = vrot.slane %v3039_v43, 3  ;;  %vm6139_vm0 = vmmov %vm6136_vm4  ;;  %v5489_v4 = vpop.f32.mrf.mxu2 }
 0x195   : > { %v5482_v62 = vpack.c.b16 %v2751_v58, %v2750_v54  ;;  %v4055_v58 = vld [vmem:[#allocation2 + $0x34] sm:$0xff]  ;;  %v2952_v3 = vsel %vm6141_vm11, %v2935_v2, 0  ;;  %vm6145_vm11 = vsmask.f32 4352 }
 0x196   : > { %4017 = vmatmul.msk.bf16.gmra.mxu2 %vm6134_vm5, %v4054_v59  ;;  %vm6138_vm5 = vmmov %vm6136_vm4  ;;  %v3042_v59 = vshll.u32 %v2998_v50, 16  ;;  %v2699_v50 = vld [vmem:[#allocation2 + $0x44] sm:$0xf]  ;;  %v2988_v22 = vunpack.c.l.b16 %v2952_v3 }
 0x197   : > { %v1713_v34 = vpop.f32.mrf.mxu0  ;;  %v2812_v27 = vshll.u32 %v5482_v62, 16 }
 0x198   : > { %v5477_v19 = vadd.f32 %v1713_v34, %v1513_v44  ;;  %v3044_v15 = vrot.slane %v3042_v59, 4 }
 0x199   : > { %v2256_v35 = vpop.f32.mrf.mxu1  ;;  %v1518_v60 = vpop.f32.mrf.mxu3  ;;  %v2814_v43 = vrot.slane %v2812_v27, 1 }
 0x19a   : > { %v5480_v57 = vadd.f32 %v2256_v35, %v5419_v36  ;;  %v2810_v35 = vor.u32 %v2808_v46, %v2806_v52  ;;  %v5498_v59 = vor.u32 %v3044_v15, %v3041_v24  ;;  %v3310_v52 = vld [vmem:[#allocation2 + $0x18] sm:$0xf]  ;;  %v3309_v15 = vld [vmem:[#allocation2 + $0x14] sm:$0xf] }
 0x19b   : > { %v3327_v3 = vsel %vm4584_vm3, %v3310_v52, 0  ;;  %vm6148_vm3 = vnez %v5953_v11  ;;  %v2937_v52 = vld [vmem:[#allocation2 + $0x44] sm:$0xf]  ;;  %v2701_v11 = vld [vmem:[#allocation2 + $0x4c] sm:$0x1] }
 0x19c   : > { %3968 = vmatmul.msk.bf16.gmra.mxu0 %vm6136_vm4, %v2807_v1  ;;  %vm6140_vm4 = vnez %v6022_v10  ;;  %v3046_v46 = vsel %vm6145_vm11, %v3036_v56, %v5498_v59  ;;  %v2285_v56 = vadd.f32 %v5414_v26, %v5366_v23  ;;  %v3363_v30 = vunpack.c.l.b16 %v3327_v3 }
 0x19d   : > { %3975 = vmatmul.msk.bf16.gmra.mxu1 %vm6138_vm5, %v3037_v61  ;;  %v2951_v36 = vsel %vm6140_vm4, %v2934_v29, 0  ;;  %v2700_v61 = vld [vmem:[#allocation2 + $0x48] sm:$0xf]  ;;  %vm6142_vm5 = vmmov %vm6139_vm0  ;;  %vm6151_vm11 = vnez %v6045_v40 }
 0x19e   : > { %v2717_v29 = vsel %vm5333_vm9, %v2700_v61, 0  ;;  %vm6144_vm4 = vmmov %vm6142_vm5  ;;  %v5540_v18 = vadd.f32 %v5452_v47, %v2285_v56 }
 0x1a1   : > { %v1716_v44 = vpop.f32.mrf.mxu0 }
 0x1a2   : > { %v5491_v1 = vadd.f32 %v1716_v44, %v1516_v33  ;;  %v2716_v33 = vsel %vm5317_vm13, %v2699_v50, 0  ;;  %v2753_v44 = vunpack.c.l.b16 %v2717_v29  ;;  %v5516_v50 = vadd.f32 %v5435_v28, %v5398_v5  ;;  %v3311_v29 = vld [vmem:[#allocation2 + $0x1c] sm:$0xf] }
 0x1a3   : > { %3961 = vmatmul.msk.bf16.gmra.mxu3 %vm6139_vm0, %v4049_v20  ;;  %v2259_v54 = vpop.f32.mrf.mxu1  ;;  %v2987_v20 = vunpack.c.l.b16 %v2951_v36  ;;  %vm6143_vm0 = vsmask.f32 7424  ;;  %v3312_v36 = vld [vmem:[#allocation2 + $0x20] sm:$0xf]  ;;  %v3326_v5 = vsel %vm4536_vm1, %v3309_v15, 0  ;;  %v3328_v23 = vsel %vm6148_vm3, %v3311_v29, 0  ;;  %vm6149_vm1 = vmmov %vm6144_vm4 }
 0x1a4   : > { %v5496_v34 = vadd.f32 %v2259_v54, %v5431_v31  ;;  %v5501_v10 = vpop.f32.mrf.mxu3  ;;  %v2815_v2 = vsel %vm6143_vm0, %v2810_v35, %v2814_v43  ;;  %v2752_v31 = vunpack.c.l.b16 %v2716_v33  ;;  %v5525_v35 = vpop.f32.mrf.mxu2  ;;  %vm6147_vm0 = vnez %v5963_v25  ;;  %vm6154_vm3 = vmmov %vm6149_vm1 }
 0x1a5   : > { %v2999_v24 = vpack.c.b16 %v2988_v22, %v2987_v20  ;;  %v4050_v22 = vld [vmem:[#allocation2 + $0x44] sm:$0xff]  ;;  %v3362_v26 = vunpack.c.l.b16 %v3326_v5  ;;  %v3364_v15 = vunpack.c.l.b16 %v3328_v23 }
 0x1a6   : > { %4018 = vmatmul.msk.bf16.gmra.mxu2 %vm6142_vm5, %v4055_v58  ;;  %vm6146_vm5 = vmmov %vm6144_vm4 }
 0x1a7   : > { %v3048_v28 = vshrl.u32 %v2999_v24, 16  ;;  %v3051_v20 = vshll.u32 %v2999_v24, 16  ;;  %v4056_v24 = vld [vmem:[#allocation2 + $0x3c] sm:$0xff] }
 0x1a9   : > { %v1718_v27 = vpop.f32.mrf.mxu0  ;;  %v3050_v25 = vrot.slane %v3048_v28, 3 }
 0x1aa   : > { %v5512_v54 = vadd.f32 %v1718_v27, %v1518_v60  ;;  %v5529_v60 = vpack.c.b16 %v2753_v44, %v2752_v31  ;;  %v2816_v31 = vshrl.u32 %v5482_v62, 16  ;;  %v3053_v27 = vrot.slane %v3051_v20, 4 }
 0x1ab   : > { %v2261_v58 = vpop.f32.mrf.mxu1  ;;  %v2954_v62 = vsel %vm6151_vm11, %v2937_v52, 0  ;;  %v3313_v52 = vld [vmem:[#allocation2 + $0x24] sm:$0xf]  ;;  %vm6159_vm11 = vnez %v6060_v6 }
 0x1ac   : > { %3969 = vmatmul.msk.bf16.gmra.mxu0 %vm6144_vm4, %v2815_v2  ;;  %v5519_v61 = vadd.f32 %v2261_v58, %v5448_v0  ;;  %v5527_v33 = vpop.f32.mrf.mxu3  ;;  %v3329_v0 = vsel %vm6147_vm0, %v3312_v36, 0  ;;  %v2936_v2 = vld [vmem:[#allocation2 + $0x40] sm:$0xf]  ;;  %v2820_v44 = vshll.u32 %v5529_v60, 16  ;;  %v3379_v58 = vpack.c.b16 %v3363_v30, %v3362_v26  ;;  %v5557_v40 = vpop.f32.mrf.mxu2 }
 0x1ad   : > { %3976 = vmatmul.msk.bf16.gmra.mxu1 %vm6146_vm5, %v3046_v46  ;;  %v3365_v46 = vunpack.c.l.b16 %v3329_v0  ;;  %vm6150_vm4 = vnez %v6039_v53  ;;  %v2818_v47 = vor.u32 %v2816_v31, %v2814_v43  ;;  %vm6152_vm5 = vmmov %vm6149_vm1  ;;  %v5553_v20 = vor.u32 %v3053_v27, %v3050_v25  ;;  %v3314_v31 = vld [vmem:[#allocation2 + $0x28] sm:$0xf] }
 0x1ae   : > { %v2953_v36 = vsel %vm6150_vm4, %v2936_v2, 0  ;;  %v2822_v56 = vrot.slane %v2820_v44, 1  ;;  %v2718_v53 = vsel %vm5351_vm12, %v2701_v11, 0  ;;  %v2990_v30 = vunpack.c.l.b16 %v2954_v62  ;;  %vm6156_vm4 = vmmov %vm6154_vm3 }
 0x1af   : > { %v5551_v28 = vpack.c.b16 %v3365_v46, %v3364_v15  ;;  %v2989_v0 = vunpack.c.l.b16 %v2953_v36  ;;  %v3391_v23 = vshll.u32 %v3379_v58, 16  ;;  %vm6153_vm0 = vsmask.f32 7424 }
 0x1b0   : > { %v2823_v43 = vsel %vm6153_vm0, %v2818_v47, %v2822_v56  ;;  %v2754_v2 = vunpack.c.l.b16 %v2718_v53  ;;  %v3330_v15 = vsel %vm4880_vm6, %v3313_v52, 0  ;;  %v3331_v11 = vsel %vm4911_vm15, %v3314_v31, 0  ;;  %vm6157_vm6 = vmmov %vm6153_vm0 }
 0x1b1   : > { %v3396_v26 = vshll.u32 %v5551_v28, 16  ;;  %v3000_v46 = vpack.c.b16 %v2990_v30, %v2989_v0  ;;  %v3393_v25 = vrot.slane %v3391_v23, 1  ;;  %v2287_v36 = vadd.f32 %v5443_v51, %v5392_v7  ;;  %vm6158_vm15 = vmmov %vm6154_vm3 }
 0x1b2   : > { %v2763_v47 = vpack.c.b16 %v2754_v2, %v2754_v2  ;;  %v3366_v13 = vunpack.c.l.b16 %v3330_v15  ;;  %v3367_v30 = vunpack.c.l.b16 %v3331_v11  ;;  %v2824_v51 = vshrl.u32 %v5529_v60, 16  ;;  %vm6161_vm0 = vmmov %vm6154_vm3 }
 0x1b3   : > { %3962 = vmatmul.msk.bf16.gmra.mxu3 %vm6149_vm1, %v4050_v22  ;;  %vm6155_vm1 = vsmask.f32 4352  ;;  %v3057_v53 = vshrl.u32 %v3000_v46, 16  ;;  %v2955_v52 = vsel %vm6159_vm11, %v2938_v42, 0 }
 0x1b4   : > { %v3055_v44 = vsel %vm6155_vm1, %v5498_v59, %v5553_v20  ;;  %v5585_v23 = vpop.f32.mrf.mxu2  ;;  %vm6163_vm1 = vmmov %vm6161_vm0 }
 0x1b6   : > { %v2264_v3 = vpop.f32.mrf.mxu1  ;;  %4019 = vmatmul.msk.bf16.gmra.mxu2 %vm6152_vm5, %v4056_v24  ;;  %v1526_v5 = vpop.f32.mrf.mxu3  ;;  %v3389_v24 = vshrl.u32 %v3379_v58, 16  ;;  %vm6160_vm5 = vnez %v6065_v38 }
 0x1b7   : > { %v5548_v29 = vadd.f32 %v2264_v3, %v5461_v39  ;;  %v3398_v3 = vrot.slane %v3396_v26, 1  ;;  %v3059_v26 = vrot.slane %v3057_v53, 3 }
 0x1b8   : > { %v3394_v0 = vor.u32 %v3393_v25, %v3389_v24  ;;  %v3381_v25 = vpack.c.b16 %v3367_v30, %v3366_v13  ;;  %v2991_v24 = vunpack.c.l.b16 %v2955_v52 }
 0x1b9   : > { %v1721_v22 = vpop.f32.mrf.mxu0 }
 0x1ba   : > { %v5560_v39 = vadd.f32 %v1721_v22, %v5501_v10  ;;  %v5571_v10 = vadd.f32 %v5471_v14, %v5426_v21  ;;  %v3060_v21 = vshll.u32 %v3000_v46, 16  ;;  %v2939_v22 = vld [vmem:[#allocation2 + $0x4c] sm:$0xf]  ;;  %v3399_v7 = vsel %vm6157_vm6, %v3394_v0, %v3398_v3  ;;  %v3316_v0 = vld [vmem:[#allocation2 + $0x30] sm:$0xf] }
 0x1bb   : > { %v2956_v31 = vsel %vm6160_vm5, %v2939_v22, 0  ;;  %vm6169_vm5 = vnez %v6068_v63  ;;  %v2541_v63 = vadd.f32 %v5585_v23, %v5496_v34 }
 0x1bc   : > { %3970 = vmatmul.msk.bf16.gmra.mxu0 %vm6154_vm3, %v2823_v43  ;;  %v5590_v43 = vadd.f32 %v5489_v4, %v2287_v36  ;;  %v3062_v2 = vrot.slane %v3060_v21, 4  ;;  %v2992_v15 = vunpack.c.l.b16 %v2956_v31  ;;  %vm6162_vm3 = vmmov %vm6157_vm6  ;;  %v4058_v31 = vld [vmem:[#allocation2 + $0x4c] sm:$0xff] }
 0x1bd   : > { %3977 = vmatmul.msk.bf16.gmra.mxu1 %vm6156_vm4, %v3055_v44  ;;  %v2826_v44 = vor.u32 %v2824_v51, %v2822_v56  ;;  %v3404_v56 = vshll.u32 %v3381_v25, 16  ;;  %vm6164_vm4 = vsmask.f32 4352  ;;  %vm6165_vm6 = vmmov %vm6161_vm0 }
 0x1be   : > { %v2266_v27 = vpop.f32.mrf.mxu1  ;;  %v1528_v62 = vpop.f32.mrf.mxu3  ;;  %v3001_v21 = vpack.c.b16 %v2992_v15, %v2991_v24  ;;  %vm6167_vm11 = vmmov %vm6162_vm3 }
 0x1bf   : > { %v5580_v59 = vadd.f32 %v2266_v27, %v5477_v19  ;;  %v2828_v19 = vshll.u32 %v2763_v47, 16  ;;  %v3063_v27 = vor.u32 %v3062_v2, %v3059_v26  ;;  %v3406_v42 = vrot.slane %v3404_v56, 1 }
 0x1c0   : > { %v3069_v51 = vshll.u32 %v3001_v21, 16 }
 0x1c1   : > { %v1723_v14 = vpop.f32.mrf.mxu0  ;;  %v2830_v46 = vrot.slane %v2828_v19, 1  ;;  %v3064_v53 = vsel %vm6164_vm4, %v5553_v20, %v3063_v27  ;;  %v3066_v20 = vshrl.u32 %v3001_v21, 16  ;;  %v3318_v21 = vld [vmem:[#allocation2 + $0x38] sm:$0xf] }
 0x1c2   : > { %v5583_v58 = vadd.f32 %v1723_v14, %v5527_v33  ;;  %v4057_v33 = vld [vmem:[#allocation2 + $0x44] sm:$0xff]  ;;  %v2512_v14 = vpop.f32.mrf.mxu2 }
 0x1c3   : > { %4023 = vmatmul.msk.bf16.vlgmr.msra.gmra.mxu3 %vm6158_vm15, %v3399_v7  ;;  %v2831_v38 = vsel %vm6162_vm3, %v2826_v44, %v2830_v46  ;;  %vm6166_vm15 = vnez %v6030_v8  ;;  %v3068_v52 = vrot.slane %v3066_v20, 3  ;;  %v3071_v8 = vrot.slane %v3069_v51, 4  ;;  %vm6170_vm3 = vmmov %vm6164_vm4 }
 0x1c4   : > { %v3333_v19 = vsel %vm6166_vm15, %v3316_v0, 0  ;;  %vm6172_vm4 = vnez %v6036_v48  ;;  %vm6174_vm15 = vmmov %vm6167_vm11  ;;  %v2542_v48 = vadd.f32 %v2512_v14, %v5519_v61  ;;  %v3319_v14 = vld [vmem:[#allocation2 + $0x3c] sm:$0xf] }
 0x1c6   : > { %4020 = vmatmul.msk.bf16.gmra.mxu2 %vm6161_vm0, %v4057_v33  ;;  %v2629_v60 = vpop.f32.mrf.mxu3 }
 0x1c7   : > { %v5599_v4 = vadd.f32 %v2629_v60, %v5516_v50  ;;  %v3315_v50 = vld [vmem:[#allocation2 + $0x2c] sm:$0xf]  ;;  %v3072_v60 = vor.u32 %v3071_v8, %v3068_v52  ;;  %v3320_v8 = vld [vmem:[#allocation2 + $0x40] sm:$0xf] }
 0x1c8   : > { %v3332_v22 = vsel %vm4972_vm8, %v3315_v50, 0  ;;  %vm6168_vm8 = vmmov %vm6161_vm0 }
 0x1c9   : > { %v1726_v11 = vpop.f32.mrf.mxu0  ;;  %v3368_v33 = vunpack.c.l.b16 %v3332_v22 }
 0x1ca   : > { %v5601_v36 = vadd.f32 %v1726_v11, %v1526_v5  ;;  %v2269_v6 = vpop.f32.mrf.mxu1  ;;  %v3400_v5 = vshrl.u32 %v5551_v28, 16  ;;  %v2515_v44 = vpop.f32.mrf.mxu2 }
 0x1cb   : > { %v5604_v47 = vadd.f32 %v2269_v6, %v5491_v1  ;;  %v2539_v1 = vadd.f32 %v5525_v35, %v5464_v45  ;;  %v2940_v45 = vld [vmem:[#allocation2 + $0x50] sm:$0xf]  ;;  %v2543_v52 = vadd.f32 %v2515_v44, %v5548_v29 }
 0x1cc   : > { %3971 = vmatmul.msk.bf16.gmra.mxu0 %vm6163_vm1, %v2831_v38  ;;  %v3402_v30 = vor.u32 %v3400_v5, %v3398_v3  ;;  %v3369_v3 = vunpack.c.l.b16 %v3333_v19  ;;  %v3073_v38 = vsel %vm6170_vm3, %v3063_v27, %v3072_v60  ;;  %vm6171_vm1 = vmmov %vm6161_vm0 }
 0x1cd   : > { %3978 = vmatmul.msk.bf16.gmra.mxu1 %vm6165_vm6, %v3064_v53  ;;  %v3317_v53 = vld [vmem:[#allocation2 + $0x34] sm:$0xf]  ;;  %vm6173_vm6 = vnez %v6047_v41 }
 0x1ce   : > { %v2631_v13 = vpop.f32.mrf.mxu3  ;;  %v3407_v12 = vsel %vm6167_vm11, %v3402_v30, %v3406_v42  ;;  %v3334_v0 = vsel %vm6172_vm4, %v3317_v53, 0  ;;  %vm6175_vm11 = vmmov %vm6161_vm0  ;;  %vm6187_vm4 = vcmask 64512  }
 0x1cf   : > { %v5617_v7 = vadd.f32 %v2631_v13, %v5540_v18  ;;  %v2540_v18 = vadd.f32 %v5557_v40, %v5480_v57  ;;  %v3408_v40 = vshrl.u32 %v3381_v25, 16  ;;  %v3370_v30 = vunpack.c.l.b16 %v3334_v0 }
 0x1d1   : > { %v1728_v26 = vpop.f32.mrf.mxu0 }
 0x1d2   : > { %v5621_v28 = vadd.f32 %v1728_v26, %v1528_v62  ;;  %v2271_v2 = vpop.f32.mrf.mxu1  ;;  %v2957_v62 = vsel %vm6169_vm5, %v2940_v45, 0  ;;  %v2517_v27 = vpop.f32.mrf.mxu2  ;;  %vm6177_vm5 = vmmov %vm6161_vm0 }
 0x1d3   : > { %v5624_v35 = vadd.f32 %v2271_v2, %v5512_v54  ;;  %4024 = vmatmul.msk.bf16.gmra.mxu3 %vm6168_vm8, %v3407_v12  ;;  %v3382_v54 = vpack.c.b16 %v3369_v3, %v3368_v33  ;;  %v2993_v15 = vunpack.c.l.b16 %v2957_v62  ;;  %vm6176_vm8 = vmmov %vm6170_vm3 }
 0x1d4   : > { %vm6179_vm3 = vmmov %vm6171_vm1 }
 0x1d5   : > { %v3412_v6 = vshll.u32 %v3382_v54, 16  ;;  %v3002_v56 = vpack.c.b16 %v2993_v15, %v2993_v15  ;;  %v3416_v45 = vshrl.u32 %v3382_v54, 16  ;;  %v3336_v54 = vsel %vm6127_vm7, %v3319_v14, 0  ;;  %vm6181_vm7 = vmmov %vm6171_vm1 }
 0x1d6   : > { %4021 = vmatmul.msk.bf16.gmra.mxu2 %vm6161_vm0, %v4058_v31  ;;  %v2634_v46 = vpop.f32.mrf.mxu3  ;;  %vm6178_vm0 = vmmov %vm6174_vm15 }
 0x1d7   : > { %v5634_v24 = vadd.f32 %v2634_v46, %v5571_v10  ;;  %v3410_v10 = vor.u32 %v3408_v40, %v3406_v42  ;;  %v3414_v5 = vrot.slane %v3412_v6, 1  ;;  %v3075_v34 = vshrl.u32 %v3002_v56, 16 }
 0x1d8   : > { %v3078_v23 = vshll.u32 %v3002_v56, 16  ;;  %v2544_v40 = vadd.f32 %v2517_v27, %v5580_v59 }
 0x1d9   : > { %v3415_v42 = vsel %vm6174_vm15, %v3410_v10, %v3414_v5  ;;  %v3077_v41 = vrot.slane %v3075_v34, 3  ;;  %v3418_v31 = vor.u32 %v3416_v45, %v3414_v5  ;;  %v3341_v45 = vsel %vm5333_vm9, %v3324_v37, 0  ;;  %vm6185_vm9 = vmmov %vm6171_vm1 }
 0x1da   : > { %v2274_v11 = vpop.f32.mrf.mxu1  ;;  %v3080_v51 = vrot.slane %v3078_v23, 4  ;;  %v2520_v3 = vpop.f32.mrf.mxu2  ;;  %vm6189_vm15 = vmmov %vm6187_vm4 }
 0x1db   : > { %v5637_v57 = vadd.f32 %v2274_v11, %v5560_v39  ;;  %v3335_v39 = vsel %vm6173_vm6, %v3318_v21, 0  ;;  %v2545_v53 = vadd.f32 %v2520_v3, %v5604_v47  ;;  %v3321_v21 = vld [vmem:[#allocation2 + $0x44] sm:$0xf]  ;;  %vm6188_vm6 = vmmov %vm6187_vm4 }
 0x1dc   : > { %v3371_v22 = vunpack.c.l.b16 %v3335_v39  ;;  %v3081_v26 = vor.u32 %v3080_v51, %v3077_v41  ;;  %v3338_v59 = vsel %vm5255_vm14, %v3321_v21, 0  ;;  %v3323_v51 = vld [vmem:[#allocation2 + $0x4c] sm:$0xf]  ;;  %vm6182_vm14 = vmmov %vm6178_vm0 }
 0x1dd   : > { %3979 = vmatmul.msk.bf16.gmra.mxu1 %vm6171_vm1, %v3073_v38  ;;  %v3374_v23 = vunpack.c.l.b16 %v3338_v59 }
 0x1de   : > { %v2636_v50 = vpop.f32.mrf.mxu3  ;;  %v3383_v19 = vpack.c.b16 %v3371_v22, %v3370_v30  ;;  %v3082_v61 = vsel %vm6176_vm8, %v3072_v60, %v3081_v26  ;;  %v3372_v60 = vunpack.c.l.b16 %v3336_v54  ;;  %vm6191_vm8 = vmmov %vm6187_vm4 }
 0x1df   : > { %v5648_v25 = vadd.f32 %v2636_v50, %v5590_v43  ;;  %v3322_v50 = vld [vmem:[#allocation2 + $0x48] sm:$0xf] }
 0x1e0   : > { %v3420_v12 = vshll.u32 %v3383_v19, 16  ;;  %v3424_v56 = vshrl.u32 %v3383_v19, 16  ;;  %v3339_v34 = vsel %vm5283_vm2, %v3322_v50, 0  ;;  %vm6183_vm2 = vmmov %vm6171_vm1 }
 0x1e1   : > { %v3375_v27 = vunpack.c.l.b16 %v3339_v34 }
 0x1e2   : > { %v2276_v13 = vpop.f32.mrf.mxu1  ;;  %v3422_v62 = vrot.slane %v3420_v12, 1 }
 0x1e3   : > { %v5651_v20 = vadd.f32 %v2276_v13, %v5583_v58  ;;  %4025 = vmatmul.msk.bf16.gmra.mxu3 %vm6175_vm11, %v3415_v42  ;;  %v3385_v30 = vpack.c.b16 %v3375_v27, %v3374_v23  ;;  %vm6190_vm11 = vmmov %vm6187_vm4 }
 0x1e4   : > { %v3423_v29 = vsel %vm6178_vm0, %v3418_v31, %v3422_v62  ;;  %v3426_v5 = vor.u32 %v3424_v56, %v3422_v62 }
 0x1e5   : > { %v3436_v41 = vshll.u32 %v3385_v30, 16  ;;  %v3440_v62 = vshrl.u32 %v3385_v30, 16 }
 0x1e6   : > { %v2639_v43 = vpop.f32.mrf.mxu3 }
 0x1e7   : > { %v5656_v2 = vadd.f32 %v2639_v43, %v2539_v1  ;;  %v3438_v26 = vrot.slane %v3436_v41, 1 }
 0x1ea   : > { %v2279_v33 = vpop.f32.mrf.mxu1 }
 0x1eb   : > { %v5659_v58 = vadd.f32 %v2279_v33, %v5601_v36  ;;  %v3337_v36 = vsel %vm5197_vm10, %v3320_v8, 0  ;;  %vm6180_vm10 = vmmov %vm6178_vm0 }
 0x1ec   : > { %v3373_v11 = vunpack.c.l.b16 %v3337_v36  ;;  %v2868_v36 = vpop.f32.mrf.mxu0 }
 0x1ed   : > { %3980 = vmatmul.msk.bf16.gmra.mxu1 %vm6177_vm5, %v3082_v61  ;;  %v3377_v61 = vunpack.c.l.b16 %v3341_v45  ;;  %v2908_v41 = vadd.f32 %v2868_v36, %v5599_v4  ;;  %v5730_v4 = vld [vmem:[%s5856_s8] ss:$0 sm:$0xff]  ;;  %vm6192_vm5 = vmmov %vm6187_vm4 }
 0x1ee   : > { %v2641_v46 = vpop.f32.mrf.mxu3  ;;  %v3384_v38 = vpack.c.b16 %v3373_v11, %v3372_v60 }
 0x1ef   : > { %v5664_v1 = vadd.f32 %v2641_v46, %v2540_v18  ;;  %v2522_v18 = vpop.f32.mrf.mxu2 }
 0x1f0   : > { %v3428_v55 = vshll.u32 %v3384_v38, 16  ;;  %v2546_v47 = vadd.f32 %v2522_v18, %v5624_v35  ;;  %v3340_v35 = vsel %vm5317_vm13, %v3323_v51, 0  ;;  %vm6184_vm13 = vmmov %vm6178_vm0 }
 0x1f2   : > { %v2281_v15 = vpop.f32.mrf.mxu1  ;;  %v3430_v0 = vrot.slane %v3428_v55, 1 }
 0x1f3   : > { %v5672_v44 = vadd.f32 %v2281_v15, %v5621_v28  ;;  %4026 = vmatmul.msk.bf16.gmra.mxu3 %vm6179_vm3, %v3423_v29  ;;  %v3442_v29 = vor.u32 %v3440_v62, %v3438_v26 }
 0x1f4   : > { %v2870_v21 = vpop.f32.mrf.mxu0 }
 0x1f5   : > { %v2909_v45 = vadd.f32 %v2870_v21, %v5617_v7 }
 0x1f6   : > { %v2644_v6 = vpop.f32.mrf.mxu3 }
 0x1f7   : > { %v5676_v17 = vadd.f32 %v2644_v6, %v2541_v63  ;;  %v2525_v10 = vpop.f32.mrf.mxu2  ;;  %v3431_v63 = vsel %vm6180_vm10, %v3426_v5, %v3430_v0 }
 0x1f8   : > { %v2547_v9 = vadd.f32 %v2525_v10, %v5637_v57 }
 0x1fe   : > { %v2646_v28 = vpop.f32.mrf.mxu3 }
 0x1ff   : > { %v5679_v39 = vadd.f32 %v2646_v28, %v2542_v48  ;;  %v2527_v42 = vpop.f32.mrf.mxu2  ;;  %v3432_v48 = vshrl.u32 %v3384_v38, 16 }
 0x200   : > { %v2548_v57 = vadd.f32 %v2527_v42, %v5651_v20  ;;  %v3342_v20 = vsel %vm5351_vm12, %v3325_v49, 0  ;;  %vm6186_vm12 = vmmov %vm6178_vm0 }
 0x201   : > { %v3434_v43 = vor.u32 %v3432_v48, %v3430_v0  ;;  %v3378_v6 = vunpack.c.l.b16 %v3342_v20  ;;  %vm6193_vm0 = vmmov %vm6187_vm4 }
 0x202   : > { %vm6194_vm3 = vmmov %vm6193_vm0 }
 0x203   : > { %4027 = vmatmul.msk.bf16.gmra.mxu3 %vm6181_vm7, %v3431_v63  ;;  %v3439_v3 = vsel %vm6182_vm14, %v3434_v43, %v3438_v26  ;;  %v3387_v55 = vpack.c.b16 %v3378_v6, %v3378_v6  ;;  %v2873_v63 = vpop.f32.mrf.mxu0  ;;  %v5724_v43 = vld [vmem:[%s5855_s7] ss:$0 sm:$0xff]  ;;  %v3621_v6 = vld [vmem:[%s4253_s27 + $0x8] sm:$0xff]  ;;  %vm6195_vm10 = vmmov %vm6193_vm0 }
 0x204   : > { %v2910_v7 = vadd.f32 %v2873_v63, %v5634_v24  ;;  %vm6196_vm7 = vmmov %vm6193_vm0 }
 0x205   : > { %v3452_v28 = vshll.u32 %v3387_v55, 16  ;;  %vm6197_vm14 = vmmov %vm6193_vm0 }
 0x206   : > { %v2649_v13 = vpop.f32.mrf.mxu3 }
 0x207   : > { %v5688_v22 = vadd.f32 %v2649_v13, %v2543_v52  ;;  %v2530_v12 = vpop.f32.mrf.mxu2  ;;  %v3376_v52 = vunpack.c.l.b16 %v3340_v35  ;;  %v3454_v0 = vrot.slane %v3452_v28, 1 }
 0x208   : > { %v2549_v16 = vadd.f32 %v2530_v12, %v5659_v58 }
 0x209   : > { %v3386_v8 = vpack.c.b16 %v3377_v61, %v3376_v52 }
 0x20b   : > { %v3444_v46 = vshll.u32 %v3386_v8, 16  ;;  %v3448_v10 = vshrl.u32 %v3386_v8, 16  ;;  %v2875_v30 = vpop.f32.mrf.mxu0 }
 0x20d   : > { %v3446_v60 = vrot.slane %v3444_v46, 1  ;;  %v3620_v46 = vld [vmem:[%s4253_s27] sm:$0xff] }
 0x20e   : > { %v2651_v19 = vpop.f32.mrf.mxu3 }
 0x20f   : > { %v5691_v33 = vadd.f32 %v2651_v19, %v2544_v40  ;;  %v2532_v54 = vpop.f32.mrf.mxu2  ;;  %v3119_v40 = vpop.f32.mrf.mxu1  ;;  %v3447_v18 = vsel %vm6184_vm13, %v3442_v29, %v3446_v60  ;;  %v3450_v32 = vor.u32 %v3448_v10, %v3446_v60  ;;  %vm6199_vm13 = vmmov %vm6193_vm0 }
 0x210   : > { %v2550_v38 = vadd.f32 %v2532_v54, %v5672_v44  ;;  %v3159_v51 = vadd.f32 %v3119_v40, %v2908_v41 }
 0x211   : > { %v3455_v44 = vsel %vm6186_vm12, %v3450_v32, %v3454_v0  ;;  %vm6201_vm12 = vmmov %vm6193_vm0 }
 0x213   : > { %4028 = vmatmul.msk.bf16.gmra.mxu3 %vm6183_vm2, %v3439_v3  ;;  %v2878_v26 = vpop.f32.mrf.mxu0  ;;  %vm6198_vm2 = vmmov %vm6193_vm0 }
 0x216   : > { %v2654_v14 = vpop.f32.mrf.mxu3 }
 0x217   : > { %v5700_v31 = vadd.f32 %v2654_v14, %v2545_v53  ;;  %v3253_v58 = vpop.f32.mrf.mxu2  ;;  %v3121_v50 = vpop.f32.mrf.mxu1 }
 0x218   : > { %v3293_v19 = vadd.f32 %v3253_v58, %v3159_v51  ;;  %v3160_v52 = vadd.f32 %v3121_v50, %v2909_v45  ;;  %v2911_v58 = vadd.f32 %v2875_v30, %v5648_v25  ;;  %v2912_v25 = vadd.f32 %v2878_v26, %v5656_v2 }
 0x21b   : > { %v2880_v36 = vpop.f32.mrf.mxu0 }
 0x21c   : > { %v2913_v2 = vadd.f32 %v2880_v36, %v5664_v1 }
 0x21e   : > { %v2656_v15 = vpop.f32.mrf.mxu3 }
 0x21f   : > { %v5703_v11 = vadd.f32 %v2656_v15, %v2546_v47  ;;  %v3255_v34 = vpop.f32.mrf.mxu2  ;;  %v3124_v23 = vpop.f32.mrf.mxu1 }
 0x220   : > { %v3294_v8 = vadd.f32 %v3255_v34, %v3160_v52  ;;  %v3161_v15 = vadd.f32 %v3124_v23, %v2910_v7 }
 0x223   : > { %4029 = vmatmul.msk.bf16.gmra.mxu3 %vm6185_vm9, %v3447_v18  ;;  %vm6200_vm9 = vmmov %vm6193_vm0 }
 0x226   : > { %v2659_v56 = vpop.f32.mrf.mxu3 }
 0x227   : > { %v5710_v53 = vadd.f32 %v2659_v56, %v2547_v9  ;;  %v3258_v13 = vpop.f32.mrf.mxu2  ;;  %v3126_v42 = vpop.f32.mrf.mxu1 }
 0x228   : > { %v3295_v18 = vadd.f32 %v3258_v13, %v3161_v15  ;;  %v3162_v50 = vadd.f32 %v3126_v42, %v2911_v58  ;;  %v3625_v58 = vld [vmem:[%s4253_s27 + $0x28] sm:$0xff] }
 0x22e   : > { %v2661_v5 = vpop.f32.mrf.mxu3 }
 0x22f   : > { %v5712_v59 = vadd.f32 %v2661_v5, %v2548_v57  ;;  %v3260_v37 = vpop.f32.mrf.mxu2  ;;  %v3129_v3 = vpop.f32.mrf.mxu1 }
 0x230   : > { %v2883_v5 = vpop.f32.mrf.mxu0  ;;  %v3296_v63 = vadd.f32 %v3260_v37, %v3162_v50  ;;  %v3163_v30 = vadd.f32 %v3129_v3, %v2912_v25 }
 0x231   : > { %v2914_v1 = vadd.f32 %v2883_v5, %v5676_v17 }
 0x233   : > { %4030 = vmatmul.msk.bf16.gmra.mxu3 %vm6171_vm1, %v3455_v44  ;;  %v3622_v44 = vld [vmem:[%s4253_s27 + $0x10] sm:$0xff]  ;;  %vm6202_vm1 = vmmov %vm6193_vm0 }
 0x236   : > { %v2664_v27 = vpop.f32.mrf.mxu3 }
 0x237   : > { %v5716_v47 = vadd.f32 %v2664_v27, %v2549_v16  ;;  %v3263_v62 = vpop.f32.mrf.mxu2  ;;  %v3131_v20 = vpop.f32.mrf.mxu1 }
 0x238   : > { %v3297_v37 = vadd.f32 %v3263_v62, %v3163_v30 }
 0x23e   : > { %v2666_v48 = vpop.f32.mrf.mxu3 }
 0x23f   : > { %v5719_v9 = vadd.f32 %v2666_v48, %v2550_v38  ;;  %v3265_v21 = vpop.f32.mrf.mxu2  ;;  %v3134_v0 = vpop.f32.mrf.mxu1 }
 0x246   : > { %v3492_v35 = vpop.f32.mrf.mxu3 }
 0x247   : > { %v3532_v12 = vadd.f32 %v3492_v35, %v3293_v19  ;;  %v3268_v41 = vpop.f32.mrf.mxu2  ;;  %v2885_v19 = vpop.f32.mrf.mxu0 }
 0x248   : > { %v3136_v45 = vpop.f32.mrf.mxu1  ;;  %v2915_v17 = vadd.f32 %v2885_v19, %v5679_v39 }
 0x249   : > { %v3552_v61 = vmul.f32 %v5724_v43, %v3532_v12  ;;  %v3623_v12 = vld [vmem:[%s4253_s27 + $0x18] sm:$0xff] }
 0x24b   : > { %v3572_v57 = vadd.f32 %v5730_v4, %v3552_v61  ;;  %v3164_v61 = vadd.f32 %v3131_v20, %v2913_v2 }
 0x24d   : > { %v3588_v14 = vmul.f32 0.1, %v3572_v57  ;;  %v3298_v62 = vadd.f32 %v3265_v21, %v3164_v61 }
 0x24e   : > { %v3494_v16 = vpop.f32.mrf.mxu3 }
 0x24f   : > { %v3604_v54 = vmax.f32 %v3572_v57, %v3588_v14  ;;  %v3533_v49 = vadd.f32 %v3494_v16, %v3294_v8  ;;  %v2888_v7 = vpop.f32.mrf.mxu0 }
 0x250   : > { %v2916_v39 = vadd.f32 %v2888_v7, %v5688_v22  ;;  %v3628_v7 = vld [vmem:[%s4253_s27 + $0x40] sm:$0xff] }
 0x251   : > { %v3636_v29 = vadd.f32 %v3620_v46, %v3604_v54  ;;  %v3553_v60 = vmul.f32 %v5724_v43, %v3533_v49  ;;  %v3270_v46 = vpop.f32.mrf.mxu2  ;;  %v3624_v54 = vld [vmem:[%s4253_s27 + $0x20] sm:$0xff] }
 0x253   : > { %3652 = vst.msk [vmem:[%s5741_s28] sm:$0xff] %vm6187_vm4, %v3636_v29  ;;  %v3573_v24 = vadd.f32 %v5730_v4, %v3553_v60  ;;  %v3139_v29 = vpop.f32.mrf.mxu1  ;;  %v3165_v60 = vadd.f32 %v3134_v0, %v2914_v1 }
 0x254   : > { %v3167_v30 = vadd.f32 %v3139_v29, %v2916_v39 }
 0x255   : > { %v3589_v40 = vmul.f32 0.1, %v3573_v24 }
 0x256   : > { %v3497_v38 = vpop.f32.mrf.mxu3 }
 0x257   : > { %v3605_v56 = vmax.f32 %v3573_v24, %v3589_v40  ;;  %v3534_v55 = vadd.f32 %v3497_v38, %v3295_v18  ;;  %v2890_v50 = vpop.f32.mrf.mxu0 }
 0x258   : > { %v2917_v22 = vadd.f32 %v2890_v50, %v5691_v33 }
 0x259   : > { %v3637_v10 = vadd.f32 %v3621_v6, %v3605_v56  ;;  %v3554_v28 = vmul.f32 %v5724_v43, %v3534_v55  ;;  %v3299_v6 = vadd.f32 %v3268_v41, %v3165_v60  ;;  %v3273_v38 = vpop.f32.mrf.mxu2 }
 0x25b   : > { %3653 = vst.msk [vmem:[%s5741_s28 + $0x8] sm:$0xff] %vm6188_vm6, %v3637_v10  ;;  %v3574_v32 = vadd.f32 %v5730_v4, %v3554_v28  ;;  %v3166_v10 = vadd.f32 %v3136_v45, %v2915_v17  ;;  %v3627_v45 = vld [vmem:[%s4253_s27 + $0x38] sm:$0xff] }
 0x25d   : > { %v3590_v34 = vmul.f32 0.1, %v3574_v32 }
 0x25e   : > { %v3499_v23 = vpop.f32.mrf.mxu3 }
 0x25f   : > { %v3606_v27 = vmax.f32 %v3574_v32, %v3590_v34  ;;  %v3535_v13 = vadd.f32 %v3499_v23, %v3296_v63  ;;  %v3141_v32 = vpop.f32.mrf.mxu1  ;;  %v3300_v63 = vadd.f32 %v3270_v46, %v3166_v10  ;;  %v2893_v41 = vpop.f32.mrf.mxu0 }
 0x260   : > { %v2918_v33 = vadd.f32 %v2893_v41, %v5700_v31  ;;  %v3631_v41 = vld [vmem:[%s4253_s27 + $0x58] sm:$0xff] }
 0x261   : > { %v3638_v42 = vadd.f32 %v3622_v44, %v3606_v27  ;;  %v3555_v48 = vmul.f32 %v5724_v43, %v3535_v13  ;;  %v3626_v44 = vld [vmem:[%s4253_s27 + $0x30] sm:$0xff]  ;;  %v3275_v13 = vpop.f32.mrf.mxu2 }
 0x263   : > { %3654 = vst.msk [vmem:[%s5741_s28 + $0x10] sm:$0xff] %vm6189_vm15, %v3638_v42  ;;  %v3575_v51 = vadd.f32 %v5730_v4, %v3555_v48 }
 0x265   : > { %v3591_v35 = vmul.f32 0.1, %v3575_v51 }
 0x266   : > { %v3502_v52 = vpop.f32.mrf.mxu3 }
 0x267   : > { %v3607_v26 = vmax.f32 %v3575_v51, %v3591_v35  ;;  %v3536_v3 = vadd.f32 %v3502_v52, %v3297_v37  ;;  %v3144_v19 = vpop.f32.mrf.mxu1  ;;  %v3301_v37 = vadd.f32 %v3273_v38, %v3167_v30 }
 0x269   : > { %v3639_v57 = vadd.f32 %v3623_v12, %v3607_v26  ;;  %v3556_v14 = vmul.f32 %v5724_v43, %v3536_v3  ;;  %v3168_v26 = vadd.f32 %v3141_v32, %v2917_v22 }
 0x26b   : > { %3655 = vst.msk [vmem:[%s5741_s28 + $0x18] sm:$0xff] %vm6190_vm11, %v3639_v57  ;;  %v3576_v8 = vadd.f32 %v5730_v4, %v3556_v14  ;;  %v3278_v57 = vpop.f32.mrf.mxu2 }
 0x26d   : > { %v3592_v16 = vmul.f32 0.1, %v3576_v8 }
 0x26e   : > { %v3504_v49 = vpop.f32.mrf.mxu3 }
 0x26f   : > { %v3608_v36 = vmax.f32 %v3576_v8, %v3592_v16  ;;  %v3537_v15 = vadd.f32 %v3504_v49, %v3298_v62  ;;  %v2895_v8 = vpop.f32.mrf.mxu0  ;;  %v3302_v16 = vadd.f32 %v3275_v13, %v3168_v26  ;;  %v3146_v62 = vpop.f32.mrf.mxu1 }
 0x270   : > { %v2919_v31 = vadd.f32 %v2895_v8, %v5703_v11 }
 0x271   : > { %v3640_v20 = vadd.f32 %v3624_v54, %v3608_v36  ;;  %v3557_v24 = vmul.f32 %v5724_v43, %v3537_v15  ;;  %v3169_v36 = vadd.f32 %v3144_v19, %v2918_v33 }
 0x273   : > { %3656 = vst.msk [vmem:[%s5741_s28 + $0x20] sm:$0xff] %vm6191_vm8, %v3640_v20  ;;  %v3577_v40 = vadd.f32 %v5730_v4, %v3557_v24  ;;  %v3280_v20 = vpop.f32.mrf.mxu2 }
 0x275   : > { %v3593_v18 = vmul.f32 0.1, %v3577_v40 }
 0x276   : > { %v3507_v56 = vpop.f32.mrf.mxu3 }
 0x277   : > { %v3609_v55 = vmax.f32 %v3577_v40, %v3593_v18  ;;  %v3538_v21 = vadd.f32 %v3507_v56, %v3299_v6  ;;  %v3303_v40 = vadd.f32 %v3278_v57, %v3169_v36  ;;  %v2898_v18 = vpop.f32.mrf.mxu0  ;;  %v3629_v6 = vld [vmem:[%s4253_s27 + $0x48] sm:$0xff]  ;;  %v3149_v17 = vpop.f32.mrf.mxu1  ;;  %v3632_v57 = vld [vmem:[%s4253_s27 + $0x60] sm:$0xff] }
 0x278   : > { %v2920_v11 = vadd.f32 %v2898_v18, %v5710_v53 }
 0x279   : > { %v3641_v28 = vadd.f32 %v3625_v58, %v3609_v55  ;;  %v3558_v5 = vmul.f32 %v5724_v43, %v3538_v21  ;;  %v3170_v55 = vadd.f32 %v3146_v62, %v2919_v31 }
 0x27a   : > { %v3171_v39 = vadd.f32 %v3149_v17, %v2920_v11  ;;  %v3634_v17 = vld [vmem:[%s4253_s27 + $0x70] sm:$0xff] }
 0x27b   : > { %3657 = vst.msk [vmem:[%s5741_s28 + $0x28] sm:$0xff] %vm6192_vm5, %v3641_v28  ;;  %v3578_v0 = vadd.f32 %v5730_v4, %v3558_v5  ;;  %v3304_v5 = vadd.f32 %v3280_v20, %v3170_v55  ;;  %v3283_v32 = vpop.f32.mrf.mxu2 }
 0x27d   : > { %v3594_v34 = vmul.f32 0.1, %v3578_v0 }
 0x27e   : > { %v3509_v23 = vpop.f32.mrf.mxu3 }
 0x27f   : > { %v3610_v25 = vmax.f32 %v3578_v0, %v3594_v34  ;;  %v3539_v27 = vadd.f32 %v3509_v23, %v3300_v63  ;;  %v3630_v0 = vld [vmem:[%s4253_s27 + $0x50] sm:$0xff]  ;;  %v2900_v23 = vpop.f32.mrf.mxu0  ;;  %v3151_v13 = vpop.f32.mrf.mxu1 }
 0x280   : > { %v2921_v53 = vadd.f32 %v2900_v23, %v5712_v59 }
 0x281   : > { %v3642_v42 = vadd.f32 %v3626_v44, %v3610_v25  ;;  %v3559_v48 = vmul.f32 %v5724_v43, %v3539_v27 }
 0x283   : > { %3658 = vst.msk [vmem:[%s5741_s28 + $0x30] sm:$0xff] %vm6193_vm0, %v3642_v42  ;;  %v3579_v51 = vadd.f32 %v5730_v4, %v3559_v48  ;;  %v3305_v48 = vadd.f32 %v3283_v32, %v3171_v39  ;;  %v3635_v32 = vld [vmem:[%s4253_s27 + $0x78] sm:$0xff] }
 0x285   : > { %v3595_v35 = vmul.f32 0.1, %v3579_v51 }
 0x286   : > { %v3512_v12 = vpop.f32.mrf.mxu3 }
 0x287   : > { %v3611_v52 = vmax.f32 %v3579_v51, %v3595_v35  ;;  %v3540_v2 = vadd.f32 %v3512_v12, %v3301_v37  ;;  %v3285_v37 = vpop.f32.mrf.mxu2  ;;  %v3154_v26 = vpop.f32.mrf.mxu1 }
 0x289   : > { %v3643_v3 = vadd.f32 %v3627_v45, %v3611_v52  ;;  %v3560_v61 = vmul.f32 %v5724_v43, %v3540_v2  ;;  %v3172_v45 = vadd.f32 %v3151_v13, %v2921_v53  ;;  %v2903_v52 = vpop.f32.mrf.mxu0 }
 0x28a   : > { %v2922_v59 = vadd.f32 %v2903_v52, %v5716_v47 }
 0x28b   : > { %3659 = vst.msk [vmem:[%s5741_s28 + $0x38] sm:$0xff] %vm6194_vm3, %v3643_v3  ;;  %v3580_v14 = vadd.f32 %v5730_v4, %v3560_v61  ;;  %v3306_v61 = vadd.f32 %v3285_v37, %v3172_v45 }
 0x28d   : > { %v3596_v46 = vmul.f32 0.1, %v3580_v14 }
 0x28e   : > { %v3514_v54 = vpop.f32.mrf.mxu3 }
 0x28f   : > { %v3612_v49 = vmax.f32 %v3580_v14, %v3596_v46  ;;  %v3541_v1 = vadd.f32 %v3514_v54, %v3302_v16  ;;  %v3173_v16 = vadd.f32 %v3154_v26, %v2922_v59  ;;  %v3288_v54 = vpop.f32.mrf.mxu2 }
 0x291   : > { %v3644_v15 = vadd.f32 %v3628_v7, %v3612_v49  ;;  %v3561_v29 = vmul.f32 %v5724_v43, %v3541_v1  ;;  %v2905_v49 = vpop.f32.mrf.mxu0  ;;  %v3307_v36 = vadd.f32 %v3288_v54, %v3173_v16 }
 0x292   : > { %v2923_v47 = vadd.f32 %v2905_v49, %v5719_v9 }
 0x293   : > { %3660 = vst.msk [vmem:[%s5741_s28 + $0x40] sm:$0xff] %vm6195_vm10, %v3644_v15  ;;  %v3581_v60 = vadd.f32 %v5730_v4, %v3561_v29  ;;  %v3156_v15 = vpop.f32.mrf.mxu1  ;;  %v3633_v29 = vld [vmem:[%s4253_s27 + $0x68] sm:$0xff] }
 0x295   : > { %v3597_v24 = vmul.f32 0.1, %v3581_v60 }
 0x296   : > { %v3517_v38 = vpop.f32.mrf.mxu3 }
 0x297   : > { %v3613_v58 = vmax.f32 %v3581_v60, %v3597_v24  ;;  %v3542_v56 = vadd.f32 %v3517_v38, %v3303_v40  ;;  %v3174_v40 = vadd.f32 %v3156_v15, %v2923_v47  ;;  %v3290_v31 = vpop.f32.mrf.mxu2 }
 0x299   : > { %v3645_v21 = vadd.f32 %v3629_v6, %v3613_v58  ;;  %v3562_v50 = vmul.f32 %v5724_v43, %v3542_v56  ;;  %v3308_v56 = vadd.f32 %v3290_v31, %v3174_v40 }
 0x29b   : > { %3661 = vst.msk [vmem:[%s5741_s28 + $0x48] sm:$0xff] %vm6196_vm7, %v3645_v21  ;;  %v3582_v10 = vadd.f32 %v5730_v4, %v3562_v50 }
 0x29d   : > { %v3598_v28 = vmul.f32 0.1, %v3582_v10 }
 0x29e   : > { %v3519_v34 = vpop.f32.mrf.mxu3 }
 0x29f   : > { %v3614_v63 = vmax.f32 %v3582_v10, %v3598_v28  ;;  %v3543_v44 = vadd.f32 %v3519_v34, %v3304_v5 }
 0x2a1   : > { %v3646_v25 = vadd.f32 %v3630_v0, %v3614_v63  ;;  %v3563_v27 = vmul.f32 %v5724_v43, %v3543_v44 }
 0x2a3   : > { %3662 = vst.msk [vmem:[%s5741_s28 + $0x50] sm:$0xff] %vm6197_vm14, %v3646_v25  ;;  %v3583_v30 = vadd.f32 %v5730_v4, %v3563_v27 }
 0x2a5   : > { %v3599_v42 = vmul.f32 0.1, %v3583_v30 }
 0x2a6   : > { %v3522_v51 = vpop.f32.mrf.mxu3 }
 0x2a7   : > { %v3615_v19 = vmax.f32 %v3583_v30, %v3599_v42  ;;  %v3544_v35 = vadd.f32 %v3522_v51, %v3305_v48 }
 0x2a9   : > { %v3647_v12 = vadd.f32 %v3631_v41, %v3615_v19  ;;  %v3564_v22 = vmul.f32 %v5724_v43, %v3544_v35 }
 0x2ab   : > { %3663 = vst.msk [vmem:[%s5741_s28 + $0x58] sm:$0xff] %vm6198_vm2, %v3647_v12  ;;  %v3584_v2 = vadd.f32 %v5730_v4, %v3564_v22 }
 0x2ad   : > { %v3600_v3 = vmul.f32 0.1, %v3584_v2 }
 0x2ae   : > { %v3524_v14 = vpop.f32.mrf.mxu3 }
 0x2af   : > { %v3616_v8 = vmax.f32 %v3584_v2, %v3600_v3  ;;  %v3545_v46 = vadd.f32 %v3524_v14, %v3306_v61 }
 0x2b1   : > { %v3648_v62 = vadd.f32 %v3632_v57, %v3616_v8  ;;  %v3565_v7 = vmul.f32 %v5724_v43, %v3545_v46 }
 0x2b3   : > { %3664 = vst.msk [vmem:[%s5741_s28 + $0x60] sm:$0xff] %vm6199_vm13, %v3648_v62  ;;  %v3585_v33 = vadd.f32 %v5730_v4, %v3565_v7 }
 0x2b5   : > { %v3601_v1 = vmul.f32 0.1, %v3585_v33 }
 0x2b6   : > { %v3527_v60 = vpop.f32.mrf.mxu3 }
 0x2b7   : > { %v3617_v20 = vmax.f32 %v3585_v33, %v3601_v1  ;;  %v3546_v24 = vadd.f32 %v3527_v60, %v3307_v36 }
 0x2b9   : > { %v3649_v18 = vadd.f32 %v3633_v29, %v3617_v20  ;;  %v3566_v6 = vmul.f32 %v5724_v43, %v3546_v24 }
 0x2bb   : > { %3665 = vst.msk [vmem:[%s5741_s28 + $0x68] sm:$0xff] %vm6200_vm9, %v3649_v18  ;;  %v3586_v38 = vadd.f32 %v5730_v4, %v3566_v6 }
 0x2bd   : > { %v3602_v58 = vmul.f32 0.1, %v3586_v38 }
 0x2be   : > { %v3529_v55 = vpop.f32.mrf.mxu3 }
 0x2bf   : > { %v3618_v21 = vmax.f32 %v3586_v38, %v3602_v58  ;;  %v3547_v9 = vadd.f32 %v3529_v55, %v3308_v56 }
 0x2c1   : > { %v3650_v50 = vadd.f32 %v3634_v17, %v3618_v21  ;;  %v3567_v10 = vmul.f32 %v5724_v43, %v3547_v9 }
 0x2c3   : > { %3666 = vst.msk [vmem:[%s5741_s28 + $0x70] sm:$0xff] %vm6201_vm12, %v3650_v50  ;;  %v3587_v28 = vadd.f32 %v5730_v4, %v3567_v10 }
 0x2c5   : > { %v3603_v5 = vmul.f32 0.1, %v3587_v28 }
 0x2c7   : > { %v3619_v0 = vmax.f32 %v3587_v28, %v3603_v5 }
 0x2c9   : > { %v3651_v34 = vadd.f32 %v3635_v32, %v3619_v0 }
 0x2cb   : > { %3667 = vst.msk [vmem:[%s5741_s28 + $0x78] sm:$0xff] %vm6202_vm1, %v3651_v34 }
 0x2cc PF: > { %s19_s13 = sadd.s32 1, %s4147_s13   ;;  %s6203_s30 = smov %s4139_s11 }
 0x2cd   : > { %p16_p12 = scmp.ge.s32.totalorder %s19_s13, 6   ;;  %s6204_s10 = smov %s4143_s12 }
 0x2ce   : > { %s6205_s11 = smov %s6208_s14  ;;  %s6206_s12 = smov %s6212_s15 }
 0x2cf   :  { %18 = sbr.rel (!%p16_p12) target bundleno = 3 (0x3), region = 100 }

</bundles_post_ra>
